<compile_context>
chip_gen: v7x
topology: tpu7x:2x2x1
jax: 0.10.0
libtpu: 0.0.40
codegen_flags: <defaults>
</compile_context>

<pallas_src>
import functools

import jax
import jax.numpy as jnp
from jax import lax
from jax.experimental import pallas as pl
from jax.experimental.pallas import tpu as pltpu

BN_EPS = 1e-5
LEAKY_SLOPE = 0.01          # torch.nn.LeakyReLU default
LANE = 128
VMEM_LIMIT = 64 * 1024 * 1024


# --------------------------------------------------------------------------
# Pass 1: direct conv for one row-tile (k*k tap matmuls) + per-channel
#         partial sum / sum-of-squares for the BatchNorm statistics.
# --------------------------------------------------------------------------
def _conv_stats_kernel(x_ref, w_ref, conv_ref, sum_ref, ssq_ref, *, k, s, th, wo):
    c1 = x_ref.shape[-1]
    c2p = w_ref.shape[-1]
    acc = jnp.zeros((th * wo, c2p), jnp.float32)
    for di in range(k):                      # static unroll over the k*k taps
        for dj in range(k):
            if s == 1:
                win = x_ref[di:di + th, dj:dj + wo, :]          # (th, wo, c1) bf16
            else:
                win = x_ref[pl.ds(di, th, s), pl.ds(dj, wo, s), :]
            lhs = win.reshape(th * wo, c1)
            acc = acc + jnp.dot(lhs, w_ref[di, dj, :, :],
                                preferred_element_type=jnp.float32)
    conv_ref[...] = acc
    sum_ref[...] = jnp.sum(acc, axis=0, keepdims=True)          # (1, c2p)
    ssq_ref[...] = jnp.sum(acc * acc, axis=0, keepdims=True)    # (1, c2p)


# --------------------------------------------------------------------------
# Pass 2: apply the global BN affine (scale/shift) + LeakyReLU per tile.
# --------------------------------------------------------------------------
def _bn_lrelu_kernel(conv_ref, scale_ref, shift_ref, out_ref):
    y = conv_ref[...] * scale_ref[...] + shift_ref[...]
    out_ref[...] = jnp.where(y > 0, y, LEAKY_SLOPE * y)


def _pick_row_tile(ho, wo, c1, c2p, k, s, budget_bytes=8 * 1024 * 1024):
    """Largest divisor of Ho whose per-step working set fits the VMEM budget."""
    best = 1
    for th in range(1, ho + 1):
        if ho % th:
            continue
        th_in = (th - 1) * s + k
        wp = (wo - 1) * s + k
        step_bytes = (th_in * wp * c1 * 2          # bf16 input tile
                      + 2 * th * wo * c2p * 4)     # f32 conv tile + accumulator
        if 2 * step_bytes <= budget_bytes:         # x2: double buffering
            best = th
    return best


@functools.partial(jax.jit, static_argnames=("k", "s", "p"))
def cbl_forward(x, w, b, gamma, beta, *, k, s, p):
    """x: (N, C1, H, W) f32; w: (C2, C1, k, k); returns (N, C2, Ho, Wo) f32."""
    del b  # conv bias is exactly cancelled by the training-mode BN mean subtraction
    N, C1, H, W = x.shape
    C2 = w.shape[0]
    Ho = (H + 2 * p - k) // s + 1
    Wo = (W + 2 * p - k) // s + 1
    Wp = W + 2 * p
    C2p = ((C2 + LANE - 1) // LANE) * LANE

    # ---- wrapper glue: NCHW -> padded NHWC row tiles (halo only, no im2col) --
    x_nhwc = jnp.transpose(x, (0, 2, 3, 1)).astype(jnp.bfloat16)
    x_pad = jnp.pad(x_nhwc, ((0, 0), (p, p), (p, p), (0, 0)))

    th = _pick_row_tile(Ho, Wo, C1, C2p, k, s)
    n_ht = Ho // th
    th_in = (th - 1) * s + k
    x_tiles = jnp.stack(
        [lax.dynamic_slice_in_dim(x_pad, t * th * s, th_in, axis=1)
         for t in range(n_ht)], axis=1)            # (N, n_ht, th_in, Wp, C1) bf16

    # weights: (C2, C1, k, k) -> (k, k, C1, C2p) zero-padded lanes, bf16
    w_taps = jnp.transpose(w, (2, 3, 1, 0))
    w_taps = jnp.pad(w_taps, ((0, 0), (0, 0), (0, 0), (0, C2p - C2)))
    w_taps = w_taps.astype(jnp.bfloat16)

    M = N * Ho * Wo
    K = C1 * k * k

    # ---------------- pass 1: conv tiles + per-channel partial stats ---------
    kern1 = functools.partial(_conv_stats_kernel, k=k, s=s, th=th, wo=Wo)
    conv, sums, ssqs = pl.pallas_call(
        kern1,
        grid=(N, n_ht),
        in_specs=[
            pl.BlockSpec((None, None, th_in, Wp, C1),
                         lambda n, t: (n, t, 0, 0, 0)),
            pl.BlockSpec((k, k, C1, C2p), lambda n, t: (0, 0, 0, 0)),
        ],
        out_specs=(
            pl.BlockSpec((None, None, th * Wo, C2p), lambda n, t: (n, t, 0, 0)),
            pl.BlockSpec((None, None, 1, C2p), lambda n, t: (n, t, 0, 0)),
            pl.BlockSpec((None, None, 1, C2p), lambda n, t: (n, t, 0, 0)),
        ),
        out_shape=(
            jax.ShapeDtypeStruct((N, n_ht, th * Wo, C2p), jnp.float32),
            jax.ShapeDtypeStruct((N, n_ht, 1, C2p), jnp.float32),
            jax.ShapeDtypeStruct((N, n_ht, 1, C2p), jnp.float32),
        ),
        compiler_params=pltpu.CompilerParams(
            dimension_semantics=("parallel", "parallel"),
            vmem_limit_bytes=VMEM_LIMIT),
        cost_estimate=pl.CostEstimate(
            flops=2 * M * K * C2p,
            transcendentals=0,
            bytes_accessed=(x_tiles.size * 2 + w_taps.size * 2
                            + (M * C2p + 2 * N * n_ht * C2p) * 4)),
    )(x_tiles, w_taps)

    # ---------------- tiny JAX combine: global mean/var -> scale & shift -----
    cnt = jnp.float32(M)
    total = jnp.sum(sums, axis=(0, 1, 2))                  # (C2p,)
    total_sq = jnp.sum(ssqs, axis=(0, 1, 2))
    mean = total / cnt
    var = jnp.maximum(total_sq / cnt - mean * mean, 0.0)   # biased (training) var
    inv_std = lax.rsqrt(var + BN_EPS)
    gamma_p = jnp.pad(gamma.astype(jnp.float32), (0, C2p - C2))
    beta_p = jnp.pad(beta.astype(jnp.float32), (0, C2p - C2))
    scale = (gamma_p * inv_std).reshape(1, C2p)
    shift = (beta_p - mean * gamma_p * inv_std).reshape(1, C2p)

    # ---------------- pass 2: normalize + LeakyReLU per tile ------------------
    y = pl.pallas_call(
        _bn_lrelu_kernel,
        grid=(N, n_ht),
        in_specs=[
            pl.BlockSpec((None, None, th * Wo, C2p), lambda n, t: (n, t, 0, 0)),
            pl.BlockSpec((1, C2p), lambda n, t: (0, 0)),
            pl.BlockSpec((1, C2p), lambda n, t: (0, 0)),
        ],
        out_specs=pl.BlockSpec((None, None, th * Wo, C2p),
                               lambda n, t: (n, t, 0, 0)),
        out_shape=jax.ShapeDtypeStruct((N, n_ht, th * Wo, C2p), jnp.float32),
        compiler_params=pltpu.CompilerParams(
            dimension_semantics=("parallel", "parallel"),
            vmem_limit_bytes=VMEM_LIMIT),
        cost_estimate=pl.CostEstimate(
            flops=4 * M * C2p, transcendentals=0,
            bytes_accessed=2 * M * C2p * 4),
    )(conv, scale, shift)

    # wrapper glue back to the module's NCHW contract
    y = y.reshape(N, n_ht, th, Wo, C2p).reshape(N, Ho, Wo, C2p)[..., :C2]
    return jnp.transpose(y, (0, 3, 1, 2))


def _reference(x, w, b, gamma, beta, k, s, p):
    """Pure-JAX f32 reference matching PyTorch CBL forward (training-mode BN)."""
    conv = lax.conv_general_dilated(
        x, w, window_strides=(s, s), padding=[(p, p), (p, p)],
        dimension_numbers=("NCHW", "OIHW", "NCHW"))
    conv = conv + b[None, :, None, None]
    mean = conv.mean(axis=(0, 2, 3), keepdims=True)
    var = ((conv - mean) ** 2).mean(axis=(0, 2, 3), keepdims=True)
    y = (conv - mean) * lax.rsqrt(var + BN_EPS)
    y = y * gamma[None, :, None, None] + beta[None, :, None, None]
    return jnp.where(y > 0, y, LEAKY_SLOPE * y)


if __name__ == "__main__":
    # CBL(c1=4, c2=8, k=3, s=1, p=1) on a (2, 4, 16, 16) input.
    c1, c2, k, s, p = 4, 8, 3, 1, 1
    N, H, W = 2, 16, 16

    key = jax.random.PRNGKey(0)
    kx, kw, kb = jax.random.split(key, 3)

    x = jax.random.normal(kx, (N, c1, H, W), dtype=jnp.float32)

    # Conv2d-like uniform init; BN defaults gamma=1, beta=0.
    fan_in = c1 * k * k
    bound = 1.0 / (fan_in ** 0.5)
    w = jax.random.uniform(kw, (c2, c1, k, k), minval=-bound, maxval=bound,
                           dtype=jnp.float32)
    b = jax.random.uniform(kb, (c2,), minval=-bound, maxval=bound,
                           dtype=jnp.float32)
    gamma = jnp.ones((c2,), jnp.float32)
    beta = jnp.zeros((c2,), jnp.float32)

    out = cbl_forward(x, w, b, gamma, beta, k=k, s=s, p=p)
    out = jax.block_until_ready(out)

    ref = jax.block_until_ready(_reference(x, w, b, gamma, beta, k, s, p))
    assert out.shape == (N, c2, H, W), out.shape
    max_err = float(jnp.max(jnp.abs(out - ref)))
    # bf16 MXU inputs with f32 accumulation -> loosened tolerance vs f32 ref.
    assert jnp.allclose(out, ref, rtol=2e-2, atol=2e-2), max_err

    print("KERNEL_OK")
</pallas_src>

<mosaic_0001>
module attributes {stable_mosaic.version = 11 : i64} {
  func.func @_conv_stats_kernel(%arg0: i32, %arg1: i32, %arg2: memref<1x1x18x18x4xbf16, #tpu.memory_space<vmem>>, %arg3: memref<3x3x4x128xbf16, #tpu.memory_space<vmem>>, %arg4: memref<1x1x256x128xf32, #tpu.memory_space<vmem>>, %arg5: memref<1x1x1x128xf32, #tpu.memory_space<vmem>>, %arg6: memref<1x1x1x128xf32, #tpu.memory_space<vmem>>) attributes {dimension_semantics = [#tpu.dimension_semantics<parallel>, #tpu.dimension_semantics<parallel>], iteration_bounds = array<i64: 2, 1>, scalar_prefetch = 0 : i64, scratch_operands = 0 : i64, tpu.core_type = #tpu.core_type<tc>, window_params = [{transform_indices = @transform_0, window_bounds = array<i64: 1, 1, 18, 18, 4>}, {pipeline_mode = #tpu.pipeline_mode<synchronous>, transform_indices = @transform_1, window_bounds = array<i64: 3, 3, 4, 128>}, {transform_indices = @transform_2, window_bounds = array<i64: 1, 1, 256, 128>}, {transform_indices = @transform_3, window_bounds = array<i64: 1, 1, 1, 128>}, {transform_indices = @transform_4, window_bounds = array<i64: 1, 1, 1, 128>}]} {
    %cst = arith.constant 0.000000e+00 : f32
    %0 = vector.broadcast %cst : f32 to vector<256x128xf32>
    %c0 = arith.constant 0 : index
    %c0_0 = arith.constant 0 : index
    %c0_1 = arith.constant 0 : index
    %c0_2 = arith.constant 0 : index
    %c0_3 = arith.constant 0 : index
    %1 = vector.load %arg2[%c0, %c0_0, %c0_1, %c0_2, %c0_3] : memref<1x1x18x18x4xbf16, #tpu.memory_space<vmem>>, vector<1x1x16x16x4xbf16>
    %2 = vector.shape_cast %1 : vector<1x1x16x16x4xbf16> to vector<16x16x4xbf16>
    %3 = vector.shape_cast %2 : vector<16x16x4xbf16> to vector<256x4xbf16>
    %c0_4 = arith.constant 0 : index
    %c0_5 = arith.constant 0 : index
    %c0_6 = arith.constant 0 : index
    %c0_7 = arith.constant 0 : index
    %4 = vector.load %arg3[%c0_4, %c0_5, %c0_6, %c0_7] : memref<3x3x4x128xbf16, #tpu.memory_space<vmem>>, vector<1x1x4x128xbf16>
    %5 = vector.shape_cast %4 : vector<1x1x4x128xbf16> to vector<4x128xbf16>
    %cst_8 = arith.constant dense<0.000000e+00> : vector<256x128xf32>
    %6 = tpu.matmul %3, %5, %cst_8 {dimension_numbers = #tpu.dot_dimension_numbers<[1], [0], [0], [1], [0, 0, 1, 1], [], []>} : vector<256x4xbf16>, vector<4x128xbf16>, vector<256x128xf32> -> vector<256x128xf32>
    %7 = arith.addf %0, %6 : vector<256x128xf32>
    %c0_9 = arith.constant 0 : index
    %c0_10 = arith.constant 0 : index
    %c0_11 = arith.constant 0 : index
    %c1 = arith.constant 1 : index
    %c0_12 = arith.constant 0 : index
    %8 = vector.load %arg2[%c0_9, %c0_10, %c0_11, %c1, %c0_12] : memref<1x1x18x18x4xbf16, #tpu.memory_space<vmem>>, vector<1x1x16x16x4xbf16>
    %9 = vector.shape_cast %8 : vector<1x1x16x16x4xbf16> to vector<16x16x4xbf16>
    %10 = vector.shape_cast %9 : vector<16x16x4xbf16> to vector<256x4xbf16>
    %c0_13 = arith.constant 0 : index
    %c1_14 = arith.constant 1 : index
    %c0_15 = arith.constant 0 : index
    %c0_16 = arith.constant 0 : index
    %11 = vector.load %arg3[%c0_13, %c1_14, %c0_15, %c0_16] : memref<3x3x4x128xbf16, #tpu.memory_space<vmem>>, vector<1x1x4x128xbf16>
    %12 = vector.shape_cast %11 : vector<1x1x4x128xbf16> to vector<4x128xbf16>
    %cst_17 = arith.constant dense<0.000000e+00> : vector<256x128xf32>
    %13 = tpu.matmul %10, %12, %cst_17 {dimension_numbers = #tpu.dot_dimension_numbers<[1], [0], [0], [1], [0, 0, 1, 1], [], []>} : vector<256x4xbf16>, vector<4x128xbf16>, vector<256x128xf32> -> vector<256x128xf32>
    %14 = arith.addf %7, %13 : vector<256x128xf32>
    %c0_18 = arith.constant 0 : index
    %c0_19 = arith.constant 0 : index
    %c0_20 = arith.constant 0 : index
    %c2 = arith.constant 2 : index
    %c0_21 = arith.constant 0 : index
    %15 = vector.load %arg2[%c0_18, %c0_19, %c0_20, %c2, %c0_21] : memref<1x1x18x18x4xbf16, #tpu.memory_space<vmem>>, vector<1x1x16x16x4xbf16>
    %16 = vector.shape_cast %15 : vector<1x1x16x16x4xbf16> to vector<16x16x4xbf16>
    %17 = vector.shape_cast %16 : vector<16x16x4xbf16> to vector<256x4xbf16>
    %c0_22 = arith.constant 0 : index
    %c2_23 = arith.constant 2 : index
    %c0_24 = arith.constant 0 : index
    %c0_25 = arith.constant 0 : index
    %18 = vector.load %arg3[%c0_22, %c2_23, %c0_24, %c0_25] : memref<3x3x4x128xbf16, #tpu.memory_space<vmem>>, vector<1x1x4x128xbf16>
    %19 = vector.shape_cast %18 : vector<1x1x4x128xbf16> to vector<4x128xbf16>
    %cst_26 = arith.constant dense<0.000000e+00> : vector<256x128xf32>
    %20 = tpu.matmul %17, %19, %cst_26 {dimension_numbers = #tpu.dot_dimension_numbers<[1], [0], [0], [1], [0, 0, 1, 1], [], []>} : vector<256x4xbf16>, vector<4x128xbf16>, vector<256x128xf32> -> vector<256x128xf32>
    %21 = arith.addf %14, %20 : vector<256x128xf32>
    %c0_27 = arith.constant 0 : index
    %c0_28 = arith.constant 0 : index
    %c1_29 = arith.constant 1 : index
    %c0_30 = arith.constant 0 : index
    %c0_31 = arith.constant 0 : index
    %22 = vector.load %arg2[%c0_27, %c0_28, %c1_29, %c0_30, %c0_31] : memref<1x1x18x18x4xbf16, #tpu.memory_space<vmem>>, vector<1x1x16x16x4xbf16>
    %23 = vector.shape_cast %22 : vector<1x1x16x16x4xbf16> to vector<16x16x4xbf16>
    %24 = vector.shape_cast %23 : vector<16x16x4xbf16> to vector<256x4xbf16>
    %c1_32 = arith.constant 1 : index
    %c0_33 = arith.constant 0 : index
    %c0_34 = arith.constant 0 : index
    %c0_35 = arith.constant 0 : index
    %25 = vector.load %arg3[%c1_32, %c0_33, %c0_34, %c0_35] : memref<3x3x4x128xbf16, #tpu.memory_space<vmem>>, vector<1x1x4x128xbf16>
    %26 = vector.shape_cast %25 : vector<1x1x4x128xbf16> to vector<4x128xbf16>
    %cst_36 = arith.constant dense<0.000000e+00> : vector<256x128xf32>
    %27 = tpu.matmul %24, %26, %cst_36 {dimension_numbers = #tpu.dot_dimension_numbers<[1], [0], [0], [1], [0, 0, 1, 1], [], []>} : vector<256x4xbf16>, vector<4x128xbf16>, vector<256x128xf32> -> vector<256x128xf32>
    %28 = arith.addf %21, %27 : vector<256x128xf32>
    %c0_37 = arith.constant 0 : index
    %c0_38 = arith.constant 0 : index
    %c1_39 = arith.constant 1 : index
    %c1_40 = arith.constant 1 : index
    %c0_41 = arith.constant 0 : index
    %29 = vector.load %arg2[%c0_37, %c0_38, %c1_39, %c1_40, %c0_41] : memref<1x1x18x18x4xbf16, #tpu.memory_space<vmem>>, vector<1x1x16x16x4xbf16>
    %30 = vector.shape_cast %29 : vector<1x1x16x16x4xbf16> to vector<16x16x4xbf16>
    %31 = vector.shape_cast %30 : vector<16x16x4xbf16> to vector<256x4xbf16>
    %c1_42 = arith.constant 1 : index
    %c1_43 = arith.constant 1 : index
    %c0_44 = arith.constant 0 : index
    %c0_45 = arith.constant 0 : index
    %32 = vector.load %arg3[%c1_42, %c1_43, %c0_44, %c0_45] : memref<3x3x4x128xbf16, #tpu.memory_space<vmem>>, vector<1x1x4x128xbf16>
    %33 = vector.shape_cast %32 : vector<1x1x4x128xbf16> to vector<4x128xbf16>
    %cst_46 = arith.constant dense<0.000000e+00> : vector<256x128xf32>
    %34 = tpu.matmul %31, %33, %cst_46 {dimension_numbers = #tpu.dot_dimension_numbers<[1], [0], [0], [1], [0, 0, 1, 1], [], []>} : vector<256x4xbf16>, vector<4x128xbf16>, vector<256x128xf32> -> vector<256x128xf32>
    %35 = arith.addf %28, %34 : vector<256x128xf32>
    %c0_47 = arith.constant 0 : index
    %c0_48 = arith.constant 0 : index
    %c1_49 = arith.constant 1 : index
    %c2_50 = arith.constant 2 : index
    %c0_51 = arith.constant 0 : index
    %36 = vector.load %arg2[%c0_47, %c0_48, %c1_49, %c2_50, %c0_51] : memref<1x1x18x18x4xbf16, #tpu.memory_space<vmem>>, vector<1x1x16x16x4xbf16>
    %37 = vector.shape_cast %36 : vector<1x1x16x16x4xbf16> to vector<16x16x4xbf16>
    %38 = vector.shape_cast %37 : vector<16x16x4xbf16> to vector<256x4xbf16>
    %c1_52 = arith.constant 1 : index
    %c2_53 = arith.constant 2 : index
    %c0_54 = arith.constant 0 : index
    %c0_55 = arith.constant 0 : index
    %39 = vector.load %arg3[%c1_52, %c2_53, %c0_54, %c0_55] : memref<3x3x4x128xbf16, #tpu.memory_space<vmem>>, vector<1x1x4x128xbf16>
    %40 = vector.shape_cast %39 : vector<1x1x4x128xbf16> to vector<4x128xbf16>
    %cst_56 = arith.constant dense<0.000000e+00> : vector<256x128xf32>
    %41 = tpu.matmul %38, %40, %cst_56 {dimension_numbers = #tpu.dot_dimension_numbers<[1], [0], [0], [1], [0, 0, 1, 1], [], []>} : vector<256x4xbf16>, vector<4x128xbf16>, vector<256x128xf32> -> vector<256x128xf32>
    %42 = arith.addf %35, %41 : vector<256x128xf32>
    %c0_57 = arith.constant 0 : index
    %c0_58 = arith.constant 0 : index
    %c2_59 = arith.constant 2 : index
    %c0_60 = arith.constant 0 : index
    %c0_61 = arith.constant 0 : index
    %43 = vector.load %arg2[%c0_57, %c0_58, %c2_59, %c0_60, %c0_61] : memref<1x1x18x18x4xbf16, #tpu.memory_space<vmem>>, vector<1x1x16x16x4xbf16>
    %44 = vector.shape_cast %43 : vector<1x1x16x16x4xbf16> to vector<16x16x4xbf16>
    %45 = vector.shape_cast %44 : vector<16x16x4xbf16> to vector<256x4xbf16>
    %c2_62 = arith.constant 2 : index
    %c0_63 = arith.constant 0 : index
    %c0_64 = arith.constant 0 : index
    %c0_65 = arith.constant 0 : index
    %46 = vector.load %arg3[%c2_62, %c0_63, %c0_64, %c0_65] : memref<3x3x4x128xbf16, #tpu.memory_space<vmem>>, vector<1x1x4x128xbf16>
    %47 = vector.shape_cast %46 : vector<1x1x4x128xbf16> to vector<4x128xbf16>
    %cst_66 = arith.constant dense<0.000000e+00> : vector<256x128xf32>
    %48 = tpu.matmul %45, %47, %cst_66 {dimension_numbers = #tpu.dot_dimension_numbers<[1], [0], [0], [1], [0, 0, 1, 1], [], []>} : vector<256x4xbf16>, vector<4x128xbf16>, vector<256x128xf32> -> vector<256x128xf32>
    %49 = arith.addf %42, %48 : vector<256x128xf32>
    %c0_67 = arith.constant 0 : index
    %c0_68 = arith.constant 0 : index
    %c2_69 = arith.constant 2 : index
    %c1_70 = arith.constant 1 : index
    %c0_71 = arith.constant 0 : index
    %50 = vector.load %arg2[%c0_67, %c0_68, %c2_69, %c1_70, %c0_71] : memref<1x1x18x18x4xbf16, #tpu.memory_space<vmem>>, vector<1x1x16x16x4xbf16>
    %51 = vector.shape_cast %50 : vector<1x1x16x16x4xbf16> to vector<16x16x4xbf16>
    %52 = vector.shape_cast %51 : vector<16x16x4xbf16> to vector<256x4xbf16>
    %c2_72 = arith.constant 2 : index
    %c1_73 = arith.constant 1 : index
    %c0_74 = arith.constant 0 : index
    %c0_75 = arith.constant 0 : index
    %53 = vector.load %arg3[%c2_72, %c1_73, %c0_74, %c0_75] : memref<3x3x4x128xbf16, #tpu.memory_space<vmem>>, vector<1x1x4x128xbf16>
    %54 = vector.shape_cast %53 : vector<1x1x4x128xbf16> to vector<4x128xbf16>
    %cst_76 = arith.constant dense<0.000000e+00> : vector<256x128xf32>
    %55 = tpu.matmul %52, %54, %cst_76 {dimension_numbers = #tpu.dot_dimension_numbers<[1], [0], [0], [1], [0, 0, 1, 1], [], []>} : vector<256x4xbf16>, vector<4x128xbf16>, vector<256x128xf32> -> vector<256x128xf32>
    %56 = arith.addf %49, %55 : vector<256x128xf32>
    %c0_77 = arith.constant 0 : index
    %c0_78 = arith.constant 0 : index
    %c2_79 = arith.constant 2 : index
    %c2_80 = arith.constant 2 : index
    %c0_81 = arith.constant 0 : index
    %57 = vector.load %arg2[%c0_77, %c0_78, %c2_79, %c2_80, %c0_81] : memref<1x1x18x18x4xbf16, #tpu.memory_space<vmem>>, vector<1x1x16x16x4xbf16>
    %58 = vector.shape_cast %57 : vector<1x1x16x16x4xbf16> to vector<16x16x4xbf16>
    %59 = vector.shape_cast %58 : vector<16x16x4xbf16> to vector<256x4xbf16>
    %c2_82 = arith.constant 2 : index
    %c2_83 = arith.constant 2 : index
    %c0_84 = arith.constant 0 : index
    %c0_85 = arith.constant 0 : index
    %60 = vector.load %arg3[%c2_82, %c2_83, %c0_84, %c0_85] : memref<3x3x4x128xbf16, #tpu.memory_space<vmem>>, vector<1x1x4x128xbf16>
    %61 = vector.shape_cast %60 : vector<1x1x4x128xbf16> to vector<4x128xbf16>
    %cst_86 = arith.constant dense<0.000000e+00> : vector<256x128xf32>
    %62 = tpu.matmul %59, %61, %cst_86 {dimension_numbers = #tpu.dot_dimension_numbers<[1], [0], [0], [1], [0, 0, 1, 1], [], []>} : vector<256x4xbf16>, vector<4x128xbf16>, vector<256x128xf32> -> vector<256x128xf32>
    %63 = arith.addf %56, %62 : vector<256x128xf32>
    %c0_87 = arith.constant 0 : index
    %c0_88 = arith.constant 0 : index
    %c0_89 = arith.constant 0 : index
    %c0_90 = arith.constant 0 : index
    %64 = vector.load %arg4[%c0_87, %c0_88, %c0_89, %c0_90] : memref<1x1x256x128xf32, #tpu.memory_space<vmem>>, vector<1x1x256x128xf32>
    %65 = vector.shape_cast %64 : vector<1x1x256x128xf32> to vector<256x128xf32>
    %66 = vector.shape_cast %63 : vector<256x128xf32> to vector<1x1x256x128xf32>
    tpu.vector_store %arg4[%c0_87, %c0_88, %c0_89, %c0_90], %66 {strides = array<i32>} : memref<1x1x256x128xf32, #tpu.memory_space<vmem>>, vector<1x1x256x128xf32>,
    %cst_91 = arith.constant dense<0.000000e+00> : vector<128xf32>
    %67 = vector.multi_reduction <add>, %63, %cst_91 [0] : vector<256x128xf32> to vector<128xf32>
    %68 = vector.shape_cast %67 : vector<128xf32> to vector<1x128xf32>
    %c0_92 = arith.constant 0 : index
    %c0_93 = arith.constant 0 : index
    %c0_94 = arith.constant 0 : index
    %c0_95 = arith.constant 0 : index
    %69 = vector.load %arg5[%c0_92, %c0_93, %c0_94, %c0_95] : memref<1x1x1x128xf32, #tpu.memory_space<vmem>>, vector<1x1x1x128xf32>
    %70 = vector.shape_cast %69 : vector<1x1x1x128xf32> to vector<1x128xf32>
    %71 = vector.shape_cast %68 : vector<1x128xf32> to vector<1x1x1x128xf32>
    tpu.vector_store %arg5[%c0_92, %c0_93, %c0_94, %c0_95], %71 {strides = array<i32>} : memref<1x1x1x128xf32, #tpu.memory_space<vmem>>, vector<1x1x1x128xf32>,
    %72 = arith.mulf %63, %63 : vector<256x128xf32>
    %cst_96 = arith.constant dense<0.000000e+00> : vector<128xf32>
    %73 = vector.multi_reduction <add>, %72, %cst_96 [0] : vector<256x128xf32> to vector<128xf32>
    %74 = vector.shape_cast %73 : vector<128xf32> to vector<1x128xf32>
    %c0_97 = arith.constant 0 : index
    %c0_98 = arith.constant 0 : index
    %c0_99 = arith.constant 0 : index
    %c0_100 = arith.constant 0 : index
    %75 = vector.load %arg6[%c0_97, %c0_98, %c0_99, %c0_100] : memref<1x1x1x128xf32, #tpu.memory_space<vmem>>, vector<1x1x1x128xf32>
    %76 = vector.shape_cast %75 : vector<1x1x1x128xf32> to vector<1x128xf32>
    %77 = vector.shape_cast %74 : vector<1x128xf32> to vector<1x1x1x128xf32>
    tpu.vector_store %arg6[%c0_97, %c0_98, %c0_99, %c0_100], %77 {strides = array<i32>} : memref<1x1x1x128xf32, #tpu.memory_space<vmem>>, vector<1x1x1x128xf32>,
    return
  }
  func.func @transform_0(%arg0: i32, %arg1: i32) -> (i32, i32, i32, i32, i32) {
    %c0_i32 = arith.constant 0 : i32
    %c0_i32_0 = arith.constant 0 : i32
    %c0_i32_1 = arith.constant 0 : i32
    %c0_i32_2 = arith.constant 0 : i32
    return %arg0, %arg1, %c0_i32, %c0_i32_0, %c0_i32_1 : i32, i32, i32, i32, i32
  }
  func.func @transform_1(%arg0: i32, %arg1: i32) -> (i32, i32, i32, i32) {
    %c0_i32 = arith.constant 0 : i32
    %c0_i32_0 = arith.constant 0 : i32
    %c0_i32_1 = arith.constant 0 : i32
    %c0_i32_2 = arith.constant 0 : i32
    %c0_i32_3 = arith.constant 0 : i32
    return %c0_i32, %c0_i32_0, %c0_i32_1, %c0_i32_2 : i32, i32, i32, i32
  }
  func.func @transform_2(%arg0: i32, %arg1: i32) -> (i32, i32, i32, i32) {
    %c0_i32 = arith.constant 0 : i32
    %c0_i32_0 = arith.constant 0 : i32
    %c0_i32_1 = arith.constant 0 : i32
    return %arg0, %arg1, %c0_i32, %c0_i32_0 : i32, i32, i32, i32
  }
  func.func @transform_3(%arg0: i32, %arg1: i32) -> (i32, i32, i32, i32) {
    %c0_i32 = arith.constant 0 : i32
    %c0_i32_0 = arith.constant 0 : i32
    %c0_i32_1 = arith.constant 0 : i32
    return %arg0, %arg1, %c0_i32, %c0_i32_0 : i32, i32, i32, i32
  }
  func.func @transform_4(%arg0: i32, %arg1: i32) -> (i32, i32, i32, i32) {
    %c0_i32 = arith.constant 0 : i32
    %c0_i32_0 = arith.constant 0 : i32
    %c0_i32_1 = arith.constant 0 : i32
    return %arg0, %arg1, %c0_i32, %c0_i32_0 : i32, i32, i32, i32
  }
}

module attributes {stable_mosaic.version = 11 : i64} {
  func.func @_bn_lrelu_kernel(%arg0: i32, %arg1: i32, %arg2: memref<1x1x256x128xf32, #tpu.memory_space<vmem>>, %arg3: memref<1x128xf32, #tpu.memory_space<vmem>>, %arg4: memref<1x128xf32, #tpu.memory_space<vmem>>, %arg5: memref<1x1x256x128xf32, #tpu.memory_space<vmem>>) attributes {dimension_semantics = [#tpu.dimension_semantics<parallel>, #tpu.dimension_semantics<parallel>], iteration_bounds = array<i64: 2, 1>, scalar_prefetch = 0 : i64, scratch_operands = 0 : i64, tpu.core_type = #tpu.core_type<tc>, window_params = [{transform_indices = @transform_0, window_bounds = array<i64: 1, 1, 256, 128>}, {pipeline_mode = #tpu.pipeline_mode<synchronous>, transform_indices = @transform_1, window_bounds = array<i64: 1, 128>}, {pipeline_mode = #tpu.pipeline_mode<synchronous>, transform_indices = @transform_2, window_bounds = array<i64: 1, 128>}, {transform_indices = @transform_3, window_bounds = array<i64: 1, 1, 256, 128>}]} {
    %c0 = arith.constant 0 : index
    %c0_0 = arith.constant 0 : index
    %c0_1 = arith.constant 0 : index
    %c0_2 = arith.constant 0 : index
    %0 = vector.load %arg2[%c0, %c0_0, %c0_1, %c0_2] : memref<1x1x256x128xf32, #tpu.memory_space<vmem>>, vector<1x1x256x128xf32>
    %1 = vector.shape_cast %0 : vector<1x1x256x128xf32> to vector<256x128xf32>
    %c0_3 = arith.constant 0 : index
    %c0_4 = arith.constant 0 : index
    %2 = vector.load %arg3[%c0_3, %c0_4] : memref<1x128xf32, #tpu.memory_space<vmem>>, vector<1x128xf32>
    %3 = vector.broadcast %2 : vector<1x128xf32> to vector<256x128xf32>
    %4 = arith.mulf %1, %3 : vector<256x128xf32>
    %c0_5 = arith.constant 0 : index
    %c0_6 = arith.constant 0 : index
    %5 = vector.load %arg4[%c0_5, %c0_6] : memref<1x128xf32, #tpu.memory_space<vmem>>, vector<1x128xf32>
    %6 = vector.broadcast %5 : vector<1x128xf32> to vector<256x128xf32>
    %7 = arith.addf %4, %6 : vector<256x128xf32>
    %cst = arith.constant 0.000000e+00 : f32
    %8 = vector.broadcast %cst : f32 to vector<256x128xf32>
    %9 = arith.cmpf ogt, %7, %8 : vector<256x128xf32>
    %cst_7 = arith.constant 0.00999999977 : f32
    %10 = vector.broadcast %cst_7 : f32 to vector<256x128xf32>
    %11 = arith.mulf %10, %7 : vector<256x128xf32>
    %12 = arith.select %9, %7, %11 : vector<256x128xi1>, vector<256x128xf32>
    %c0_8 = arith.constant 0 : index
    %c0_9 = arith.constant 0 : index
    %c0_10 = arith.constant 0 : index
    %c0_11 = arith.constant 0 : index
    %13 = vector.load %arg5[%c0_8, %c0_9, %c0_10, %c0_11] : memref<1x1x256x128xf32, #tpu.memory_space<vmem>>, vector<1x1x256x128xf32>
    %14 = vector.shape_cast %13 : vector<1x1x256x128xf32> to vector<256x128xf32>
    %15 = vector.shape_cast %12 : vector<256x128xf32> to vector<1x1x256x128xf32>
    tpu.vector_store %arg5[%c0_8, %c0_9, %c0_10, %c0_11], %15 {strides = array<i32>} : memref<1x1x256x128xf32, #tpu.memory_space<vmem>>, vector<1x1x256x128xf32>,
    return
  }
  func.func @transform_0(%arg0: i32, %arg1: i32) -> (i32, i32, i32, i32) {
    %c0_i32 = arith.constant 0 : i32
    %c0_i32_0 = arith.constant 0 : i32
    %c0_i32_1 = arith.constant 0 : i32
    return %arg0, %arg1, %c0_i32, %c0_i32_0 : i32, i32, i32, i32
  }
  func.func @transform_1(%arg0: i32, %arg1: i32) -> (i32, i32) {
    %c0_i32 = arith.constant 0 : i32
    %c0_i32_0 = arith.constant 0 : i32
    %c0_i32_1 = arith.constant 0 : i32
    return %c0_i32, %c0_i32_0 : i32, i32
  }
  func.func @transform_2(%arg0: i32, %arg1: i32) -> (i32, i32) {
    %c0_i32 = arith.constant 0 : i32
    %c0_i32_0 = arith.constant 0 : i32
    %c0_i32_1 = arith.constant 0 : i32
    return %c0_i32, %c0_i32_0 : i32, i32
  }
  func.func @transform_3(%arg0: i32, %arg1: i32) -> (i32, i32, i32, i32) {
    %c0_i32 = arith.constant 0 : i32
    %c0_i32_0 = arith.constant 0 : i32
    %c0_i32_1 = arith.constant 0 : i32
    return %arg0, %arg1, %c0_i32, %c0_i32_0 : i32, i32, i32, i32
  }
}

</mosaic_0001>

<bundles_post_ra>
// kernel: cbl_forward.3
= control target key start
LH: loop header
LB: loop body
LE: loop exit
PB: predicated region body
PF: predicated region fallthrough
CT: control target
= control target key end

     0   :  { %8 = vsyncpa [#allocation3], 0  ;;  %s1297_s0 = inlined_call_operand.hbm [shape: f32[2,1,256,128], index: 0, kind: input, shape index: {}]   ;;  %s1298_s1 = inlined_call_operand.hbm [shape: f32[1,128], index: 1, kind: input, shape index: {}]   ;;  %s1299_s2 = inlined_call_operand.hbm [shape: f32[1,128], index: 2, kind: input, shape index: {}]   ;;  %s1300_s3 = inlined_call_operand.hbm [shape: f32[2,1,256,128], index: 3, kind: output, shape index: {}]  }
   0x1   :  { %10 = vsyncpa [#allocation3 + $0x1], 0 }
   0x2   :  { %11 = vsyncpa [#allocation6], 0 }
   0x3   :  { %12 = vsyncpa [#allocation4], 0 }
   0x4   :  { %14 = vsyncpa [#allocation4 + $0x1], 0  ;;  %s904_s12 = smov 0   ;;  %s906_s13 = smov 0  }
   0x5   :  { %s908_s14 = smov 0   ;;  %s910_s15 = smov 0  }
   0x6   :  { %s912_s16 = smov 0   ;;  %s914_s17 = smov 0  }
   0x7 LB: > { %s592_s18 = sadd.s32 4294967295, %s874_s17   ;;  %s593_s19 = sadd.s32 4294967294, %s874_s17   ;;  %s874_s17 = sphi %s914_s17, %s20_s17   ;;  %s870_s16 = sphi %s912_s16, %s1326_s16   ;;  %s866_s15 = sphi %s910_s15, %s1325_s15   ;;  %s862_s14 = sphi %s908_s14, %s1324_s14   ;;  %s858_s13 = sphi %s906_s13, %s1323_s13   ;;  %s854_s12 = sphi %s904_s12, %s1322_s12  }
   0x8   : > { %s41_s20 = sadd.s32 1, %s862_s14  ;;  %p48_p0 = scmp.ne.s32.totalorder %s862_s14, %s858_s13 }
   0x9   : > { %p49_p1 = scmp.eq.s32.totalorder %s874_s17, 0  ;;  %p54_p2 = scmp.ne.s32.totalorder %s858_s13, %s854_s12 }
   0xa   : > { %p942_p3 = scmp.eq.s32.totalorder %s592_s18, 0  ;;  %p122_p4 = scmp.eq.s32.totalorder %s592_s18, 1 }
   0xb   : > { %p946_p5 = por %p49_p1, %p48_p0  ;;  %p128_p6 = scmp.eq.s32.totalorder %s593_s19, 1 }
   0xc   : > { %s1307_s21 = scalar_select %p942_p3, 1, 0 }
   0xd   : > { %p952_p7 = por %p942_p3, %p54_p2  ;;  %p956_p8 = por %p122_p4, %p48_p0 }
   0xe   : > { %p960_p9 = por %p128_p6, %p54_p2  ;;  %p594_p10 = scmp.ge.s32.totalorder %s874_s17, 1 }
   0xf   : > { %s1309_s23 = scalar_select %p952_p7, 1, 0 }
  0x10   : > { %s1310_s24 = scalar_select %p956_p8, 1, 0 }
  0x11   : > { %s1311_s25 = scalar_select %p960_p9, 1, 0 }
  0x12   : > { %p135_p11 = scmp.lt.s32.totalorder %s874_s17, 3  ;;  %s876_s27 = smov [#allocation5]  }
  0x13   : > { %s148_s28 = sshll.u32 %s876_s27, 4  ;;  %p644_p1 = scmp.lt.s32.totalorder %s874_s17, 2  ;;  %s149_s28 = int_to_ptr.vmem [resolvable:$true] %s148_s28 }
  0x14   : > { %p967_p13 = pnand %p594_p10, %p135_p11  ;;  %s877_s30 = smov [#allocation7]  }
  0x15   : > { %p976_p4 = pnand %p644_p1, %p946_p5  ;;  %s159_s4 = sshll.u32 %s877_s30, 4  ;;  %s986_s4 = int_to_ptr.vmem [resolvable:$true] %s159_s4 }
  0x16   : > { %s1312_s26 = scalar_select %p967_p13, 1, 0 }
  0x17   : > { %p627_p0 = pneg %p967_p13  ;;  %s702_s8 = scalar_lea.hbm %s1298_s1, 16 }
  0x18   : > { %s1313_s29 = scalar_select %p976_p4, 1, 0 }
  0x19   : > { %p982_p2 = pnand %p627_p0, %p942_p3  ;;  %p703_p5 = scmp.ne.s32.totalorder %s1298_s1, %s702_s8 }
  0x1a   : > { %p709_p1 = scmp.lt.u32.totalorder %s702_s8, %s1298_s1 }
  0x1b   : > { %p704_p6 = pneg %p982_p2 }
  0x1d   : > { %p705_p10 = pnand %p704_p6, %p703_p5 }
  0x1f   : > { %p706_p11 = pneg %p705_p10 }
  0x21   : > { %p711_p0 = pnand %p709_p1, %p706_p11 }
  0x23   : > { %714 = shalt.err (!%p711_p0)
}
  0x24   : > { %s715_s19 = scalar_lea.vmem %s149_s28, 16  ;;  %s722_s22 = scalar_lea.vmem %s149_s28, 32 }
  0x25   : > { %p716_p12 = scmp.ne.s32.totalorder %s149_s28, %s715_s19  ;;  %p723_p3 = scmp.lt.s32.totalorder %s149_s28, %s149_s28 }
  0x26   : > { %p724_p7 = scmp.lt.s32.totalorder %s722_s22, %s715_s19 }
  0x27   : > { %p718_p9 = pnand %p716_p12, %p704_p6 }
  0x28   : > { %p725_p13 = por %p724_p7, %p723_p3 }
  0x29   : > { %p719_p8 = pneg %p718_p9 }
  0x2b   : > { %p726_p4 = pnand %p725_p13, %p719_p8 }
  0x2d   : > { %729 = shalt.err (!%p726_p4)
}
  0x2e   : > { %630 = dma.hbm_to_vmem [thread:$0]  (!%p982_p2), %s1298_s1, 16, %s149_s28, [#allocation6]  }
  0x2f   : > { %s730_s8 = scalar_lea.hbm %s1299_s2, 16 }
  0x30   : > { %p731_p9 = scmp.ne.s32.totalorder %s1299_s2, %s730_s8  ;;  %p737_p8 = scmp.lt.u32.totalorder %s730_s8, %s1299_s2 }
  0x32   : > { %p733_p3 = pnand %p731_p9, %p704_p6 }
  0x34   : > { %p734_p7 = pneg %p733_p3 }
  0x36   : > { %p739_p12 = pnand %p737_p8, %p734_p7 }
  0x38   : > { %742 = shalt.err (!%p739_p12)
}
  0x39   : > { %s743_s28 = scalar_lea.vmem %s986_s4, 16  ;;  %s750_s19 = scalar_lea.vmem %s986_s4, 32 }
  0x3a   : > { %p744_p13 = scmp.ne.s32.totalorder %s986_s4, %s743_s28  ;;  %p751_p10 = scmp.lt.s32.totalorder %s986_s4, %s986_s4 }
  0x3b   : > { %p752_p11 = scmp.lt.s32.totalorder %s750_s19, %s743_s28 }
  0x3c   : > { %p746_p4 = pnand %p744_p13, %p704_p6 }
  0x3d   : > { %p753_p1 = por %p752_p11, %p751_p10 }
  0x3e   : > { %p747_p5 = pneg %p746_p4 }
  0x40   : > { %p754_p0 = pnand %p753_p1, %p747_p5 }
  0x42   : > { %757 = shalt.err (!%p754_p0)
}
  0x43   : > { %633 = dma.hbm_to_vmem [thread:$0]  (!%p982_p2), %s1299_s2, 16, %s986_s4, [#allocation6]  }
  0x44   : > { %s32_s30 = sadd.s32 1, %s870_s16  ;;  %s170_s6 = sand.u32 1, %s862_s14  }
  0x45   : > { %p34_p6 = scmp.ge.s32.totalorder %s32_s30, 2  ;;  %s598_s7 = sshll.u32 %s170_s6, 8 }
  0x46   : > { %s613_s8 = sshll.u32 %s870_s16, 12  ;;  %s174_s4 = scalar_lea.vmem [#allocation2], %s598_s7 }
  0x47   : > { %s1328_s30 = smov (%p34_p6, %s32_s30), 0  ;;  %s1044_s10 = scalar_lea.hbm %s1297_s0, %s613_s8 }
  0x48   : > { %s36_s11 = ssub.s32 %s870_s16, %s1328_s30  ;;  %s183_s18 = sshll.u32 %s174_s4, 4  ;;  %s1048_s18 = int_to_ptr.vmem [resolvable:$true] %s183_s18 }
  0x49   : > { %p39_p2 = scmp.eq.s32.totalorder %s36_s11, 0  ;;  %s1055_s19 = scalar_lea.sflag [#allocation3], %s170_s6 }
  0x4a   : > { %s758_s22 = scalar_lea.hbm %s1044_s10, 4096  ;;  %p1315_p3 = scmp.ne.s32.totalorder %s1313_s29, 0 }
  0x4b   : > { %s1053_s28 = scalar_select %p39_p2, %s862_s14, %s41_s20  }
  0x4c   : > { %p759_p9 = scmp.ne.s32.totalorder %s1044_s10, %s758_s22  ;;  %p760_p7 = pneg %p1315_p3 }
  0x4d   : > { %s763_s7 = scalar_lea.hbm %s1297_s0, 8192  ;;  %p764_p13 = scmp.lt.u32.totalorder %s1044_s10, %s1297_s0 }
  0x4e   : > { %p761_p8 = pnand %p760_p7, %p759_p9  ;;  %p765_p4 = scmp.lt.u32.totalorder %s763_s7, %s758_s22 }
  0x4f   : > { %p767_p10 = scmp.lt.u32.totalorder %s758_s22, %s1044_s10 }
  0x50   : > { %p762_p12 = pneg %p761_p8  ;;  %p766_p5 = por %p765_p4, %p764_p13 }
  0x52   : > { %p768_p11 = por %p767_p10, %p766_p5 }
  0x54   : > { %p769_p1 = pnand %p768_p11, %p762_p12 }
  0x56   : > { %772 = shalt.err (!%p769_p1)
}
  0x57   : > { %s773_s20 = scalar_lea.vmem %s1048_s18, 4096  ;;  %s878_s6 = smov [#allocation2]  }
  0x58   : > { %p774_p0 = scmp.ne.s32.totalorder %s1048_s18, %s773_s20  ;;  %s778_s11 = sshll.u32 %s878_s6, 4  ;;  %s779_s11 = int_to_ptr.vmem [resolvable:$false] %s778_s11 }
  0x59   : > { %s780_s4 = scalar_lea.vmem %s779_s11, 8192  ;;  %p781_p9 = scmp.lt.s32.totalorder %s1048_s18, %s779_s11 }
  0x5a   : > { %p776_p6 = pnand %p774_p0, %p760_p7  ;;  %p782_p8 = scmp.lt.s32.totalorder %s780_s4, %s773_s20 }
  0x5c   : > { %p777_p2 = pneg %p776_p6  ;;  %p783_p13 = por %p782_p8, %p781_p9 }
  0x5e   : > { %p784_p4 = pnand %p783_p13, %p777_p2 }
  0x60   : > { %787 = shalt.err (!%p784_p4)
}
  0x61   : > { %s879_s22 = smov 128   ;;  %s880_s27 = smov 8  }
  0x62   : > { %637 = dma.hbm_to_vmem [thread:$0]  (!%p1315_p3), %s1044_s10, 4096, %s1048_s18, %s1055_s19, %s879_s22, %s879_s22, %s880_s27  }
  0x63   : > { %p1316_p7 = scmp.ne.s32.totalorder %s1312_s26, 0 }
  0x64   : > { %s1086_s8 = sand.u32 (!%p1316_p7), 1, %s858_s13   ;;  %p1317_p12 = scmp.ne.s32.totalorder (!%p1316_p7), %s1309_s23, 0 }
  0x65   : > { %195 = sbr.rel (%p1316_p7) target bundleno = 173 (0xad), region = 32  ;;  %s602_s7 = sshll.u32 (!%p1316_p7), %s1086_s8, 8 }
  0x66   : > { %s198_s5 = scalar_lea.sflag (!%p1316_p7), [#allocation3], %s1086_s8  ;;  %s1092_s9 = scalar_lea.vmem (!%p1316_p7), [#allocation2], %s602_s7 }
  0x6c   : > { %841 = dma.done.wait (%p1317_p12), %s198_s5, 4096  }
  0x6d   : > { %843 = vsyncadd (%p1317_p12), %s198_s5, 4294963200  ;;  %p1318_p3 = scmp.ne.s32.totalorder %s1307_s21, 0 }
  0x6f   : > { %845 = dma.done.wait (%p1318_p3), [#allocation6], 32  }
  0x70   : > { %847 = vsyncadd (%p1318_p3), [#allocation6], 4294967264  ;;  %v232_v0 = vld [vmem:[%s1092_s9] sm:$0xff]  ;;  %v233_v4 = vld [vmem:[%s1092_s9 + $0x8] sm:$0xff]  ;;  %s1133_s21 = scalar_lea.vmem [#allocation8], %s602_s7  ;;  %s614_s23 = sshll.u32 %s866_s15, 12 }
  0x71   : > { %v1103_v1 = vld [vmem:[#allocation5] ss:$0 sm:$0xff]  ;;  %v1105_v2 = vld [vmem:[#allocation7] ss:$0 sm:$0xff]  ;;  %v234_v5 = vld [vmem:[%s1092_s9 + $0x10] sm:$0xff]  ;;  %s486_s26 = sshll.u32 %s1133_s21, 4  ;;  %s1244_s18 = scalar_lea.hbm %s1300_s3, %s614_s23  ;;  %s1246_s26 = int_to_ptr.vmem [resolvable:$true] %s486_s26 }
  0x72   : > { %v271_v3 = vmul.f32 %v1103_v1, %v232_v0  ;;  %v235_v6 = vld [vmem:[%s1092_s9 + $0x18] sm:$0xff]  ;;  %v272_v7 = vmul.f32 %v1103_v1, %v233_v4  ;;  %v273_v8 = vmul.f32 %v1103_v1, %v234_v5  ;;  %v236_v10 = vld [vmem:[%s1092_s9 + $0x20] sm:$0xff]  ;;  %v237_v11 = vld [vmem:[%s1092_s9 + $0x28] sm:$0xff]  ;;  %s471_s15 = scalar_lea.sflag [#allocation4], %s1086_s8  ;;  %s788_s19 = scalar_lea.vmem %s1246_s26, 4096 }
  0x73   : > { %v274_v9 = vmul.f32 %v1103_v1, %v235_v6  ;;  %v238_v12 = vld [vmem:[%s1092_s9 + $0x30] sm:$0xff]  ;;  %v275_v14 = vmul.f32 %v1103_v1, %v236_v10  ;;  %v276_v15 = vmul.f32 %v1103_v1, %v237_v11  ;;  %v239_v17 = vld [vmem:[%s1092_s9 + $0x38] sm:$0xff]  ;;  %v240_v25 = vld [vmem:[%s1092_s9 + $0x40] sm:$0xff]  ;;  %p789_p5 = scmp.ne.s32.totalorder %s1246_s26, %s788_s19  ;;  %p1319_p10 = scmp.ne.s32.totalorder %s1310_s24, 0 }
  0x74   : > { %v310_v13 = vadd.f32 %v1105_v2, %v271_v3  ;;  %v277_v16 = vmul.f32 %v1103_v1, %v238_v12  ;;  %v311_v18 = vadd.f32 %v1105_v2, %v272_v7  ;;  %v312_v19 = vadd.f32 %v1105_v2, %v273_v8  ;;  %v241_v30 = vld [vmem:[%s1092_s9 + $0x48] sm:$0xff]  ;;  %v242_v31 = vld [vmem:[%s1092_s9 + $0x50] sm:$0xff]  ;;  %v243_v43 = vld [vmem:[%s1092_s9 + $0x58] sm:$0xff]  ;;  %s881_s20 = smov [#allocation8]  }
  0x75   : > { %v313_v20 = vadd.f32 %v1105_v2, %v274_v9  ;;  %v278_v21 = vmul.f32 %v1103_v1, %v239_v17  ;;  %v314_v23 = vadd.f32 %v1105_v2, %v275_v14  ;;  %v315_v24 = vadd.f32 %v1105_v2, %v276_v15  ;;  %v244_v44 = vld [vmem:[%s1092_s9 + $0x60] sm:$0xff]  ;;  %v245_v45 = vld [vmem:[%s1092_s9 + $0x68] sm:$0xff]  ;;  %v246_v56 = vld [vmem:[%s1092_s9 + $0x70] sm:$0xff]  ;;  %p790_p11 = pnand %p789_p5, %p1319_p10  ;;  %s792_s6 = sshll.u32 %s881_s20, 4  ;;  %s793_s6 = int_to_ptr.vmem [resolvable:$false] %s792_s6 }
  0x76   : > { %vm342_vm0 = vcmp.gt.f32.partialorder %v310_v13, 0.0  ;;  %v374_v22 = vmul.f32 0.01, %v310_v13  ;;  %vm343_vm1 = vcmp.gt.f32.partialorder %v311_v18, 0.0  ;;  %v375_v26 = vmul.f32 0.01, %v311_v18  ;;  %p795_p0 = scmp.lt.s32.totalorder %s1246_s26, %s793_s6 }
  0x77   : > { %vm344_vm2 = vcmp.gt.f32.partialorder %v312_v19, 0.0  ;;  %v376_v27 = vmul.f32 0.01, %v312_v19  ;;  %vm345_vm3 = vcmp.gt.f32.partialorder %v313_v20, 0.0  ;;  %v377_v29 = vmul.f32 0.01, %v313_v20  ;;  %p791_p1 = pneg %p790_p11 }
  0x78   : > { %v406_v28 = vsel %vm342_vm0, %v310_v13, %v374_v22  ;;  %vm346_vm4 = vcmp.gt.f32.partialorder %v314_v23, 0.0  ;;  %v407_v32 = vsel %vm343_vm1, %v311_v18, %v375_v26  ;;  %v378_v34 = vmul.f32 0.01, %v314_v23  ;;  %v247_v4 = vld [vmem:[%s1092_s9 + $0x78] sm:$0xff]  ;;  %v248_v5 = vld [vmem:[%s1092_s9 + $0x80] sm:$0xff]  ;;  %v249_v9 = vld [vmem:[%s1092_s9 + $0x88] sm:$0xff] }
  0x79   : > { %438 = vst [vmem:[%s1133_s21] sm:$0xff] %v406_v28  ;;  %v408_v33 = vsel %vm344_vm2, %v312_v19, %v376_v27  ;;  %vm347_vm5 = vcmp.gt.f32.partialorder %v315_v24, 0.0  ;;  %439 = vst [vmem:[%s1133_s21 + $0x8] sm:$0xff] %v407_v32  ;;  %v409_v35 = vsel %vm345_vm3, %v313_v20, %v377_v29  ;;  %v379_v36 = vmul.f32 0.01, %v315_v24  ;;  %v250_v10 = vld [vmem:[%s1092_s9 + $0x90] sm:$0xff]  ;;  %v251_v17 = vld [vmem:[%s1092_s9 + $0x98] sm:$0xff] }
  0x7a   : > { %440 = vst [vmem:[%s1133_s21 + $0x10] sm:$0xff] %v408_v33  ;;  %v316_v37 = vadd.f32 %v1105_v2, %v277_v16  ;;  %v317_v38 = vadd.f32 %v1105_v2, %v278_v21  ;;  %441 = vst [vmem:[%s1133_s21 + $0x18] sm:$0xff] %v409_v35  ;;  %v410_v39 = vsel %vm346_vm4, %v314_v23, %v378_v34  ;;  %v252_v18 = vld [vmem:[%s1092_s9 + $0xa0] sm:$0xff]  ;;  %v253_v32 = vld [vmem:[%s1092_s9 + $0xa8] sm:$0xff]  ;;  %s794_s11 = scalar_lea.vmem %s793_s6, 8192 }
  0x7b   : > { %v279_v40 = vmul.f32 %v1103_v1, %v240_v25  ;;  %v280_v41 = vmul.f32 %v1103_v1, %v241_v30  ;;  %v281_v42 = vmul.f32 %v1103_v1, %v242_v31  ;;  %442 = vst [vmem:[%s1133_s21 + $0x20] sm:$0xff] %v410_v39  ;;  %v411_v46 = vsel %vm347_vm5, %v315_v24, %v379_v36  ;;  %v254_v33 = vld [vmem:[%s1092_s9 + $0xb0] sm:$0xff]  ;;  %p796_p6 = scmp.lt.s32.totalorder %s794_s11, %s788_s19 }
  0x7c   : > { %vm348_vm6 = vcmp.gt.f32.partialorder %v316_v37, 0.0  ;;  %v380_v47 = vmul.f32 0.01, %v316_v37  ;;  %vm349_vm7 = vcmp.gt.f32.partialorder %v317_v38, 0.0  ;;  %443 = vst [vmem:[%s1133_s21 + $0x28] sm:$0xff] %v411_v46  ;;  %v282_v53 = vmul.f32 %v1103_v1, %v243_v43  ;;  %v257_v46 = vld [vmem:[%s1092_s9 + $0xc8] sm:$0xff] }
  0x7d   : > { %v381_v48 = vmul.f32 0.01, %v317_v38  ;;  %v318_v49 = vadd.f32 %v1105_v2, %v279_v40  ;;  %v319_v50 = vadd.f32 %v1105_v2, %v280_v41  ;;  %v320_v51 = vadd.f32 %v1105_v2, %v281_v42  ;;  %v255_v40 = vld [vmem:[%s1092_s9 + $0xb8] sm:$0xff]  ;;  %p797_p2 = por %p796_p6, %p795_p0 }
  0x7e   : > { %v412_v52 = vsel %vm348_vm6, %v316_v37, %v380_v47  ;;  %v283_v54 = vmul.f32 %v1103_v1, %v244_v44  ;;  %v284_v55 = vmul.f32 %v1103_v1, %v245_v45  ;;  %v321_v61 = vadd.f32 %v1105_v2, %v282_v53  ;;  %v256_v45 = vld [vmem:[%s1092_s9 + $0xc0] sm:$0xff]  ;;  %v258_v47 = vld [vmem:[%s1092_s9 + $0xd0] sm:$0xff] }
  0x7f   : > { %444 = vst [vmem:[%s1133_s21 + $0x30] sm:$0xff] %v412_v52  ;;  %v413_v57 = vsel %vm349_vm7, %v317_v38, %v381_v48  ;;  %vm350_vm8 = vcmp.gt.f32.partialorder %v318_v49, 0.0  ;;  %v382_v58 = vmul.f32 0.01, %v318_v49  ;;  %vm351_vm9 = vcmp.gt.f32.partialorder %v319_v50, 0.0  ;;  %p798_p9 = pnand %p797_p2, %p791_p1 }
  0x80   : > { %445 = vst [vmem:[%s1133_s21 + $0x38] sm:$0xff] %v413_v57  ;;  %v383_v59 = vmul.f32 0.01, %v319_v50  ;;  %vm352_vm10 = vcmp.gt.f32.partialorder %v320_v51, 0.0  ;;  %v384_v60 = vmul.f32 0.01, %v320_v51  ;;  %v322_v63 = vadd.f32 %v1105_v2, %v283_v54 }
  0x81   : > { %v414_v62 = vsel %vm350_vm8, %v318_v49, %v382_v58  ;;  %v323_v0 = vadd.f32 %v1105_v2, %v284_v55  ;;  %v285_v3 = vmul.f32 %v1103_v1, %v246_v56  ;;  %vm353_vm11 = vcmp.gt.f32.partialorder %v321_v61, 0.0  ;;  %v259_v58 = vld [vmem:[%s1092_s9 + $0xd8] sm:$0xff] }
  0x82   : > { %446 = vst [vmem:[%s1133_s21 + $0x40] sm:$0xff] %v414_v62  ;;  %v415_v6 = vsel %vm351_vm9, %v319_v50, %v383_v59  ;;  %v416_v7 = vsel %vm352_vm10, %v320_v51, %v384_v60  ;;  %v385_v8 = vmul.f32 0.01, %v321_v61  ;;  %vm354_vm12 = vcmp.gt.f32.partialorder %v322_v63, 0.0  ;;  %v260_v59 = vld [vmem:[%s1092_s9 + $0xe0] sm:$0xff] }
  0x83   : > { %447 = vst [vmem:[%s1133_s21 + $0x48] sm:$0xff] %v415_v6  ;;  %448 = vst [vmem:[%s1133_s21 + $0x50] sm:$0xff] %v416_v7  ;;  %v386_v11 = vmul.f32 0.01, %v322_v63  ;;  %vm355_vm13 = vcmp.gt.f32.partialorder %v323_v0, 0.0  ;;  %v324_v14 = vadd.f32 %v1105_v2, %v285_v3  ;;  %v286_v15 = vmul.f32 %v1103_v1, %v247_v4 }
  0x84   : > { %v387_v12 = vmul.f32 0.01, %v323_v0  ;;  %v417_v13 = vsel %vm353_vm11, %v321_v61, %v385_v8  ;;  %v287_v16 = vmul.f32 %v1103_v1, %v248_v5  ;;  %v288_v21 = vmul.f32 %v1103_v1, %v249_v9 }
  0x85   : > { %449 = vst [vmem:[%s1133_s21 + $0x58] sm:$0xff] %v417_v13  ;;  %v418_v19 = vsel %vm354_vm12, %v322_v63, %v386_v11  ;;  %v289_v22 = vmul.f32 %v1103_v1, %v250_v10  ;;  %vm356_vm14 = vcmp.gt.f32.partialorder %v324_v14, 0.0  ;;  %v388_v23 = vmul.f32 0.01, %v324_v14  ;;  %v261_v10 = vld [vmem:[%s1092_s9 + $0xe8] sm:$0xff]  ;;  %v262_v11 = vld [vmem:[%s1092_s9 + $0xf0] sm:$0xff] }
  0x86   : > { %v419_v20 = vsel %vm355_vm13, %v323_v0, %v387_v12  ;;  %450 = vst [vmem:[%s1133_s21 + $0x60] sm:$0xff] %v418_v19  ;;  %v325_v24 = vadd.f32 %v1105_v2, %v286_v15  ;;  %v326_v25 = vadd.f32 %v1105_v2, %v287_v16  ;;  %v327_v26 = vadd.f32 %v1105_v2, %v288_v21 }
  0x87   : > { %451 = vst [vmem:[%s1133_s21 + $0x68] sm:$0xff] %v419_v20  ;;  %v328_v27 = vadd.f32 %v1105_v2, %v289_v22  ;;  %v290_v28 = vmul.f32 %v1103_v1, %v251_v17  ;;  %v291_v29 = vmul.f32 %v1103_v1, %v252_v18  ;;  %v420_v30 = vsel %vm356_vm14, %v324_v14, %v388_v23  ;;  %v263_v18 = vld [vmem:[%s1092_s9 + $0xf8] sm:$0xff] }
  0x88   : > { %vm357_vm15 = vcmp.gt.f32.partialorder %v325_v24, 0.0  ;;  %v389_v31 = vmul.f32 0.01, %v325_v24  ;;  %vm358_vm0 = vcmp.gt.f32.partialorder %v326_v25, 0.0  ;;  %452 = vst [vmem:[%s1133_s21 + $0x70] sm:$0xff] %v420_v30  ;;  %vm359_vm1 = vcmp.gt.f32.partialorder %v327_v26, 0.0 }
  0x89   : > { %v390_v34 = vmul.f32 0.01, %v326_v25  ;;  %v391_v35 = vmul.f32 0.01, %v327_v26  ;;  %vm360_vm2 = vcmp.gt.f32.partialorder %v328_v27, 0.0  ;;  %v329_v38 = vadd.f32 %v1105_v2, %v290_v28 }
  0x8a   : > { %v421_v36 = vsel %vm357_vm15, %v325_v24, %v389_v31  ;;  %v392_v37 = vmul.f32 0.01, %v328_v27  ;;  %v330_v39 = vadd.f32 %v1105_v2, %v291_v29  ;;  %v292_v43 = vmul.f32 %v1103_v1, %v253_v32 }
  0x8b   : > { %453 = vst [vmem:[%s1133_s21 + $0x78] sm:$0xff] %v421_v36  ;;  %v422_v41 = vsel %vm358_vm0, %v326_v25, %v390_v34  ;;  %v423_v42 = vsel %vm359_vm1, %v327_v26, %v391_v35  ;;  %v293_v44 = vmul.f32 %v1103_v1, %v254_v33  ;;  %vm361_vm3 = vcmp.gt.f32.partialorder %v329_v38, 0.0 }
  0x8c   : > { %454 = vst [vmem:[%s1133_s21 + $0x80] sm:$0xff] %v422_v41  ;;  %455 = vst [vmem:[%s1133_s21 + $0x88] sm:$0xff] %v423_v42  ;;  %v424_v48 = vsel %vm360_vm2, %v328_v27, %v392_v37  ;;  %v393_v49 = vmul.f32 0.01, %v329_v38  ;;  %vm362_vm4 = vcmp.gt.f32.partialorder %v330_v39, 0.0  ;;  %v331_v51 = vadd.f32 %v1105_v2, %v292_v43 }
  0x8d   : > { %456 = vst [vmem:[%s1133_s21 + $0x90] sm:$0xff] %v424_v48  ;;  %v394_v50 = vmul.f32 0.01, %v330_v39  ;;  %v332_v52 = vadd.f32 %v1105_v2, %v293_v44  ;;  %v294_v53 = vmul.f32 %v1103_v1, %v255_v40  ;;  %v295_v55 = vmul.f32 %v1103_v1, %v256_v45 }
  0x8e   : > { %v425_v54 = vsel %vm361_vm3, %v329_v38, %v393_v49  ;;  %v296_v56 = vmul.f32 %v1103_v1, %v257_v46  ;;  %v297_v57 = vmul.f32 %v1103_v1, %v258_v47  ;;  %vm363_vm5 = vcmp.gt.f32.partialorder %v331_v51, 0.0 }
  0x8f   : > { %457 = vst [vmem:[%s1133_s21 + $0x98] sm:$0xff] %v425_v54  ;;  %v426_v60 = vsel %vm362_vm4, %v330_v39, %v394_v50  ;;  %v395_v61 = vmul.f32 0.01, %v331_v51  ;;  %vm364_vm6 = vcmp.gt.f32.partialorder %v332_v52, 0.0  ;;  %v396_v62 = vmul.f32 0.01, %v332_v52 }
  0x90   : > { %458 = vst [vmem:[%s1133_s21 + $0xa0] sm:$0xff] %v426_v60  ;;  %v333_v63 = vadd.f32 %v1105_v2, %v294_v53  ;;  %v334_v0 = vadd.f32 %v1105_v2, %v295_v55  ;;  %v335_v3 = vadd.f32 %v1105_v2, %v296_v56  ;;  %v336_v5 = vadd.f32 %v1105_v2, %v297_v57 }
  0x91   : > { %v427_v4 = vsel %vm363_vm5, %v331_v51, %v395_v61  ;;  %v298_v6 = vmul.f32 %v1103_v1, %v259_v58  ;;  %v299_v7 = vmul.f32 %v1103_v1, %v260_v59  ;;  %v428_v8 = vsel %vm364_vm6, %v332_v52, %v396_v62 }
  0x92   : > { %459 = vst [vmem:[%s1133_s21 + $0xa8] sm:$0xff] %v427_v4  ;;  %vm365_vm7 = vcmp.gt.f32.partialorder %v333_v63, 0.0  ;;  %v397_v9 = vmul.f32 0.01, %v333_v63  ;;  %vm366_vm8 = vcmp.gt.f32.partialorder %v334_v0, 0.0  ;;  %460 = vst [vmem:[%s1133_s21 + $0xb0] sm:$0xff] %v428_v8  ;;  %v300_v21 = vmul.f32 %v1103_v1, %v261_v10 }
  0x93   : > { %v398_v12 = vmul.f32 0.01, %v334_v0  ;;  %vm367_vm9 = vcmp.gt.f32.partialorder %v335_v3, 0.0  ;;  %v399_v13 = vmul.f32 0.01, %v335_v3  ;;  %vm368_vm10 = vcmp.gt.f32.partialorder %v336_v5, 0.0 }
  0x94   : > { %v429_v14 = vsel %vm365_vm7, %v333_v63, %v397_v9  ;;  %v400_v15 = vmul.f32 0.01, %v336_v5  ;;  %v337_v16 = vadd.f32 %v1105_v2, %v298_v6  ;;  %v338_v17 = vadd.f32 %v1105_v2, %v299_v7 }
  0x95   : > { %461 = vst [vmem:[%s1133_s21 + $0xb8] sm:$0xff] %v429_v14  ;;  %v430_v19 = vsel %vm366_vm8, %v334_v0, %v398_v12  ;;  %v431_v20 = vsel %vm367_vm9, %v335_v3, %v399_v13  ;;  %v301_v22 = vmul.f32 %v1103_v1, %v262_v11  ;;  %v339_v26 = vadd.f32 %v1105_v2, %v300_v21 }
  0x96   : > { %462 = vst [vmem:[%s1133_s21 + $0xc0] sm:$0xff] %v430_v19  ;;  %463 = vst [vmem:[%s1133_s21 + $0xc8] sm:$0xff] %v431_v20  ;;  %v432_v23 = vsel %vm368_vm10, %v336_v5, %v400_v15  ;;  %vm369_vm11 = vcmp.gt.f32.partialorder %v337_v16, 0.0  ;;  %v401_v24 = vmul.f32 0.01, %v337_v16  ;;  %vm370_vm12 = vcmp.gt.f32.partialorder %v338_v17, 0.0 }
  0x97   : > { %464 = vst [vmem:[%s1133_s21 + $0xd0] sm:$0xff] %v432_v23  ;;  %v402_v25 = vmul.f32 0.01, %v338_v17  ;;  %v340_v27 = vadd.f32 %v1105_v2, %v301_v22  ;;  %v302_v28 = vmul.f32 %v1103_v1, %v263_v18  ;;  %vm371_vm13 = vcmp.gt.f32.partialorder %v339_v26, 0.0 }
  0x98   : > { %v433_v29 = vsel %vm369_vm11, %v337_v16, %v401_v24  ;;  %v403_v31 = vmul.f32 0.01, %v339_v26 }
  0x99   : > { %465 = vst [vmem:[%s1133_s21 + $0xd8] sm:$0xff] %v433_v29  ;;  %v434_v30 = vsel %vm370_vm12, %v338_v17, %v402_v25  ;;  %vm372_vm14 = vcmp.gt.f32.partialorder %v340_v27, 0.0  ;;  %v404_v32 = vmul.f32 0.01, %v340_v27  ;;  %v341_v33 = vadd.f32 %v1105_v2, %v302_v28 }
  0x9a   : > { %466 = vst [vmem:[%s1133_s21 + $0xe0] sm:$0xff] %v434_v30  ;;  %v435_v34 = vsel %vm371_vm13, %v339_v26, %v403_v31 }
  0x9b   : > { %467 = vst [vmem:[%s1133_s21 + $0xe8] sm:$0xff] %v435_v34  ;;  %v436_v35 = vsel %vm372_vm14, %v340_v27, %v404_v32  ;;  %vm373_vm15 = vcmp.gt.f32.partialorder %v341_v33, 0.0  ;;  %v405_v1 = vmul.f32 0.01, %v341_v33 }
  0x9c   : > { %468 = vst [vmem:[%s1133_s21 + $0xf0] sm:$0xff] %v436_v35 }
  0x9d   : > { %v437_v36 = vsel %vm373_vm15, %v341_v33, %v405_v1 }
  0x9e   : > { %469 = vst [vmem:[%s1133_s21 + $0xf8] sm:$0xff] %v437_v36 }
  0x9f   : > { %801 = shalt.err (!%p798_p9)
}
  0xa0   : > { %s802_s4 = scalar_lea.hbm %s1244_s18, 4096  ;;  %s806_s7 = scalar_lea.hbm %s1300_s3, 8192 }
  0xa1   : > { %p803_p8 = scmp.ne.s32.totalorder %s1244_s18, %s802_s4  ;;  %p807_p7 = scmp.lt.u32.totalorder %s1244_s18, %s1300_s3 }
  0xa2   : > { %p808_p12 = scmp.lt.u32.totalorder %s806_s7, %s802_s4  ;;  %p810_p5 = scmp.lt.u32.totalorder %s802_s4, %s1244_s18 }
  0xa3   : > { %p804_p13 = pnand %p803_p8, %p1319_p10 }
  0xa4   : > { %p809_p3 = por %p808_p12, %p807_p7 }
  0xa5   : > { %p805_p4 = pneg %p804_p13 }
  0xa6   : > { %p811_p11 = por %p810_p5, %p809_p3 }
  0xa8   : > { %p812_p1 = pnand %p811_p11, %p805_p4 }
  0xaa   : > { %815 = shalt.err (!%p812_p1)
}
  0xab   : > { %s882_s21 = smov 128   ;;  %s883_s23 = smov 8  }
  0xac   : > { %625 = dma.vmem_to_hbm [thread:$0]  (%p1319_p10), %s1246_s26, 4096, %s1244_s18, %s471_s15, %s882_s21, %s882_s21, %s883_s23  }
  0xad PF: > { %s501_s29 = sand.u32 1, %s854_s12   ;;  %p1320_p0 = scmp.ne.s32.totalorder %s1311_s25, 0 }
  0xae   : > { %p1321_p6 = scmp.ge.s32.totalorder %s874_s17, 2  ;;  %s502_s10 = scalar_lea.sflag [#allocation4], %s501_s29 }
  0xb0   : > { %p639_p2 = pnand %p1321_p6, %p1320_p0 }
  0xb2   : > { %849 = dma.done.wait (!%p639_p2), %s502_s10, 4096  }
  0xb3   : > { %851 = vsyncadd (!%p639_p2), %s502_s10, 4294963200  ;;  %s20_s17 = sadd.s32 1, %s874_s17   ;;  %s1322_s12 = smov %s858_s13 }
  0xb4   : > { %p17_p9 = scmp.ge.s32.totalorder %s20_s17, 4   ;;  %s1323_s13 = smov %s862_s14 }
  0xb5   : > { %s1324_s14 = smov %s1053_s28  ;;  %s1325_s15 = smov %s870_s16 }
  0xb6   : > { %s1326_s16 = smov %s1328_s30  ;;  %19 = sbr.rel (!%p17_p9) target bundleno = 7 (0x7), region = 85 }
  0xbd   :  { %507 = vsyncpa [#allocation3], 1 }
  0xbe   :  { %509 = vsyncpa [#allocation3 + $0x1], 1 }
  0xbf   :  { %510 = vsyncpa [#allocation6], 1 }
  0xc0   :  { %511 = vsyncpa [#allocation4], 1 }
  0xc1   :  { %513 = vsyncpa [#allocation4 + $0x1], 1 }

// kernel: cbl_forward.2
= control target key start
LH: loop header
LB: loop body
LE: loop exit
PB: predicated region body
PF: predicated region fallthrough
CT: control target
= control target key end

     0   :  { %10 = vsyncpa [#allocation3], 0  ;;  %s8908_s0 = inlined_call_operand.hbm [shape: bf16[2,1,18,18,4], index: 0, kind: input, shape index: {}]   ;;  %s8909_s1 = inlined_call_operand.hbm [shape: bf16[3,3,4,128], index: 1, kind: input, shape index: {}]   ;;  %s8910_s2 = inlined_call_operand.hbm [shape: f32[2,1,256,128], index: 2, kind: output, shape index: {0}]   ;;  %s8911_s3 = inlined_call_operand.hbm [shape: f32[2,1,1,128], index: 3, kind: output, shape index: {1}]   ;;  %s8912_s4 = inlined_call_operand.hbm [shape: f32[2,1,1,128], index: 4, kind: output, shape index: {2}]  }
   0x1   :  { %12 = vsyncpa [#allocation3 + $0x1], 0 }
   0x2   :  { %13 = vsyncpa [#allocation6], 0 }
   0x3   :  { %14 = vsyncpa [#allocation4], 0 }
   0x4   :  { %16 = vsyncpa [#allocation4 + $0x1], 0 }
   0x5   :  { %17 = vsyncpa [#allocation9], 0 }
   0x6   :  { %19 = vsyncpa [#allocation9 + $0x1], 0  ;;  %s6882_s15 = smov 0   ;;  %s6884_s16 = smov 0  }
   0x7   :  { %s6886_s17 = smov 0   ;;  %s6888_s18 = smov 0  }
   0x8   :  { %s6890_s19 = smov 0   ;;  %s6892_s20 = smov 0  }
   0x9 LB: > { %s6913_s21 = sadd.s32 4294967295, %s6844_s20   ;;  %s5174_s22 = sadd.s32 4294967294, %s6844_s20   ;;  %s6844_s20 = sphi %s6892_s20, %s25_s20   ;;  %s6840_s19 = sphi %s6890_s19, %s9019_s19   ;;  %s6836_s18 = sphi %s6888_s18, %s9018_s18   ;;  %s6832_s17 = sphi %s6886_s17, %s9017_s17   ;;  %s6828_s16 = sphi %s6884_s16, %s9016_s16   ;;  %s6824_s15 = sphi %s6882_s15, %s9015_s15  }
   0xa   : > { %p59_p0 = scmp.ne.s32.totalorder %s6828_s16, %s6824_s15  ;;  %p8913_p1 = scmp.eq.s32.totalorder %s6913_s21, 0 }
   0xb   : > { %p112_p3 = scmp.eq.s32.totalorder %s5174_s22, 1  ;;  %p5175_p5 = scmp.ge.s32.totalorder %s6844_s20, 1 }
   0xc   : > { %p6924_p4 = por %p8913_p1, %p59_p0  ;;  %p175_p7 = scmp.lt.s32.totalorder %s6844_s20, 3 }
   0xd   : > { %p6929_p6 = por %p112_p3, %p59_p0  ;;  %s6846_s26 = smov [#allocation5]  }
   0xe   : > { %s8935_s23 = scalar_select %p6924_p4, 1, 0 }
   0xf   : > { %s8936_s24 = scalar_select %p6929_p6, 1, 0 }
  0x10   : > { %p6934_p8 = pnand %p5175_p5, %p175_p7  ;;  %s187_s27 = sshll.u32 %s6846_s26, 4  ;;  %s188_s27 = int_to_ptr.vmem [resolvable:$true] %s187_s27 }
  0x11   : > { %s37_s29 = sadd.s32 1, %s6840_s19  ;;  %s6640_s6 = scalar_lea.hbm %s8909_s1, 288 }
  0x12   : > { %s8937_s25 = scalar_select %p6934_p8, 1, 0 }
  0x13   : > { %p6460_p9 = pneg %p6934_p8  ;;  %p6641_p12 = scmp.ne.s32.totalorder %s8909_s1, %s6640_s6 }
  0x14   : > { %p6647_p5 = scmp.lt.u32.totalorder %s6640_s6, %s8909_s1 }
  0x15   : > { %p6943_p11 = pnand %p6460_p9, %p8913_p1 }
  0x17   : > { %p6642_p13 = pneg %p6943_p11 }
  0x19   : > { %p6643_p0 = pnand %p6642_p13, %p6641_p12 }
  0x1b   : > { %p6644_p3 = pneg %p6643_p0 }
  0x1d   : > { %p6649_p7 = pnand %p6647_p5, %p6644_p3 }
  0x1f   : > { %6652 = shalt.err (!%p6649_p7)
}
  0x20   : > { %s6653_s11 = scalar_lea.vmem %s188_s27, 288  ;;  %p6661_p2 = scmp.lt.s32.totalorder %s188_s27, %s188_s27 }
  0x21   : > { %p6654_p9 = scmp.ne.s32.totalorder %s188_s27, %s6653_s11  ;;  %p6662_p6 = scmp.lt.s32.totalorder %s6653_s11, %s6653_s11 }
  0x23   : > { %p6656_p10 = pnand %p6654_p9, %p6642_p13  ;;  %p6663_p4 = por %p6662_p6, %p6661_p2 }
  0x25   : > { %p6657_p1 = pneg %p6656_p10 }
  0x27   : > { %p6664_p8 = pnand %p6663_p4, %p6657_p1 }
  0x29   : > { %6667 = shalt.err (!%p6664_p8)
}
  0x2a   : > { %s6847_s12 = smov 32   ;;  %s6848_s13 = smov 2  }
  0x2b   : > { %6463 = dma.hbm_to_vmem [thread:$0]  (!%p6943_p11), %s8909_s1, 288, %s188_s27, [#allocation6], %s6847_s12, %s6847_s12, %s6848_s13  }
  0x2c   : > { %p39_p1 = scmp.ge.s32.totalorder %s37_s29, 2  ;;  %s46_s30 = sadd.s32 1, %s6832_s17 }
  0x2d   : > { %p53_p2 = scmp.ne.s32.totalorder %s6832_s17, %s6828_s16  ;;  %p54_p4 = scmp.eq.s32.totalorder %s6844_s20, 0 }
  0x2e   : > { %s9021_s29 = smov (%p39_p1, %s37_s29), 0  ;;  %p8939_p8 = scmp.eq.s32.totalorder %s6913_s21, 1 }
  0x2f   : > { %p55_p6 = por %p54_p4, %p53_p2  ;;  %s41_s6 = ssub.s32 %s6840_s19, %s9021_s29 }
  0x30   : > { %p6972_p10 = por %p8939_p8, %p53_p2  ;;  %p6479_p12 = scmp.lt.s32.totalorder %s6844_s20, 2 }
  0x31   : > { %p44_p13 = scmp.eq.s32.totalorder %s41_s6, 0  ;;  %s201_s28 = sand.u32 1, %s6832_s17  }
  0x32   : > { %s6445_s7 = smul.u32 216, %s201_s28  ;;  %p6984_p11 = pnand %p6479_p12, %p55_p6 }
  0x33   : > { %s6981_s8 = scalar_select %p44_p13, %s6832_s17, %s46_s30  }
  0x34   : > { %s6446_s27 = smul.u32 3456, %s6840_s19  ;;  %s205_s9 = scalar_lea.vmem [#allocation2], %s6445_s7 }
  0x35   : > { %s214_s10 = sshll.u32 %s205_s9, 4  ;;  %s6995_s26 = scalar_lea.sflag [#allocation3], %s201_s28  ;;  %s6993_s10 = int_to_ptr.vmem [resolvable:$true] %s214_s10 }
  0x36   : > { %s6991_s14 = scalar_lea.hbm %s8908_s0, %s6446_s27  ;;  %p6670_p3 = pneg %p6984_p11 }
  0x37   : > { %s6668_s30 = scalar_lea.hbm %s6991_s14, 3456  ;;  %s6673_s27 = scalar_lea.hbm %s8908_s0, 6912 }
  0x38   : > { %p6669_p0 = scmp.ne.s32.totalorder %s6991_s14, %s6668_s30  ;;  %p6674_p9 = scmp.lt.u32.totalorder %s6991_s14, %s8908_s0 }
  0x39   : > { %p6675_p1 = scmp.lt.u32.totalorder %s6673_s27, %s6668_s30  ;;  %p6677_p4 = scmp.lt.u32.totalorder %s6668_s30, %s6991_s14 }
  0x3a   : > { %p6671_p5 = pnand %p6670_p3, %p6669_p0 }
  0x3b   : > { %p6676_p2 = por %p6675_p1, %p6674_p9 }
  0x3c   : > { %p6672_p7 = pneg %p6671_p5 }
  0x3d   : > { %p6678_p6 = por %p6677_p4, %p6676_p2 }
  0x3f   : > { %p6679_p8 = pnand %p6678_p6, %p6672_p7 }
  0x41   : > { %6682 = shalt.err (!%p6679_p8)
}
  0x42   : > { %s6683_s28 = scalar_lea.vmem %s6993_s10, 3456  ;;  %s6849_s13 = smov [#allocation2]  }
  0x43   : > { %p6684_p12 = scmp.ne.s32.totalorder %s6993_s10, %s6683_s28  ;;  %s6688_s6 = sshll.u32 %s6849_s13, 4  ;;  %s6689_s6 = int_to_ptr.vmem [resolvable:$false] %s6688_s6 }
  0x44   : > { %s6690_s7 = scalar_lea.vmem %s6689_s6, 6912  ;;  %p6691_p5 = scmp.lt.s32.totalorder %s6993_s10, %s6689_s6 }
  0x45   : > { %p6686_p13 = pnand %p6684_p12, %p6670_p3  ;;  %p6692_p9 = scmp.lt.s32.totalorder %s6690_s7, %s6683_s28 }
  0x47   : > { %p6687_p0 = pneg %p6686_p13  ;;  %p6693_p1 = por %p6692_p9, %p6691_p5 }
  0x49   : > { %p6694_p2 = pnand %p6693_p1, %p6687_p0 }
  0x4b   : > { %6697 = shalt.err (!%p6694_p2)
}
  0x4c   : > { %s6850_s30 = smov 64   ;;  %s6851_s27 = smov 4  }
  0x4d   : > { %6467 = dma.hbm_to_vmem [thread:$0]  (!%p6984_p11), %s6991_s14, 3456, %s6993_s10, %s6995_s26, %s6850_s30, %s6850_s30, %s6851_s27  }
  0x4e   : > { %p8942_p3 = scmp.ne.s32.totalorder %s8937_s25, 0 }
  0x50   : > { %226 = sbr.rel (%p8942_p3) target bundleno = 726 (0x2d6), region = 28 }
  0x57   : > { %s7026_s9 = sand.u32 1, %s6828_s16   ;;  %p8943_p7 = scmp.ne.s32.totalorder %s8935_s23, 0 }
  0x58   : > { %s6447_s12 = smul.u32 216, %s7026_s9  ;;  %s229_s28 = scalar_lea.sflag [#allocation3], %s7026_s9 }
  0x5a   : > { %s7030_s13 = scalar_lea.vmem [#allocation2], %s6447_s12 }
  0x5b   : > { %6807 = dma.done.wait (%p8943_p7), %s229_s28, 3456  }
  0x5c   : > { %6809 = vsyncadd (%p8943_p7), %s229_s28, 4294963840  ;;  %p8944_p11 = scmp.eq.s32.totalorder %s6913_s21, 0 }
  0x5e   : > { %6811 = dma.done.wait (%p8944_p11), [#allocation6], 288   ;;  %p8945_p4 = pmov %p8944_p11 }
  0x5f   : > { %vm805_vm0 = vcmask 1041408   ;;  %vm319_vm1 = vsmask.f32 3328  ;;  %vm320_vm2 = vsmask.f32 7440  ;;  %vm756_vm4 = vcmask 31744  }
  0x60   : > { %6813 = vsyncadd (%p8945_p4), [#allocation6], 4294967008  ;;  %v707_v0 = vld [vmem:[#allocation5 + $0x2] sm:$0x3]  ;;  %v2511_v1 = vld [vmem:[#allocation5 + $0x8] sm:$0x3] }
  0x61   : > { %v270_v2 = vld [vmem:[%s7030_s13] sm:$0xf]  ;;  %6435 = vmatprep.subr.msk.bf16.mxu1 %vm805_vm0, %v707_v0  ;;  %6439 = vmatprep.subr.msk.bf16.mxu0 %vm805_vm0, %v2511_v1  ;;  %v807_v3 = vsel %vm805_vm0, %v707_v0, 0  ;;  %v7045_v4 = vsel %vm805_vm0, %v2511_v1, 0  ;;  %v271_v5 = vld [vmem:[%s7030_s13 + $0x4] sm:$0xf]  ;;  %vm7068_vm3 = vmor %vm319_vm1, %vm320_vm2 }
  0x62   : > { %8946 = vst [vmem:[#allocation15_spill] sm:$0xff] %v7045_v4  ;;  %v303_v6 = vld [vmem:[%s7030_s13 + $0x8] sm:$0x1]  ;;  %5872 = vmatpush3.bf16.msra.mxu1 %v807_v3  ;;  %6008 = vmatpush3.bf16.msra.mxu0 %v7045_v4  ;;  %v323_v7 = vshrl.u32 %v270_v2, 16  ;;  %v326_v8 = vshll.u32 %v270_v2, 16  ;;  %v332_v9 = vshll.u32 %v271_v5, 16 }
  0x63   : > { %v336_v10 = vshrl.u32 %v271_v5, 16  ;;  %v302_v11 = vld [vmem:[#allocation5] sm:$0x3]  ;;  %v342_v12 = vshll.u32 %v303_v6, 16  ;;  %v5358_v13 = vld [vmem:[%s7030_s13 + $0xc] sm:$0xf] }
  0x64   : > { %6436 = vmatprep.subr.msk.bf16.mxu1 %vm805_vm0, %v302_v11  ;;  %v7053_v14 = vld [vmem:[%s7030_s13 + $0x10] sm:$0xf]  ;;  %v325_v15 = vrot.slane %v323_v7, 4  ;;  %v328_v16 = vrot.slane %v326_v8, 5  ;;  %v334_v17 = vrot.slane %v332_v9, 5  ;;  %v2127_v21 = vshrl.u32 %v5358_v13, 16 }
  0x65   : > { %v338_v18 = vrot.slane %v336_v10, 4  ;;  %v7056_v19 = vld [vmem:[%s7030_s13 + $0x14] sm:$0x1]  ;;  %v344_v20 = vrot.slane %v342_v12, 5  ;;  %v2130_v22 = vshll.u32 %v5358_v13, 16  ;;  %v2136_v23 = vshll.u32 %v7053_v14, 16 }
  0x66   : > { %v7059_v24 = vld [vmem:[#allocation5 + $0xa] sm:$0x3]  ;;  %v329_v25 = vor.u32 %v328_v16, %v325_v15  ;;  %v2140_v27 = vshrl.u32 %v7053_v14, 16  ;;  %v2146_v28 = vshll.u32 %v7056_v19, 16  ;;  %v272_v29 = vld [vmem:[%s7030_s13 + $0xc] sm:$0xf] }
  0x67   : > { %v339_v26 = vor.u32 %v338_v18, %v334_v17  ;;  %6441 = vmatprep.subr.msk.bf16.mxu0 %vm805_vm0, %v7059_v24  ;;  %v2129_v31 = vrot.slane %v2127_v21, 4  ;;  %v2132_v32 = vrot.slane %v2130_v22, 5  ;;  %v2138_v33 = vrot.slane %v2136_v23, 5  ;;  %v273_v34 = vld [vmem:[%s7030_s13 + $0x10] sm:$0xf]  ;;  %s5181_s23 = sshll.u32 %s7026_s9, 8 }
  0x68   : > { %v330_v35 = vrot.slane %v329_v25, 4  ;;  %v2142_v37 = vrot.slane %v2140_v27, 4  ;;  %v2148_v39 = vrot.slane %v2146_v28, 5  ;;  %v304_v40 = vld [vmem:[%s7030_s13 + $0x14] sm:$0x1]  ;;  %v347_v41 = vshrl.u32 %v272_v29, 16 }
  0x69   : > { %v340_v36 = vrot.slane %v339_v26, 4  ;;  %v2133_v38 = vor.u32 %v2132_v32, %v2129_v31  ;;  %v350_v42 = vshll.u32 %v272_v29, 16  ;;  %v356_v46 = vshll.u32 %v273_v34, 16  ;;  %v5361_v55 = vld [vmem:[%s7030_s13 + $0x18] sm:$0xf]  ;;  %s8743_s25 = scalar_lea.vmem [#allocation7], %s5181_s23 }
  0x6a   : > { %v335_v43 = vsel %vm7068_vm3, %v330_v35, %v334_v17  ;;  %v2143_v45 = vor.u32 %v2142_v37, %v2138_v33  ;;  %v349_v49 = vrot.slane %v347_v41, 4  ;;  %v360_v53 = vshrl.u32 %v273_v34, 16  ;;  %v7085_v60 = vld [vmem:[%s7030_s13 + $0x1c] sm:$0xf]  ;;  %v7088_v61 = vld [vmem:[%s7030_s13 + $0x20] sm:$0x1] }
  0x6b   : > { %v345_v44 = vsel %vm7068_vm3, %v340_v36, %v344_v20  ;;  %v2134_v48 = vrot.slane %v2133_v38, 4  ;;  %v352_v50 = vrot.slane %v350_v42, 5  ;;  %v358_v52 = vrot.slane %v356_v46, 5  ;;  %v274_v16 = vld [vmem:[%s7030_s13 + $0x18] sm:$0xf]  ;;  %s5717_s10 = sshll.u32 %s6836_s18, 12 }
  0x6c   : > { %v5182_v47 = vcombine.low %v335_v43, %v345_v44  ;;  %v2144_v51 = vrot.slane %v2143_v45, 4  ;;  %v366_v54 = vshll.u32 %v304_v40, 16  ;;  %v2870_v57 = vrot.slane %v7053_v14, 5  ;;  %v275_v22 = vld [vmem:[%s7030_s13 + $0x1c] sm:$0xf]  ;;  %s4993_s11 = sshll.u32 %s8743_s25, 4  ;;  %s8784_s6 = scalar_lea.hbm %s8910_s2, %s5717_s10  ;;  %s8786_s11 = int_to_ptr.vmem [resolvable:$true] %s4993_s11 }
  0x6d   : > { %v2139_v56 = vsel %vm7068_vm3, %v2134_v48, %v2138_v33  ;;  %v2873_v58 = vrot.slane %v7056_v19, 5  ;;  %v353_v59 = vor.u32 %v352_v50, %v349_v49  ;;  %v362_v63 = vrot.slane %v360_v53, 4  ;;  %v305_v28 = vld [vmem:[%s7030_s13 + $0x20] sm:$0x1]  ;;  %v5364_v34 = vld [vmem:[%s7030_s13 + $0x24] sm:$0xf] }
  0x6e   : > { %5873 = vmatprep.mubr.msk.bf16.mxu1 %vm756_vm4, %v5182_v47  ;;  %v2149_v62 = vsel %vm7068_vm3, %v2144_v51, %v2148_v39  ;;  %v368_v0 = vrot.slane %v366_v54, 5  ;;  %v1099_v1 = vsel %vm805_vm0, %v302_v11, 0  ;;  %v2151_v5 = vshrl.u32 %v5361_v55, 16  ;;  %v7114_v43 = vld [vmem:[%s7030_s13 + $0x28] sm:$0xf]  ;;  %s4970_s7 = scalar_lea.sflag [#allocation4], %s7026_s9 }
  0x6f   : > { %v5406_v2 = vcombine.low %v2139_v56, %v2149_v62  ;;  %v354_v3 = vrot.slane %v353_v59, 4  ;;  %v2154_v6 = vshll.u32 %v5361_v55, 16  ;;  %v363_v7 = vor.u32 %v362_v63, %v358_v52  ;;  %v7120_v46 = vld [vmem:[%s7030_s13 + $0x2c] sm:$0x1]  ;;  %s6698_s30 = scalar_lea.vmem %s8786_s11, 4096  ;;  %s6852_s27 = smov [#allocation7]  }
  0x70   : > { %v2160_v8 = vshll.u32 %v7085_v60, 16  ;;  %v2164_v9 = vshrl.u32 %v7085_v60, 16  ;;  %v2170_v10 = vshll.u32 %v7088_v61, 16  ;;  %v2153_v13 = vrot.slane %v2151_v5, 4  ;;  %p6699_p6 = scmp.ne.s32.totalorder %s8786_s11, %s6698_s30  ;;  %s6702_s12 = sshll.u32 %s6852_s27, 4  ;;  %s6703_s12 = int_to_ptr.vmem [resolvable:$false] %s6702_s12 }
  0x71   : > { %6009 = vmatprep.mubr.msk.bf16.mxu0 %vm756_vm4, %v5406_v2  ;;  %v359_v12 = vsel %vm7068_vm3, %v354_v3, %v358_v52  ;;  %v2156_v11 = vrot.slane %v2154_v6, 5  ;;  %v2877_v15 = vrot.slane %v7085_v60, 5  ;;  %v364_v17 = vrot.slane %v363_v7, 4  ;;  %v276_v52 = vld [vmem:[%s7030_s13 + $0x24] sm:$0xf]  ;;  %s6704_s28 = scalar_lea.vmem %s6703_s12, 8192  ;;  %p6705_p13 = scmp.lt.s32.totalorder %s8786_s11, %s6703_s12 }
  0x72   : > { %v2162_v18 = vrot.slane %v2160_v8, 5  ;;  %v2166_v20 = vrot.slane %v2164_v9, 4  ;;  %v2172_v21 = vrot.slane %v2170_v10, 5  ;;  %v2880_v26 = vrot.slane %v7088_v61, 5  ;;  %p6700_p8 = pnand %p6699_p6, %p6972_p10  ;;  %p6706_p0 = scmp.lt.s32.totalorder %s6704_s28, %s6698_s30 }
  0x73   : > { %v2157_v23 = vor.u32 %v2156_v11, %v2153_v13  ;;  %v7104_v25 = vrot.slane %v2877_v15, 4  ;;  %v3079_v27 = vsel %vm805_vm0, %v7059_v24, 0  ;;  %v369_v29 = vsel %vm7068_vm3, %v364_v17, %v368_v0  ;;  %v5367_v13 = vld [vmem:[%s7030_s13 + $0x30] sm:$0xf] }
  0x74   : > { %v2167_v31 = vor.u32 %v2166_v20, %v2162_v18  ;;  %v371_v32 = vshrl.u32 %v274_v16, 16  ;;  %v374_v33 = vshll.u32 %v274_v16, 16  ;;  %v5183_v35 = vcombine.low %v359_v12, %v369_v29  ;;  %v306_v12 = vld [vmem:[%s7030_s13 + $0x2c] sm:$0x1]  ;;  %p6701_p12 = pneg %p6700_p8  ;;  %p6707_p5 = por %p6706_p0, %p6705_p13 }
  0x75   : > { %v2158_v36 = vrot.slane %v2157_v23, 4  ;;  %v380_v37 = vshll.u32 %v275_v22, 16  ;;  %v384_v38 = vshrl.u32 %v275_v22, 16  ;;  %v390_v42 = vshll.u32 %v305_v28, 16 }
  0x76   : > { %v2168_v39 = vrot.slane %v2167_v31, 4  ;;  %v373_v40 = vrot.slane %v371_v32, 4  ;;  %v376_v41 = vrot.slane %v374_v33, 5  ;;  %5874 = vmatmul.mubr.msk.bf16.vlgmr.msra.gmra.mrb[0].mxu1 %vm756_vm4, %v5183_v35  ;;  %v2175_v47 = vshrl.u32 %v5364_v34, 16  ;;  %p6708_p9 = pnand %p6707_p5, %p6701_p12 }
  0x77   : > { %v2163_v24 = vsel %vm7068_vm3, %v2158_v36, %v2162_v18  ;;  %v382_v44 = vrot.slane %v380_v37, 5  ;;  %v386_v45 = vrot.slane %v384_v38, 4  ;;  %5906 = vmatpush3.bf16.msra.mxu1 %v1099_v1  ;;  %v392_v50 = vrot.slane %v390_v42, 5  ;;  %v277_v1 = vld [vmem:[%s7030_s13 + $0x28] sm:$0xf] }
  0x78   : > { %v2173_v48 = vsel %vm7068_vm3, %v2168_v39, %v2172_v21  ;;  %v377_v49 = vor.u32 %v376_v41, %v373_v40  ;;  %v2178_v51 = vshll.u32 %v5364_v34, 16  ;;  %v2177_v55 = vrot.slane %v2175_v47, 4  ;;  %v7143_v36 = vld [vmem:[%s7030_s13 + $0x38] sm:$0x1]  ;;  %v278_v42 = vld [vmem:[%s7030_s13 + $0x30] sm:$0xf] }
  0x79   : > { %v5407_v53 = vcombine.low %v2163_v24, %v2173_v48  ;;  %v387_v54 = vor.u32 %v386_v45, %v382_v44  ;;  %v2184_v56 = vshll.u32 %v7114_v43, 16  ;;  %v2188_v63 = vshrl.u32 %v7114_v43, 16  ;;  %v279_v48 = vld [vmem:[%s7030_s13 + $0x34] sm:$0xf] }
  0x7a   : > { %v378_v59 = vrot.slane %v377_v49, 4  ;;  %v2180_v62 = vrot.slane %v2178_v51, 5  ;;  %v2194_v0 = vshll.u32 %v7120_v46, 16  ;;  %v395_v5 = vshrl.u32 %v276_v52, 16 }
  0x7b   : > { %6010 = vmatmul.mubr.msk.bf16.vlgmr.msra.gmra.mrb[0].mxu0 %vm756_vm4, %v5407_v53  ;;  %v388_v2 = vrot.slane %v387_v54, 4  ;;  %v2186_v3 = vrot.slane %v2184_v56, 5  ;;  %v398_v6 = vshll.u32 %v276_v52, 16  ;;  %v2190_v9 = vrot.slane %v2188_v63, 4  ;;  %v307_v56 = vld [vmem:[%s7030_s13 + $0x38] sm:$0x1] }
  0x7c   : > { %6042 = vmatpush3.bf16.msra.mxu0 %v3079_v27  ;;  %v383_v7 = vsel %vm7068_vm3, %v378_v59, %v382_v44  ;;  %v2181_v8 = vor.u32 %v2180_v62, %v2177_v55  ;;  %v2196_v10 = vrot.slane %v2194_v0, 5  ;;  %v397_v16 = vrot.slane %v395_v5, 4  ;;  %v7137_v27 = vld [vmem:[%s7030_s13 + $0x34] sm:$0xf] }
  0x7d   : > { %v393_v11 = vsel %vm7068_vm3, %v388_v2, %v392_v50  ;;  %v400_v17 = vrot.slane %v398_v6, 5  ;;  %v404_v18 = vshll.u32 %v277_v1, 16  ;;  %v2191_v22 = vor.u32 %v2190_v9, %v2186_v3  ;;  %v5370_v2 = vld [vmem:[%s7030_s13 + $0x3c] sm:$0xf] }
  0x7e   : > { %v5184_v20 = vcombine.low %v383_v7, %v393_v11  ;;  %v2182_v21 = vrot.slane %v2181_v8, 4  ;;  %v408_v23 = vshrl.u32 %v277_v1, 16  ;;  %v414_v31 = vshll.u32 %v306_v12, 16  ;;  %v7160_v8 = vld [vmem:[%s7030_s13 + $0x40] sm:$0xf] }
  0x7f   : > { %v401_v28 = vor.u32 %v400_v17, %v397_v16  ;;  %v406_v29 = vrot.slane %v404_v18, 5  ;;  %v2199_v32 = vshrl.u32 %v5367_v13, 16  ;;  %v2192_v34 = vrot.slane %v2191_v22, 4  ;;  %v7165_v18 = vld [vmem:[%s7030_s13 + $0x44] sm:$0x1] }
  0x80   : > { %5877 = vmatprep.mubr.msk.bf16.mxu1 %vm756_vm4, %v5184_v20  ;;  %v2187_v33 = vsel %vm7068_vm3, %v2182_v21, %v2186_v3  ;;  %v410_v35 = vrot.slane %v408_v23, 4  ;;  %v2202_v37 = vshll.u32 %v5367_v13, 16  ;;  %v416_v39 = vrot.slane %v414_v31, 5  ;;  %v7170_v31 = vld [vmem:[#allocation5 + $0xc] sm:$0x3] }
  0x81   : > { %v402_v38 = vrot.slane %v401_v28, 4  ;;  %v2201_v40 = vrot.slane %v2199_v32, 4  ;;  %v2208_v41 = vshll.u32 %v7137_v27, 16  ;;  %v2197_v24 = vsel %vm7068_vm3, %v2192_v34, %v2196_v10  ;;  %6442 = vmatprep.subr.msk.bf16.mxu0 %vm805_vm0, %v7170_v31 }
  0x82   : > { %v411_v44 = vor.u32 %v410_v35, %v406_v29  ;;  %v2204_v45 = vrot.slane %v2202_v37, 5  ;;  %v2212_v47 = vshrl.u32 %v7137_v27, 16  ;;  %v5408_v49 = vcombine.low %v2187_v33, %v2197_v24 }
  0x83   : > { %v407_v50 = vsel %vm7068_vm3, %v402_v38, %v406_v29  ;;  %v2210_v51 = vrot.slane %v2208_v41, 5  ;;  %v2218_v52 = vshll.u32 %v7143_v36, 16  ;;  %v419_v59 = vshrl.u32 %v278_v42, 16  ;;  %v280_v29 = vld [vmem:[%s7030_s13 + $0x3c] sm:$0xf] }
  0x84   : > { %v412_v53 = vrot.slane %v411_v44, 4  ;;  %v2205_v54 = vor.u32 %v2204_v45, %v2201_v40  ;;  %v2214_v55 = vrot.slane %v2212_v47, 4  ;;  %6013 = vmatprep.mubr.msk.bf16.mxu0 %vm756_vm4, %v5408_v49  ;;  %v422_v63 = vshll.u32 %v278_v42, 16  ;;  %v281_v44 = vld [vmem:[%s7030_s13 + $0x40] sm:$0xf] }
  0x85   : > { %v2220_v62 = vrot.slane %v2218_v52, 5  ;;  %v428_v0 = vshll.u32 %v279_v48, 16  ;;  %v432_v1 = vshrl.u32 %v279_v48, 16  ;;  %v421_v7 = vrot.slane %v419_v59, 4  ;;  %v5373_v52 = vld [vmem:[%s7030_s13 + $0x48] sm:$0xf] }
  0x86   : > { %v417_v3 = vsel %vm7068_vm3, %v412_v53, %v416_v39  ;;  %v2206_v5 = vrot.slane %v2205_v54, 4  ;;  %v2215_v6 = vor.u32 %v2214_v55, %v2210_v51  ;;  %v424_v10 = vrot.slane %v422_v63, 5 }
  0x87   : > { %v5185_v9 = vcombine.low %v407_v50, %v417_v3  ;;  %v430_v12 = vrot.slane %v428_v0, 5  ;;  %v434_v13 = vrot.slane %v432_v1, 4  ;;  %v438_v17 = vshll.u32 %v307_v56, 16  ;;  %v308_v50 = vld [vmem:[%s7030_s13 + $0x44] sm:$0x1] }
  0x88   : > { %v2211_v11 = vsel %vm7068_vm3, %v2206_v5, %v2210_v51  ;;  %v2216_v16 = vrot.slane %v2215_v6, 4  ;;  %v2223_v20 = vshrl.u32 %v5370_v2, 16  ;;  %v425_v21 = vor.u32 %v424_v10, %v421_v7  ;;  %v7188_v3 = vld [vmem:[%s7030_s13 + $0x4c] sm:$0xf] }
  0x89   : > { %5878 = vmatmul.mubr.msk.bf16.gmra.mrb[4].mxu1 %vm756_vm4, %v5185_v9  ;;  %v435_v22 = vor.u32 %v434_v13, %v430_v12  ;;  %v2226_v23 = vshll.u32 %v5370_v2, 16  ;;  %v2232_v28 = vshll.u32 %v7160_v8, 16  ;;  %v440_v33 = vrot.slane %v438_v17, 5  ;;  %v7193_v13 = vld [vmem:[%s7030_s13 + $0x50] sm:$0x1] }
  0x8a   : > { %v2221_v32 = vsel %vm7068_vm3, %v2216_v16, %v2220_v62  ;;  %v2225_v34 = vrot.slane %v2223_v20, 4  ;;  %v2236_v35 = vshrl.u32 %v7160_v8, 16  ;;  %v426_v38 = vrot.slane %v425_v21, 4 }
  0x8b   : > { %v5409_v37 = vcombine.low %v2211_v11, %v2221_v32  ;;  %v436_v39 = vrot.slane %v435_v22, 4  ;;  %v2228_v40 = vrot.slane %v2226_v23, 5  ;;  %v2234_v41 = vrot.slane %v2232_v28, 5  ;;  %v7196_v11 = vld [vmem:[%s7030_s13 + $0x48] sm:$0xf] }
  0x8c   : > { %v2238_v42 = vrot.slane %v2236_v35, 4  ;;  %v2242_v24 = vshll.u32 %v7165_v18, 16  ;;  %v443_v45 = vshrl.u32 %v280_v29, 16  ;;  %v431_v47 = vsel %vm7068_vm3, %v426_v38, %v430_v12  ;;  %v7204_v35 = vld [vmem:[%s7030_s13 + $0x4c] sm:$0xf] }
  0x8d   : > { %6014 = vmatmul.mubr.msk.bf16.gmra.mrb[4].mxu0 %vm756_vm4, %v5409_v37  ;;  %v441_v48 = vsel %vm7068_vm3, %v436_v39, %v440_v33  ;;  %v2229_v49 = vor.u32 %v2228_v40, %v2225_v34  ;;  %v446_v51 = vshll.u32 %v280_v29, 16  ;;  %v452_v63 = vshll.u32 %v281_v44, 16 }
  0x8e   : > { %v5186_v53 = vcombine.low %v431_v47, %v441_v48  ;;  %v2239_v54 = vor.u32 %v2238_v42, %v2234_v41  ;;  %v2244_v55 = vrot.slane %v2242_v24, 5  ;;  %v445_v56 = vrot.slane %v443_v45, 4  ;;  %v5376_v48 = vld [vmem:[%s7030_s13 + $0x54] sm:$0xf] }
  0x8f   : > { %v2230_v59 = vrot.slane %v2229_v49, 4  ;;  %v448_v62 = vrot.slane %v446_v51, 5  ;;  %v456_v0 = vshrl.u32 %v281_v44, 16  ;;  %v462_v2 = vshll.u32 %v308_v50, 16 }
  0x90   : > { %5881 = vmatprep.mubr.msk.bf16.mxu1 %vm756_vm4, %v5186_v53  ;;  %v2240_v1 = vrot.slane %v2239_v54, 4  ;;  %v2247_v5 = vshrl.u32 %v5373_v52, 16  ;;  %v2250_v6 = vshll.u32 %v5373_v52, 16  ;;  %v454_v10 = vrot.slane %v452_v63, 5  ;;  %v7218_v53 = vld [vmem:[%s7030_s13 + $0x58] sm:$0xf] }
  0x91   : > { %v2235_v7 = vsel %vm7068_vm3, %v2230_v59, %v2234_v41  ;;  %v449_v9 = vor.u32 %v448_v62, %v445_v56  ;;  %v458_v12 = vrot.slane %v456_v0, 4  ;;  %v464_v17 = vrot.slane %v462_v2, 5  ;;  %v309_v41 = vld [vmem:[%s7030_s13 + $0x50] sm:$0x1] }
  0x92   : > { %v2245_v16 = vsel %vm7068_vm3, %v2240_v1, %v2244_v55  ;;  %v2249_v20 = vrot.slane %v2247_v5, 4  ;;  %v2252_v21 = vrot.slane %v2250_v6, 5  ;;  %v2256_v29 = vshll.u32 %v7188_v3, 16  ;;  %v7223_v1 = vld [vmem:[%s7030_s13 + $0x5c] sm:$0x1] }
  0x93   : > { %v5410_v22 = vcombine.low %v2235_v7, %v2245_v16  ;;  %v450_v23 = vrot.slane %v449_v9, 4  ;;  %v459_v28 = vor.u32 %v458_v12, %v454_v10  ;;  %v2260_v33 = vshrl.u32 %v7188_v3, 16 }
  0x94   : > { %v2253_v32 = vor.u32 %v2252_v21, %v2249_v20  ;;  %v2266_v34 = vshll.u32 %v7193_v13, 16  ;;  %v467_v37 = vshrl.u32 %v7196_v11, 16  ;;  %v2258_v40 = vrot.slane %v2256_v29, 5  ;;  %v7229_v20 = vld [vmem:[%s7030_s13 + $0x54] sm:$0xf] }
  0x95   : > { %6017 = vmatprep.mubr.msk.bf16.mxu0 %vm756_vm4, %v5410_v22  ;;  %v455_v38 = vsel %vm7068_vm3, %v450_v23, %v454_v10  ;;  %v460_v39 = vrot.slane %v459_v28, 4  ;;  %v470_v42 = vshll.u32 %v7196_v11, 16  ;;  %v2262_v44 = vrot.slane %v2260_v33, 4  ;;  %v7235_v29 = vld [vmem:[%s7030_s13 + $0x58] sm:$0xf] }
  0x96   : > { %v2254_v24 = vrot.slane %v2253_v32, 4  ;;  %v2268_v45 = vrot.slane %v2266_v34, 5  ;;  %v469_v47 = vrot.slane %v467_v37, 4  ;;  %v476_v51 = vshll.u32 %v7204_v35, 16 }
  0x97   : > { %v465_v49 = vsel %vm7068_vm3, %v460_v39, %v464_v17  ;;  %v472_v50 = vrot.slane %v470_v42, 5  ;;  %v480_v52 = vshrl.u32 %v7204_v35, 16  ;;  %v2263_v56 = vor.u32 %v2262_v44, %v2258_v40 }
  0x98   : > { %v5187_v54 = vcombine.low %v455_v38, %v465_v49  ;;  %v2259_v55 = vsel %vm7068_vm3, %v2254_v24, %v2258_v40  ;;  %v486_v59 = vshll.u32 %v309_v41, 16  ;;  %v478_v63 = vrot.slane %v476_v51, 5  ;;  %v310_v40 = vld [vmem:[%s7030_s13 + $0x5c] sm:$0x1] }
  0x99   : > { %v473_v62 = vor.u32 %v472_v50, %v469_v47  ;;  %v482_v0 = vrot.slane %v480_v52, 4  ;;  %v2271_v2 = vshrl.u32 %v5376_v48, 16  ;;  %v2264_v5 = vrot.slane %v2263_v56, 4  ;;  %v7248_v49 = vld [vmem:[#allocation5 + $0x4] sm:$0x3] }
  0x9a   : > { %5882 = vmatmul.mubr.msk.bf16.gmra.mrb[8].mxu1 %vm756_vm4, %v5187_v54  ;;  %v488_v6 = vrot.slane %v486_v59, 5  ;;  %v2274_v7 = vshll.u32 %v5376_v48, 16  ;;  %v2280_v9 = vshll.u32 %v7218_v53, 16  ;;  %v2284_v17 = vshrl.u32 %v7218_v53, 16  ;;  %v5379_v48 = vld [vmem:[%s7030_s13 + $0x60] sm:$0xf]  ;;  %6437 = vmatprep.subr.msk.bf16.mxu1 %vm805_vm0, %v7248_v49 }
  0x9b   : > { %v474_v10 = vrot.slane %v473_v62, 4  ;;  %v483_v12 = vor.u32 %v482_v0, %v478_v63  ;;  %v2273_v16 = vrot.slane %v2271_v2, 4  ;;  %v2269_v21 = vsel %vm7068_vm3, %v2264_v5, %v2268_v45  ;;  %v7259_v5 = vld [vmem:[%s7030_s13 + $0x68] sm:$0x1] }
  0x9c   : > { %v2276_v22 = vrot.slane %v2274_v7, 5  ;;  %v2282_v23 = vrot.slane %v2280_v9, 5  ;;  %v2290_v28 = vshll.u32 %v7223_v1, 16  ;;  %v5411_v32 = vcombine.low %v2259_v55, %v2269_v21  ;;  %v7251_v55 = vld [vmem:[%s7030_s13 + $0x64] sm:$0xf] }
  0x9d   : > { %v479_v33 = vsel %vm7068_vm3, %v474_v10, %v478_v63  ;;  %v484_v34 = vrot.slane %v483_v12, 4  ;;  %v2286_v37 = vrot.slane %v2284_v17, 4  ;;  %v491_v41 = vshrl.u32 %v7229_v20, 16  ;;  %v7265_v17 = vld [vmem:[%s7030_s13 + $0x60] sm:$0xf] }
  0x9e   : > { %v2277_v38 = vor.u32 %v2276_v22, %v2273_v16  ;;  %v2292_v39 = vrot.slane %v2290_v28, 5  ;;  %v494_v42 = vshll.u32 %v7229_v20, 16  ;;  %vm1310_vm5 = vcmask 1042432   ;;  %6018 = vmatmul.mubr.msk.bf16.gmra.mrb[8].mxu0 %vm756_vm4, %v5411_v32 }
  0x9f   : > { %vm1311_vm6 = vcmask 1046532   ;;  %v489_v24 = vsel %vm7068_vm3, %v484_v34, %v488_v6  ;;  %v2287_v44 = vor.u32 %v2286_v37, %v2282_v23  ;;  %v500_v45 = vshll.u32 %v7235_v29, 16 }
  0xa0   : > { %v504_v47 = vshrl.u32 %v7235_v29, 16  ;;  %v5188_v50 = vcombine.low %v479_v33, %v489_v24  ;;  %v2278_v51 = vrot.slane %v2277_v38, 4  ;;  %v493_v52 = vrot.slane %v491_v41, 4  ;;  %v311_v41 = vld [vmem:[%s7030_s13 + $0x68] sm:$0x1]  ;;  %vm7288_vm7 = vmor %vm1310_vm5, %vm1311_vm6 }
  0xa1   : > { %v496_v54 = vrot.slane %v494_v42, 5  ;;  %v2288_v56 = vrot.slane %v2287_v44, 4  ;;  %v502_v59 = vrot.slane %v500_v45, 5  ;;  %v510_v63 = vshll.u32 %v310_v40, 16 }
  0xa2   : > { %v506_v62 = vrot.slane %v504_v47, 4  ;;  %5885 = vmatprep.mubr.msk.bf16.mxu1 %vm756_vm4, %v5188_v50  ;;  %v2283_v0 = vsel %vm7068_vm3, %v2278_v51, %v2282_v23  ;;  %v2295_v6 = vshrl.u32 %v5379_v48, 16  ;;  %v2298_v7 = vshll.u32 %v5379_v48, 16  ;;  %v7268_v23 = vld [vmem:[%s7030_s13 + $0x64] sm:$0xf] }
  0xa3   : > { %v497_v2 = vor.u32 %v496_v54, %v493_v52  ;;  %v2293_v9 = vsel %vm7068_vm3, %v2288_v56, %v2292_v39  ;;  %v512_v12 = vrot.slane %v510_v63, 5  ;;  %v2304_v16 = vshll.u32 %v7251_v55, 16  ;;  %v5438_v50 = vld [vmem:[%s7030_s13 + $0xc] sm:$0xe] }
  0xa4   : > { %v507_v10 = vor.u32 %v506_v62, %v502_v59  ;;  %v5412_v21 = vcombine.low %v2283_v0, %v2293_v9  ;;  %v2297_v28 = vrot.slane %v2295_v6, 4  ;;  %v2300_v32 = vrot.slane %v2298_v7, 5 }
  0xa5   : > { %v498_v22 = vrot.slane %v497_v2, 4  ;;  %v2306_v34 = vrot.slane %v2304_v16, 5  ;;  %v2308_v37 = vshrl.u32 %v7251_v55, 16  ;;  %v2314_v38 = vshll.u32 %v7259_v5, 16 }
  0xa6   : > { %v508_v33 = vrot.slane %v507_v10, 4  ;;  %6021 = vmatprep.mubr.msk.bf16.mxu0 %vm756_vm4, %v5412_v21  ;;  %v2301_v40 = vor.u32 %v2300_v32, %v2297_v28  ;;  %v515_v42 = vshrl.u32 %v7265_v17, 16  ;;  %v518_v24 = vshll.u32 %v7265_v17, 16  ;;  %v7298_v28 = vld [vmem:[%s7030_s13 + $0x70] sm:$0xf] }
  0xa7   : > { %v503_v39 = vsel %vm7068_vm3, %v498_v22, %v502_v59  ;;  %v2310_v45 = vrot.slane %v2308_v37, 4  ;;  %v2316_v47 = vrot.slane %v2314_v38, 5  ;;  %v524_v48 = vshll.u32 %v7268_v23, 16  ;;  %v7283_v59 = vld [vmem:[%s7030_s13 + $0x6c] sm:$0xf] }
  0xa8   : > { %v513_v44 = vsel %vm7068_vm3, %v508_v33, %v512_v12  ;;  %v2302_v52 = vrot.slane %v2301_v40, 4  ;;  %v517_v54 = vrot.slane %v515_v42, 4  ;;  %v520_v56 = vrot.slane %v518_v24, 5  ;;  %v312_v38 = vld [vmem:[%s7030_s13 + $0x74] sm:$0x1] }
  0xa9   : > { %v5189_v51 = vcombine.low %v503_v39, %v513_v44  ;;  %v2311_v62 = vor.u32 %v2310_v45, %v2306_v34  ;;  %v526_v63 = vrot.slane %v524_v48, 5  ;;  %v528_v0 = vshrl.u32 %v7268_v23, 16  ;;  %v5439_v40 = vld [vmem:[%s7030_s13 + $0x18] sm:$0xe]  ;;  %v7321_v48 = vld [vmem:[%s7030_s13 + $0x7c] sm:$0xf] }
  0xaa   : > { %v534_v2 = vshll.u32 %v311_v41, 16  ;;  %v2307_v7 = vsel %vm7068_vm3, %v2302_v52, %v2306_v34  ;;  %v521_v9 = vor.u32 %v520_v56, %v517_v54  ;;  %v5454_v10 = vrot.slane %v5438_v50, 9  ;;  %v313_v54 = vld [vmem:[%s7030_s13 + $0x80] sm:$0x1]  ;;  %v5440_v56 = vld [vmem:[%s7030_s13 + $0x24] sm:$0xe] }
  0xab   : > { %5886 = vmatmul.mubr.msk.bf16.gmra.mrb[12].mxu1 %vm756_vm4, %v5189_v51  ;;  %v2872_v12 = vrot.slane %v2870_v57, 4  ;;  %v2312_v16 = vrot.slane %v2311_v62, 4  ;;  %v530_v21 = vrot.slane %v528_v0, 4  ;;  %v539_v32 = vshrl.u32 %v7283_v59, 16 }
  0xac   : > { %v536_v22 = vrot.slane %v534_v2, 5  ;;  %v522_v33 = vrot.slane %v521_v9, 4  ;;  %v2871_v34 = vsel %vm7288_vm7, %v5454_v10, %v2870_v57  ;;  %v542_v39 = vshll.u32 %v7283_v59, 16 }
  0xad   : > { %v2874_v37 = vsel %vm7288_vm7, %v2872_v12, %v2873_v58  ;;  %v2317_v41 = vsel %vm7068_vm3, %v2312_v16, %v2316_v47  ;;  %v531_v42 = vor.u32 %v530_v21, %v526_v63  ;;  %v541_v14 = vrot.slane %v539_v32, 4  ;;  %v7318_v58 = vld [vmem:[%s7030_s13 + $0x78] sm:$0xf]  ;;  %v7342_v12 = vld [vmem:[%s7030_s13 + $0x84] sm:$0xf] }
  0xae   : > { %v5470_v24 = vcombine.low %v2871_v34, %v2874_v37  ;;  %v5413_v44 = vcombine.low %v2307_v7, %v2317_v41  ;;  %v527_v57 = vsel %vm7068_vm3, %v522_v33, %v526_v63  ;;  %v544_v19 = vrot.slane %v542_v39, 5 }
  0xaf   : > { %v548_v45 = vshll.u32 %v7298_v28, 16  ;;  %v532_v50 = vrot.slane %v531_v42, 4  ;;  %v552_v51 = vshrl.u32 %v7298_v28, 16  ;;  %v558_v52 = vshll.u32 %v312_v38, 16  ;;  %v7352_v38 = vld [vmem:[%s7030_s13 + $0x88] sm:$0xf] }
  0xb0   : > { %v5455_v47 = vrot.slane %v5439_v40, 9  ;;  %6022 = vmatmul.mubr.msk.bf16.gmra.mrb[12].mxu0 %vm756_vm4, %v5413_v44  ;;  %v545_v62 = vor.u32 %v544_v19, %v541_v14  ;;  %v2881_v63 = vsel %vm7288_vm7, %v7104_v25, %v2880_v26  ;;  %v3438_v2 = vsel %vm805_vm0, %v7170_v31, 0  ;;  %v5441_v14 = vld [vmem:[%s7030_s13 + $0x30] sm:$0xe]  ;;  %v7356_v44 = vld [vmem:[#allocation5 + $0xe] sm:$0x3] }
  0xb1   : > { %v550_v0 = vrot.slane %v548_v45, 5  ;;  %v537_v7 = vsel %vm7068_vm3, %v532_v50, %v536_v22  ;;  %6043 = vmatprep.mubr.msk.bf16.mxu0 %vm756_vm4, %v5470_v24  ;;  %v554_v9 = vrot.slane %v552_v51, 4  ;;  %v560_v10 = vrot.slane %v558_v52, 5  ;;  %v314_v24 = vld [vmem:[%s7030_s13 + $0x8c] sm:$0x1] }
  0xb2   : > { %v2878_v61 = vsel %vm7288_vm7, %v5455_v47, %v2877_v15  ;;  %v5190_v16 = vcombine.low %v527_v57, %v537_v7  ;;  %v546_v25 = vrot.slane %v545_v62, 4  ;;  %v563_v31 = vshrl.u32 %v7318_v58, 16 }
  0xb3   : > { %v5471_v26 = vcombine.low %v2878_v61, %v2881_v63  ;;  %v555_v21 = vor.u32 %v554_v9, %v550_v0  ;;  %v566_v22 = vshll.u32 %v7318_v58, 16  ;;  %v572_v32 = vshll.u32 %v7321_v48, 16 }
  0xb4   : > { %v576_v60 = vshrl.u32 %v7321_v48, 16  ;;  %5889 = vmatprep.mubr.msk.bf16.mxu1 %vm756_vm4, %v5190_v16  ;;  %v551_v15 = vsel %vm7068_vm3, %v546_v25, %v550_v0  ;;  %v565_v33 = vrot.slane %v563_v31, 4  ;;  %v582_v34 = vshll.u32 %v313_v54, 16 }
  0xb5   : > { %v5456_v37 = vrot.slane %v5440_v56, 9  ;;  %v556_v39 = vrot.slane %v555_v21, 4  ;;  %v568_v40 = vrot.slane %v566_v22, 5  ;;  %v574_v41 = vrot.slane %v572_v32, 5  ;;  %v7382_v32 = vld [vmem:[%s7030_s13 + $0x94] sm:$0xf] }
  0xb6   : > { %v578_v42 = vrot.slane %v576_v60, 4  ;;  %v584_v57 = vrot.slane %v582_v34, 5  ;;  %v2884_v19 = vrot.slane %v7114_v43, 5  ;;  %v2887_v45 = vrot.slane %v7120_v46, 5  ;;  %v7368_v43 = vld [vmem:[%s7030_s13 + $0x90] sm:$0xf] }
  0xb7   : > { %v587_v50 = vshrl.u32 %v7342_v12, 16  ;;  %v561_v51 = vsel %vm7068_vm3, %v556_v39, %v560_v10  ;;  %v569_v52 = vor.u32 %v568_v40, %v565_v33  ;;  %v590_v54 = vshll.u32 %v7342_v12, 16 }
  0xb8   : > { %v579_v47 = vor.u32 %v578_v42, %v574_v41  ;;  %v5191_v56 = vcombine.low %v551_v15, %v561_v51  ;;  %6044 = vmatmul.mubr.msk.bf16.vlgmr.msra.gmra.mrb[0].mxu0 %vm756_vm4, %v5471_v26  ;;  %v2885_v62 = vsel %vm7288_vm7, %v5456_v37, %v2884_v19  ;;  %v2886_v0 = vrot.slane %v2884_v19, 4  ;;  %v315_v37 = vld [vmem:[%s7030_s13 + $0x98] sm:$0x1] }
  0xb9   : > { %v589_v63 = vrot.slane %v587_v50, 4  ;;  %6076 = vmatpush3.bf16.msra.mxu0 %v3438_v2  ;;  %v570_v46 = vrot.slane %v569_v52, 4  ;;  %v592_v9 = vrot.slane %v590_v54, 5  ;;  %v596_v10 = vshll.u32 %v7352_v38, 16  ;;  %v7399_v52 = vld [vmem:[%s7030_s13 + $0x9c] sm:$0xf] }
  0xba   : > { %v580_v7 = vrot.slane %v579_v47, 4  ;;  %5890 = vmatmul.mubr.msk.bf16.gmra.mrb[16].mxu1 %vm756_vm4, %v5191_v56  ;;  %v2888_v61 = vsel %vm7288_vm7, %v2886_v0, %v2887_v45  ;;  %v600_v16 = vshrl.u32 %v7352_v38, 16  ;;  %v606_v25 = vshll.u32 %v314_v24, 16  ;;  %6443 = vmatprep.subr.msk.bf16.mxu0 %vm805_vm0, %v7356_v44  ;;  %v5442_v45 = vld [vmem:[%s7030_s13 + $0x3c] sm:$0xe] }
  0xbb   : > { %v5457_v26 = vrot.slane %v5441_v14, 9  ;;  %v575_v2 = vsel %vm7068_vm3, %v570_v46, %v574_v41  ;;  %v5472_v21 = vcombine.low %v2885_v62, %v2888_v61  ;;  %v593_v22 = vor.u32 %v592_v9, %v589_v63  ;;  %v7402_v0 = vld [vmem:[%s7030_s13 + $0xa0] sm:$0xf] }
  0xbc   : > { %v585_v31 = vsel %vm7068_vm3, %v580_v7, %v584_v57  ;;  %v598_v15 = vrot.slane %v596_v10, 5  ;;  %v602_v33 = vrot.slane %v600_v16, 4  ;;  %v608_v34 = vrot.slane %v606_v25, 5 }
  0xbd   : > { %v5192_v60 = vcombine.low %v575_v2, %v585_v31  ;;  %6047 = vmatprep.mubr.msk.bf16.mxu0 %vm756_vm4, %v5472_v21  ;;  %v594_v39 = vrot.slane %v593_v22, 4  ;;  %v2891_v40 = vrot.slane %v7137_v27, 5  ;;  %v2894_v41 = vrot.slane %v7143_v36, 5 }
  0xbe   : > { %v611_v42 = vshrl.u32 %v7368_v43, 16  ;;  %v603_v24 = vor.u32 %v602_v33, %v598_v15  ;;  %v614_v14 = vshll.u32 %v7368_v43, 16  ;;  %v620_v57 = vshll.u32 %v7382_v32, 16 }
  0xbf   : > { %5893 = vmatprep.mubr.msk.bf16.mxu1 %vm756_vm4, %v5192_v60  ;;  %v624_v19 = vshrl.u32 %v7382_v32, 16  ;;  %v599_v50 = vsel %vm7068_vm3, %v594_v39, %v598_v15  ;;  %v2892_v27 = vsel %vm7288_vm7, %v5457_v26, %v2891_v40  ;;  %v2893_v36 = vrot.slane %v2891_v40, 4  ;;  %v316_v26 = vld [vmem:[%s7030_s13 + $0xa4] sm:$0x1]  ;;  %v5443_v60 = vld [vmem:[%s7030_s13 + $0x48] sm:$0xe] }
  0xc0   : > { %v613_v51 = vrot.slane %v611_v42, 4  ;;  %v604_v47 = vrot.slane %v603_v24, 4  ;;  %v616_v54 = vrot.slane %v614_v14, 5  ;;  %v622_v56 = vrot.slane %v620_v57, 5 }
  0xc1   : > { %v626_v62 = vrot.slane %v624_v19, 4  ;;  %v2895_v63 = vsel %vm7288_vm7, %v2893_v36, %v2894_v41  ;;  %v630_v46 = vshll.u32 %v315_v37, 16  ;;  %v5458_v7 = vrot.slane %v5442_v45, 9  ;;  %v7417_v37 = vld [vmem:[%s7030_s13 + $0xa8] sm:$0xf] }
  0xc2   : > { %v2898_v9 = vrot.slane %v7160_v8, 5  ;;  %v609_v10 = vsel %vm7068_vm3, %v604_v47, %v608_v34  ;;  %v5473_v61 = vcombine.low %v2892_v27, %v2895_v63  ;;  %v617_v16 = vor.u32 %v616_v54, %v613_v51  ;;  %v7430_v19 = vld [vmem:[%s7030_s13 + $0xac] sm:$0xf]  ;;  %v317_v51 = vld [vmem:[%s7030_s13 + $0xb0] sm:$0x1] }
  0xc3   : > { %v627_v25 = vor.u32 %v626_v62, %v622_v56  ;;  %v5193_v2 = vcombine.low %v599_v50, %v609_v10  ;;  %v632_v31 = vrot.slane %v630_v46, 5  ;;  %v2901_v33 = vrot.slane %v7165_v18, 5 }
  0xc4   : > { %v2899_v21 = vsel %vm7288_vm7, %v5458_v7, %v2898_v9  ;;  %v2900_v22 = vrot.slane %v2898_v9, 4  ;;  %6048 = vmatmul.mubr.msk.bf16.gmra.mrb[4].mxu0 %vm756_vm4, %v5473_v61  ;;  %v618_v15 = vrot.slane %v617_v16, 4  ;;  %v635_v34 = vshrl.u32 %v7399_v52, 16 }
  0xc5   : > { %v628_v8 = vrot.slane %v627_v25, 4  ;;  %5894 = vmatmul.mubr.msk.bf16.gmra.mrb[20].mxu1 %vm756_vm4, %v5193_v2  ;;  %v638_v39 = vshll.u32 %v7399_v52, 16  ;;  %v644_v40 = vshll.u32 %v7402_v0, 16  ;;  %v648_v41 = vshrl.u32 %v7402_v0, 16 }
  0xc6   : > { %v654_v42 = vshll.u32 %v316_v26, 16  ;;  %v623_v24 = vsel %vm7068_vm3, %v618_v15, %v622_v56  ;;  %v2902_v14 = vsel %vm7288_vm7, %v2900_v22, %v2901_v33  ;;  %v637_v57 = vrot.slane %v635_v34, 4 }
  0xc7   : > { %v633_v18 = vsel %vm7068_vm3, %v628_v8, %v632_v31  ;;  %v5474_v50 = vcombine.low %v2899_v21, %v2902_v14  ;;  %v640_v27 = vrot.slane %v638_v39, 5  ;;  %v646_v36 = vrot.slane %v644_v40, 5  ;;  %v7449_v40 = vld [vmem:[%s7030_s13 + $0xb4] sm:$0xf]  ;;  %v7455_v14 = vld [vmem:[%s7030_s13 + $0xb8] sm:$0xf] }
  0xc8   : > { %v5194_v45 = vcombine.low %v623_v24, %v633_v18  ;;  %v650_v47 = vrot.slane %v648_v41, 4  ;;  %v656_v54 = vrot.slane %v654_v42, 5  ;;  %v5459_v62 = vrot.slane %v5443_v60, 9 }
  0xc9   : > { %v2905_v56 = vrot.slane %v7188_v3, 5  ;;  %6051 = vmatprep.mubr.msk.bf16.mxu0 %vm756_vm4, %v5474_v50  ;;  %v641_v63 = vor.u32 %v640_v27, %v637_v57  ;;  %v2908_v46 = vrot.slane %v7193_v13, 5  ;;  %v659_v7 = vshrl.u32 %v7417_v37, 16  ;;  %v5444_v3 = vld [vmem:[%s7030_s13 + $0x54] sm:$0xe] }
  0xca   : > { %5897 = vmatprep.mubr.msk.bf16.mxu1 %vm756_vm4, %v5194_v45  ;;  %v662_v9 = vshll.u32 %v7417_v37, 16  ;;  %v651_v10 = vor.u32 %v650_v47, %v646_v36  ;;  %v668_v25 = vshll.u32 %v7430_v19, 16  ;;  %v672_v21 = vshrl.u32 %v7430_v19, 16 }
  0xcb   : > { %v2906_v61 = vsel %vm7288_vm7, %v5459_v62, %v2905_v56  ;;  %v2907_v16 = vrot.slane %v2905_v56, 4  ;;  %v642_v26 = vrot.slane %v641_v63, 4  ;;  %v661_v2 = vrot.slane %v659_v7, 4 }
  0xcc   : > { %v664_v31 = vrot.slane %v662_v9, 5  ;;  %v652_v13 = vrot.slane %v651_v10, 4  ;;  %v670_v60 = vrot.slane %v668_v25, 5  ;;  %v678_v15 = vshll.u32 %v317_v51, 16 }
  0xcd   : > { %v2909_v22 = vsel %vm7288_vm7, %v2907_v16, %v2908_v46  ;;  %v647_v8 = vsel %vm7068_vm3, %v642_v26, %v646_v36  ;;  %v674_v39 = vrot.slane %v672_v21, 4  ;;  %v5460_v24 = vrot.slane %v5444_v3, 9  ;;  %v7460_v36 = vld [vmem:[%s7030_s13 + $0xbc] sm:$0x1]  ;;  %v5445_v46 = vld [vmem:[%s7030_s13 + $0x60] sm:$0xe] }
  0xce   : > { %v5475_v33 = vcombine.low %v2906_v61, %v2909_v22  ;;  %v665_v34 = vor.u32 %v664_v31, %v661_v2  ;;  %v657_v41 = vsel %vm7068_vm3, %v652_v13, %v656_v54  ;;  %v680_v42 = vrot.slane %v678_v15, 5  ;;  %v5446_v16 = vld [vmem:[%s7030_s13 + $0x6c] sm:$0xe]  ;;  %v5383_v31 = vld [vmem:[%s7030_s13 + $0x70] sm:$0xf] }
  0xcf   : > { %v2912_v18 = vrot.slane %v7218_v53, 5  ;;  %v5195_v57 = vcombine.low %v647_v8, %v657_v41  ;;  %v675_v50 = vor.u32 %v674_v39, %v670_v60  ;;  %v2915_v27 = vrot.slane %v7223_v1, 5  ;;  %v5384_v21 = vld [vmem:[%s7030_s13 + $0x74] sm:$0x1] }
  0xd0   : > { %6052 = vmatmul.mubr.msk.bf16.gmra.mrb[8].mxu0 %vm756_vm4, %v5475_v33  ;;  %v666_v45 = vrot.slane %v665_v34, 4  ;;  %v683_v54 = vshrl.u32 %v7449_v40, 16  ;;  %v686_v53 = vshll.u32 %v7449_v40, 16  ;;  %v692_v1 = vshll.u32 %v7455_v14, 16 }
  0xd1   : > { %v2913_v51 = vsel %vm7288_vm7, %v5460_v24, %v2912_v18  ;;  %v2914_v47 = vrot.slane %v2912_v18, 4  ;;  %5898 = vmatmul.mubr.msk.bf16.gmra.mrb[24].mxu1 %vm756_vm4, %v5195_v57  ;;  %v676_v56 = vrot.slane %v675_v50, 4  ;;  %v696_v63 = vshrl.u32 %v7455_v14, 16 }
  0xd2   : > { %v671_v62 = vsel %vm7068_vm3, %v666_v45, %v670_v60  ;;  %v685_v9 = vrot.slane %v683_v54, 4  ;;  %v688_v10 = vrot.slane %v686_v53, 5  ;;  %v702_v61 = vshll.u32 %v7460_v36, 16  ;;  %v6585_v54 = vld [vmem:[%s7030_s13] sm:$0xf] }
  0xd3   : > { %v2916_v7 = vsel %vm7288_vm7, %v2914_v47, %v2915_v27  ;;  %v681_v25 = vsel %vm7068_vm3, %v676_v56, %v680_v42  ;;  %v694_v26 = vrot.slane %v692_v1, 5  ;;  %v698_v2 = vrot.slane %v696_v63, 4  ;;  %v5447_v27 = vld [vmem:[%s7030_s13 + $0x78] sm:$0xe]  ;;  %v7497_v53 = vld [vmem:[%s7030_s13 + $0x4] sm:$0xf] }
  0xd4   : > { %v5476_v3 = vcombine.low %v2913_v51, %v2916_v7  ;;  %v5196_v13 = vcombine.low %v671_v62, %v681_v25  ;;  %v689_v22 = vor.u32 %v688_v10, %v685_v9  ;;  %v704_v60 = vrot.slane %v702_v61, 5  ;;  %v7501_v56 = vld [vmem:[%s7030_s13 + $0x7c] sm:$0xf]  ;;  %v7504_v1 = vld [vmem:[%s7030_s13 + $0x80] sm:$0x1] }
  0xd5   : > { %v5461_v15 = vrot.slane %v5445_v46, 9  ;;  %v699_v8 = vor.u32 %v698_v2, %v694_v26  ;;  %v2919_v33 = vrot.slane %v7251_v55, 5  ;;  %v2922_v34 = vrot.slane %v7259_v5, 5  ;;  %v5448_v63 = vld [vmem:[%s7030_s13 + $0x84] sm:$0xe] }
  0xd6   : > { %6055 = vmatprep.mubr.msk.bf16.mxu0 %vm756_vm4, %v5476_v3  ;;  %v5462_v39 = vrot.slane %v5446_v16, 9  ;;  %5901 = vmatprep.mubr.msk.bf16.mxu1 %vm756_vm4, %v5196_v13  ;;  %v690_v41 = vrot.slane %v689_v22, 4  ;;  %v2926_v42 = vrot.slane %v5383_v31, 5  ;;  %v2929_v24 = vrot.slane %v5384_v21, 5  ;;  %v5389_v10 = vld [vmem:[%s7030_s13 + $0x88] sm:$0xf] }
  0xd7   : > { %v700_v18 = vrot.slane %v699_v8, 4  ;;  %v2920_v57 = vsel %vm7288_vm7, %v5461_v15, %v2919_v33  ;;  %v2921_v45 = vrot.slane %v2919_v33, 4  ;;  %v5214_v62 = vcombine.low %v6585_v54, %v7497_v53  ;;  %v5390_v61 = vld [vmem:[%s7030_s13 + $0x8c] sm:$0x1]  ;;  %v5392_v3 = vld [vmem:[%s7030_s13 + $0x94] sm:$0xf] }
  0xd8   : > { %v695_v55 = vsel %vm7068_vm3, %v690_v41, %v694_v26  ;;  %v2927_v5 = vsel %vm7288_vm7, %v5462_v39, %v2926_v42  ;;  %v2928_v50 = vrot.slane %v2926_v42, 4  ;;  %v5463_v25 = vrot.slane %v5447_v27, 9  ;;  %v5393_v22 = vld [vmem:[%s7030_s13 + $0x98] sm:$0x1]  ;;  %v6587_v39 = vld [vmem:[%s7030_s13 + $0xc] sm:$0xf] }
  0xd9   : > { %v705_v51 = vsel %vm7068_vm3, %v700_v18, %v704_v60  ;;  %v2923_v47 = vsel %vm7288_vm7, %v2921_v45, %v2922_v34  ;;  %v2933_v26 = vrot.slane %v7501_v56, 5  ;;  %v2936_v2 = vrot.slane %v7504_v1, 5  ;;  %v5449_v60 = vld [vmem:[%s7030_s13 + $0x90] sm:$0xe]  ;;  %v5395_v34 = vld [vmem:[%s7030_s13 + $0xa0] sm:$0xf] }
  0xda   : > { %v5197_v46 = vcombine.low %v695_v55, %v705_v51  ;;  %v5477_v7 = vcombine.low %v2920_v57, %v2923_v47  ;;  %v2930_v9 = vsel %vm7288_vm7, %v2928_v50, %v2929_v24  ;;  %v5464_v31 = vrot.slane %v5448_v63, 9  ;;  %v7525_v41 = vld [vmem:[%s7030_s13 + $0x10] sm:$0xf]  ;;  %v5396_v57 = vld [vmem:[%s7030_s13 + $0xa4] sm:$0x1] }
  0xdb   : > { %v5478_v16 = vcombine.low %v2927_v5, %v2930_v9  ;;  %v2940_v21 = vrot.slane %v5389_v10, 5  ;;  %v2943_v13 = vrot.slane %v5390_v61, 5  ;;  %v2934_v15 = vsel %vm7288_vm7, %v5463_v25, %v2933_v26  ;;  %v5450_v45 = vld [vmem:[%s7030_s13 + $0x9c] sm:$0xe]  ;;  %v6589_v5 = vld [vmem:[%s7030_s13 + $0x18] sm:$0xf] }
  0xdc   : > { %5902 = vmatmul.mubr.msk.bf16.gmra.mrb[28].mxu1 %vm756_vm4, %v5197_v46  ;;  %6056 = vmatmul.mubr.msk.bf16.gmra.mrb[12].mxu0 %vm756_vm4, %v5477_v7  ;;  %v2935_v8 = vrot.slane %v2933_v26, 4  ;;  %v2947_v33 = vrot.slane %v5392_v3, 5  ;;  %v5215_v42 = vcombine.low %v6587_v39, %v7525_v41  ;;  %v7536_v50 = vld [vmem:[%s7030_s13 + $0x1c] sm:$0xf]  ;;  %v5465_v51 = vrot.slane %v5449_v60, 9 }
  0xdd   : > { %5907 = vmatprep.mubr.msk.bf16.mxu1 %vm756_vm4, %v5214_v62  ;;  %6059 = vmatprep.mubr.msk.bf16.mxu0 %vm756_vm4, %v5478_v16  ;;  %v2941_v24 = vsel %vm7288_vm7, %v5464_v31, %v2940_v21  ;;  %v2942_v18 = vrot.slane %v2940_v21, 4  ;;  %v5216_v27 = vcombine.low %v6589_v5, %v7536_v50  ;;  %v2950_v47 = vrot.slane %v5393_v22, 5  ;;  %v5398_v7 = vld [vmem:[%s7030_s13 + $0xac] sm:$0xf]  ;;  %v5401_v9 = vld [vmem:[%s7030_s13 + $0xb8] sm:$0xf] }
  0xde   : > { %v2937_v55 = vsel %vm7288_vm7, %v2935_v8, %v2936_v2  ;;  %v2949_v63 = vrot.slane %v2947_v33, 4  ;;  %v2954_v46 = vrot.slane %v5395_v34, 5  ;;  %v1524_v10 = vsel %vm805_vm0, %v7248_v49, 0  ;;  %v7545_v26 = vld [vmem:[#allocation5 + $0x6] sm:$0x3] }
  0xdf   : > { %v5479_v54 = vcombine.low %v2934_v15, %v2937_v55  ;;  %v2944_v62 = vsel %vm7288_vm7, %v2942_v18, %v2943_v13  ;;  %v5466_v16 = vrot.slane %v5450_v45, 9  ;;  %v2957_v25 = vrot.slane %v5396_v57, 5  ;;  %v5399_v31 = vld [vmem:[%s7030_s13 + $0xb0] sm:$0x1]  ;;  %v5451_v60 = vld [vmem:[%s7030_s13 + $0xa8] sm:$0xe] }
  0xe0   : > { %v5480_v61 = vcombine.low %v2941_v24, %v2944_v62  ;;  %v2956_v3 = vrot.slane %v2954_v46, 4  ;;  %v2948_v49 = vsel %vm7288_vm7, %v5465_v51, %v2947_v33  ;;  %v2951_v2 = vsel %vm7288_vm7, %v2949_v63, %v2950_v47  ;;  %v5402_v8 = vld [vmem:[%s7030_s13 + $0xbc] sm:$0x1]  ;;  %v5452_v33 = vld [vmem:[%s7030_s13 + $0xb4] sm:$0xe] }
  0xe1   : > { %v2961_v21 = vrot.slane %v5398_v7, 5  ;;  %v2955_v13 = vsel %vm7288_vm7, %v5466_v16, %v2954_v46  ;;  %v2968_v15 = vrot.slane %v5401_v9, 5  ;;  %v6591_v34 = vld [vmem:[%s7030_s13 + $0x24] sm:$0xf]  ;;  %v7567_v39 = vld [vmem:[%s7030_s13 + $0x28] sm:$0xf]  ;;  %v5481_v24 = vcombine.low %v2948_v49, %v2951_v2 }
  0xe2   : > { %v2958_v22 = vsel %vm7288_vm7, %v2956_v3, %v2957_v25  ;;  %v6593_v18 = vld [vmem:[%s7030_s13 + $0x30] sm:$0xf]  ;;  %v7572_v57 = vld [vmem:[%s7030_s13 + $0x34] sm:$0xf]  ;;  %v5404_v55 = vld [vmem:[%s7030_s13 + $0xc4] sm:$0xf] }
  0xe3   : > { %v5218_v45 = vcombine.low %v6593_v18, %v7572_v57  ;;  %v5482_v5 = vcombine.low %v2955_v13, %v2958_v22  ;;  %v2963_v51 = vrot.slane %v2961_v21, 4  ;;  %v2964_v47 = vrot.slane %v5399_v31, 5  ;;  %v5405_v16 = vld [vmem:[%s7030_s13 + $0xc8] sm:$0x1]  ;;  %v5453_v25 = vld [vmem:[%s7030_s13 + $0xc0] sm:$0xe] }
  0xe4   : > { %5908 = vmatmul.mubr.msk.bf16.vlgmr.msra.gmra.mrb[0].mxu1 %vm756_vm4, %v5215_v42  ;;  %6060 = vmatmul.mubr.msk.bf16.gmra.mrb[16].mxu0 %vm756_vm4, %v5479_v54  ;;  %v5217_v42 = vcombine.low %v6591_v34, %v7567_v39  ;;  %v5468_v54 = vrot.slane %v5452_v33, 9  ;;  %v2970_v62 = vrot.slane %v2968_v15, 4  ;;  %v2971_v63 = vrot.slane %v5402_v8, 5  ;;  %v6595_v3 = vld [vmem:[%s7030_s13 + $0x3c] sm:$0xf] }
  0xe5   : > { %5940 = vmatpush3.bf16.msra.mxu1 %v1524_v10  ;;  %5911 = vmatprep.mubr.msk.bf16.mxu1 %vm756_vm4, %v5216_v27  ;;  %v5467_v27 = vrot.slane %v5451_v60, 9  ;;  %v2965_v7 = vsel %vm7288_vm7, %v2963_v51, %v2964_v47  ;;  %v2975_v9 = vrot.slane %v5404_v55, 5  ;;  %v7592_v49 = vld [vmem:[%s7030_s13 + $0x40] sm:$0xf]  ;;  %v5469_v22 = vrot.slane %v5453_v25, 9  ;;  %v6548_v25 = vld [vmem:[%s7030_s13 + $0x24] sm:$0xff]  }
  0xe6   : > { %6063 = vmatprep.mubr.msk.bf16.mxu0 %vm756_vm4, %v5480_v61  ;;  %6438 = vmatprep.subr.msk.bf16.mxu1 %vm805_vm0, %v7545_v26  ;;  %v2969_v10 = vsel %vm7288_vm7, %v5468_v54, %v2968_v15  ;;  %v2972_v61 = vsel %vm7288_vm7, %v2970_v62, %v2971_v63  ;;  %v5219_v2 = vcombine.low %v6595_v3, %v7592_v49  ;;  %v2978_v8 = vrot.slane %v5405_v16, 5  ;;  %v1263_v51 = vld [vmem:[%s7030_s13 + $0xc] sm:$0xe]  ;;  %v7621_v47 = vld [vmem:[%s7030_s13 + $0x8] sm:$0x1] }
  0xe7   : > { %v2962_v46 = vsel %vm7288_vm7, %v5467_v27, %v2961_v21  ;;  %v5220_v21 = vcombine.low %v7196_v11, %v7204_v35  ;;  %v5484_v13 = vcombine.low %v2969_v10, %v2972_v61  ;;  %v2977_v60 = vrot.slane %v2975_v9, 4  ;;  %v1264_v63 = vld [vmem:[%s7030_s13 + $0x18] sm:$0xe]  ;;  %v1265_v61 = vld [vmem:[%s7030_s13 + $0x24] sm:$0xe] }
  0xe8   : > { %v5483_v31 = vcombine.low %v2962_v46, %v2965_v7  ;;  %v2352_v15 = vshll.u32 %v7501_v56, 16  ;;  %v2356_v33 = vshrl.u32 %v7501_v56, 16  ;;  %v2976_v11 = vsel %vm7288_vm7, %v5469_v22, %v2975_v9  ;;  %v1266_v16 = vld [vmem:[%s7030_s13 + $0x30] sm:$0xe] }
  0xe9   : > { %v2979_v35 = vsel %vm7288_vm7, %v2977_v60, %v2978_v8  ;;  %v5222_v18 = vcombine.low %v7265_v17, %v7268_v23  ;;  %v1322_v27 = vrot.slane %v7525_v41, 5  ;;  %v1262_v23 = vld [vmem:[%s7030_s13] sm:$0xe]  ;;  %v5223_v54 = vcombine.low %v7283_v59, %v7298_v28 }
  0xea   : > { %v7607_v34 = vrot.slane %v2352_v15, 5  ;;  %v2358_v56 = vrot.slane %v2356_v33, 4  ;;  %v1315_v62 = vrot.slane %v7497_v53, 5  ;;  %v4164_v46 = vsel %vm805_vm0, %v7356_v44, 0  ;;  %v1267_v44 = vld [vmem:[%s7030_s13 + $0x3c] sm:$0xe] }
  0xeb   : > { %v5247_v7 = vrot.slane %v1263_v51, 9  ;;  %v1324_v9 = vrot.slane %v1322_v27, 4  ;;  %v1329_v10 = vrot.slane %v7536_v50, 5  ;;  %v5224_v3 = vcombine.low %v7318_v58, %v7321_v48  ;;  %v6550_v53 = vld [vmem:[%s7030_s13 + $0x30] sm:$0xff]   ;;  %v7654_v58 = vld [vmem:[#allocation5 + $0x10] sm:$0x3] }
  0xec   : > { %5912 = vmatmul.mubr.msk.bf16.gmra.mrb[4].mxu1 %vm756_vm4, %v5217_v42  ;;  %6064 = vmatmul.mubr.msk.bf16.gmra.mrb[20].mxu0 %vm756_vm4, %v5481_v24  ;;  %8951 = vst [vmem:[#allocation16_spill] sm:$0xff] %v7607_v34  ;;  %v5221_v42 = vcombine.low %v7229_v20, %v7235_v29  ;;  %v5485_v24 = vcombine.low %v2976_v11, %v2979_v35  ;;  %v1318_v20 = vrot.slane %v7621_v47, 5  ;;  %v6598_v29 = vld [vmem:[%s7030_s13 + $0x14] sm:$0x1]  ;;  %v1336_v28 = vrot.slane %v7567_v39, 5 }
  0xed   : > { %5915 = vmatprep.mubr.msk.bf16.mxu1 %vm756_vm4, %v5218_v45  ;;  %6067 = vmatprep.mubr.msk.bf16.mxu0 %vm756_vm4, %v5482_v5  ;;  %v6546_v45 = vld [vmem:[%s7030_s13 + $0x18] sm:$0xff]   ;;  %v2359_v55 = vor.u32 %v2358_v56, %v7607_v34  ;;  %v2362_v5 = vshll.u32 %v7504_v1, 16  ;;  %v1325_v17 = vrot.slane %v6598_v29, 5  ;;  %v5226_v59 = vcombine.low %v7368_v43, %v7382_v32  ;;  %v6599_v33 = vld [vmem:[%s7030_s13 + $0x20] sm:$0x1] }
  0xee   : > { %v1317_v60 = vrot.slane %v1315_v62, 4  ;;  %v1350_v39 = vrot.slane %v7592_v49, 5  ;;  %v7663_v8 = vsel %vm7288_vm7, %v5247_v7, %v1322_v27  ;;  %v1332_v11 = vrot.slane %v6599_v33, 5  ;;  %v6600_v56 = vld [vmem:[%s7030_s13 + $0x2c] sm:$0x1] }
  0xef   : > { %v7628_v1 = vrot.slane %v2359_v55, 4  ;;  %v7630_v41 = vrot.slane %v2362_v5, 5  ;;  %v7667_v15 = vsel %vm7288_vm7, %v1324_v9, %v1325_v17  ;;  %v5249_v49 = vrot.slane %v1265_v61, 9  ;;  %v1268_v27 = vld [vmem:[%s7030_s13 + $0x48] sm:$0xe]  ;;  %v6552_v17 = vld [vmem:[%s7030_s13 + $0x3c] sm:$0xff]  }
  0xf0   : > { %v1338_v35 = vrot.slane %v1336_v28, 4  ;;  %v5251_v5 = vrot.slane %v1267_v44, 9  ;;  %v6602_v51 = vld [vmem:[%s7030_s13 + $0x4c] sm:$0xf]  ;;  %v7694_v9 = vsel %vm7288_vm7, %v1317_v60, %v1318_v20  ;;  %v5252_v44 = vrot.slane %v1268_v27, 9 }
  0xf1   : > { %8952 = vst [vmem:[#allocation17_spill] sm:$0xff] %v7628_v1  ;;  %8953 = vst [vmem:[#allocation18_spill] sm:$0xff] %v7630_v41  ;;  %v1357_v29 = vrot.slane %v6602_v51, 5  ;;  %v7711_v47 = vsel %vm7288_vm7, %v5249_v49, %v1336_v28  ;;  %v6604_v60 = vld [vmem:[%s7030_s13 + $0x50] sm:$0x1] }
  0xf2   : > { %v6606_v51 = vld [vmem:[%s7030_s13 + $0x5c] sm:$0x1]  ;;  %v5568_v43 = vld [vmem:[%s7030_s13 + $0x20] sm:$0x1]  ;;  %v5570_v32 = vld [vmem:[%s7030_s13 + $0x28] sm:$0xf] }
  0xf3   : > { %v1359_v28 = vrot.slane %v1357_v29, 4  ;;  %v7971_v34 = vld [vmem:[%s7030_s13 + $0x64] sm:$0xf] }
  0xf4   : > { %5916 = vmatmul.mubr.msk.bf16.gmra.mrb[8].mxu1 %vm756_vm4, %v5219_v2  ;;  %6068 = vmatmul.mubr.msk.bf16.gmra.mrb[24].mxu0 %vm756_vm4, %v5483_v31  ;;  %v5225_v2 = vcombine.low %v7342_v12, %v7352_v38  ;;  %v5246_v31 = vrot.slane %v1262_v23, 9  ;;  %v5569_v12 = vld [vmem:[%s7030_s13 + $0x24] sm:$0xf]  ;;  %8966 = vst [vmem:[#allocation25_spill] sm:$0xff] %v7971_v34 }
  0xf5   : > { %5919 = vmatprep.mubr.msk.bf16.mxu1 %vm756_vm4, %v5220_v21  ;;  %6071 = vmatprep.mubr.msk.bf16.mxu0 %vm756_vm4, %v5484_v13  ;;  %v5248_v21 = vrot.slane %v1264_v63, 9  ;;  %v1343_v13 = vrot.slane %v7572_v57, 5  ;;  %v1331_v57 = vrot.slane %v1329_v10, 4  ;;  %v1352_v63 = vrot.slane %v1350_v39, 4 }
  0xf6   : > { %v7681_v23 = vsel %vm7288_vm7, %v5246_v31, %v1315_v62 }
  0xf7   : > { %v7704_v61 = vsel %vm7288_vm7, %v1331_v57, %v1332_v11  ;;  %v1360_v57 = vrot.slane %v6604_v60, 5  ;;  %v3709_v60 = vshll.u32 %v5569_v12, 16 }
  0xf9   : > { %v3711_v50 = vrot.slane %v3709_v60, 5  ;;  %v7828_v60 = vld [vmem:[%s7030_s13 + $0x38] sm:$0x1] }
  0xfa   : > { %8957 = vst [vmem:[#allocation20_spill] sm:$0xff] %v7828_v60 }
  0xfc   : > { %5920 = vmatmul.mubr.msk.bf16.gmra.mrb[12].mxu1 %vm756_vm4, %v5221_v42  ;;  %6072 = vmatmul.mubr.msk.bf16.gmra.mrb[28].mxu0 %vm756_vm4, %v5485_v24  ;;  %v1339_v42 = vrot.slane %v6600_v56, 5  ;;  %v5250_v24 = vrot.slane %v1266_v16, 9  ;;  %v1269_v16 = vld [vmem:[%s7030_s13 + $0x54] sm:$0xe] }
  0xfd   : > { %5923 = vmatprep.mubr.msk.bf16.mxu1 %vm756_vm4, %v5222_v18  ;;  %6077 = vmatprep.mubr.msk.bf16.mxu0 %vm756_vm4, %v6546_v45  ;;  %v1345_v18 = vrot.slane %v1343_v13, 4  ;;  %v6601_v45 = vld [vmem:[%s7030_s13 + $0x38] sm:$0x1] }
  0xfe   : > { %v1346_v55 = vrot.slane %v6601_v45, 5  ;;  %v7715_v20 = vsel %vm7288_vm7, %v1338_v35, %v1339_v42  ;;  %v3715_v45 = vshll.u32 %v5570_v32, 16 }
 0x100   : > { %v7724_v31 = vsel %vm7288_vm7, %v1345_v18, %v1346_v55  ;;  %v7753_v55 = vsel %vm7288_vm7, %v5252_v44, %v1357_v29  ;;  %v1367_v29 = vrot.slane %v6606_v51, 5  ;;  %v1271_v51 = vld [vmem:[%s7030_s13 + $0x6c] sm:$0xe]  ;;  %v6558_v18 = vld [vmem:[%s7030_s13 + $0x60] sm:$0xff]  }
 0x104   : > { %5924 = vmatmul.mubr.msk.bf16.gmra.mrb[16].mxu1 %vm756_vm4, %v5223_v54  ;;  %6078 = vmatmul.mubr.msk.bf16.vlgmr.msra.gmra.mrb[0].mxu0 %vm756_vm4, %v6548_v25  ;;  %v7685_v54 = vsel %vm805_vm0, %v7545_v26, 0  ;;  %v7700_v26 = vsel %vm7288_vm7, %v5248_v21, %v1329_v10  ;;  %v5566_v25 = vld [vmem:[%s7030_s13 + $0x18] sm:$0xf]  ;;  %v7719_v10 = vsel %vm7288_vm7, %v5250_v24, %v1343_v13  ;;  %v7728_v21 = vsel %vm7288_vm7, %v5251_v5, %v1350_v39  ;;  %v7740_v39 = vld [vmem:[%s7030_s13 + $0x60] sm:$0xe] }
 0x105   : > { %6110 = vmatpush3.bf16.msra.mxu0 %v4164_v46  ;;  %5927 = vmatprep.mubr.msk.bf16.mxu1 %vm756_vm4, %v5224_v3  ;;  %v6603_v46 = vld [vmem:[%s7030_s13 + $0x44] sm:$0x1]  ;;  %v6554_v3 = vld [vmem:[%s7030_s13 + $0x48] sm:$0xff]   ;;  %v5253_v13 = vrot.slane %v1269_v16, 9  ;;  %v3682_v11 = vshrl.u32 %v5566_v25, 16  ;;  %v3685_v49 = vshll.u32 %v5566_v25, 16  ;;  %v8969_v4 = vcombine.low %v7719_v10, %v7724_v31 }
 0x106   : > { %6081 = vmatprep.mubr.msk.bf16.mxu0 %vm756_vm4, %v6550_v53  ;;  %v1353_v7 = vrot.slane %v6603_v46, 5  ;;  %6444 = vmatprep.subr.msk.bf16.mxu0 %vm805_vm0, %v7654_v58  ;;  %v5567_v53 = vld [vmem:[%s7030_s13 + $0x1c] sm:$0xf]  ;;  %v6605_v5 = vld [vmem:[%s7030_s13 + $0x58] sm:$0xf] }
 0x107   : > { %v3691_v42 = vshll.u32 %v5567_v53, 16  ;;  %v3695_v24 = vshrl.u32 %v5567_v53, 16  ;;  %v1364_v27 = vrot.slane %v6605_v5, 5  ;;  %v6556_v46 = vld [vmem:[%s7030_s13 + $0x54] sm:$0xff]   ;;  %v3684_v16 = vrot.slane %v3682_v11, 4 }
 0x108   : > { %v7733_v33 = vsel %vm7288_vm7, %v1352_v63, %v1353_v7  ;;  %v5254_v7 = vrot.slane %v7740_v39, 9  ;;  %v3687_v25 = vrot.slane %v3685_v49, 5  ;;  %v6609_v39 = vld [vmem:[%s7030_s13 + $0x68] sm:$0x1] }
 0x109   : > { %v7779_v44 = vrot.slane %v3691_v42, 5  ;;  %v3697_v53 = vrot.slane %v3695_v24, 4  ;;  %v1366_v5 = vrot.slane %v1364_v27, 4  ;;  %v1374_v11 = vrot.slane %v6609_v39, 5  ;;  %v6610_v39 = vld [vmem:[%s7030_s13 + $0x74] sm:$0x1] }
 0x10a   : > { %v3688_v35 = vor.u32 %v3687_v25, %v3684_v16  ;;  %v3701_v42 = vshll.u32 %v5568_v43, 16  ;;  %v7793_v16 = vrot.slane %v3715_v45, 5  ;;  %v8955_v25 = vcombine.low %v7417_v37, %v7430_v19  ;;  %v7809_v45 = vld [vmem:[%s7030_s13 + $0x2c] sm:$0x1] }
 0x10b   : > { %8956 = vst [vmem:[#allocation19_spill] sm:$0xff] %v7809_v45 }
 0x10c   : > { %5928 = vmatmul.mubr.msk.bf16.gmra.mrb[20].mxu1 %vm756_vm4, %v5225_v2  ;;  %6082 = vmatmul.mubr.msk.bf16.gmra.mrb[4].mxu0 %vm756_vm4, %v6552_v17  ;;  %v7766_v2 = vsel %vm7288_vm7, %v1359_v28, %v1360_v57  ;;  %v6607_v17 = vld [vmem:[%s7030_s13 + $0x64] sm:$0xf]  ;;  %v3706_v28 = vshrl.u32 %v5569_v12, 16  ;;  %v5573_v57 = vld [vmem:[%s7030_s13 + $0x34] sm:$0xf]  ;;  %v3698_v12 = vor.u32 %v3697_v53, %v7779_v44 }
 0x10d   : > { %5931 = vmatprep.mubr.msk.bf16.mxu1 %vm756_vm4, %v5226_v59  ;;  %6085 = vmatprep.mubr.msk.bf16.mxu0 %vm756_vm4, %v6554_v3  ;;  %v1371_v63 = vrot.slane %v6607_v17, 5  ;;  %v7775_v59 = vsel %vm7288_vm7, %v5253_v13, %v1364_v27  ;;  %v5572_v3 = vld [vmem:[%s7030_s13 + $0x30] sm:$0xf]  ;;  %v3719_v13 = vshrl.u32 %v5570_v32, 16  ;;  %v3739_v22 = vshll.u32 %v5573_v57, 16 }
 0x10e   : > { %v6608_v17 = vld [vmem:[%s7030_s13 + $0x70] sm:$0xf]  ;;  %v3730_v62 = vshrl.u32 %v5572_v3, 16  ;;  %v3733_v49 = vshll.u32 %v5572_v3, 16  ;;  %v3743_v24 = vshrl.u32 %v5573_v57, 16  ;;  %v5255_v27 = vrot.slane %v1271_v51, 9 }
 0x10f   : > { %v1378_v38 = vrot.slane %v6608_v17, 5  ;;  %v1373_v56 = vrot.slane %v1371_v63, 4  ;;  %v3708_v48 = vrot.slane %v3706_v28, 4  ;;  %v8954_v32 = vcombine.low %v7399_v52, %v7402_v0  ;;  %v6611_v51 = vld [vmem:[%s7030_s13 + $0x7c] sm:$0xf] }
 0x110   : > { %v1381_v3 = vrot.slane %v6610_v39, 5  ;;  %v3721_v43 = vrot.slane %v3719_v13, 4  ;;  %v7802_v52 = vsel %vm7288_vm7, %v1366_v5, %v1367_v29  ;;  %v7806_v0 = vsel %vm7288_vm7, %v5254_v7, %v1371_v63  ;;  %v1272_v5 = vld [vmem:[%s7030_s13 + $0x78] sm:$0xe]  ;;  %v5575_v39 = vld [vmem:[%s7030_s13 + $0x3c] sm:$0xf] }
 0x111   : > { %v1380_v17 = vrot.slane %v1378_v38, 4  ;;  %v3735_v37 = vrot.slane %v3733_v49, 5  ;;  %v7813_v19 = vsel %vm7288_vm7, %v1373_v56, %v1374_v11  ;;  %v7817_v53 = vrot.slane %v3739_v22, 5  ;;  %v6560_v56 = vld [vmem:[%s7030_s13 + $0x6c] sm:$0xff]  }
 0x112   : > { %v3745_v29 = vrot.slane %v3743_v24, 4  ;;  %v7819_v28 = vrot.slane %v3698_v12, 4  ;;  %v7821_v63 = vrot.slane %v3701_v42, 5  ;;  %v7825_v7 = vsel %vm7288_vm7, %v5255_v27, %v1378_v38  ;;  %v6561_v38 = vld [vmem:[%s7030_s13 + $0x78] sm:$0xff]   ;;  %v1273_v27 = vld [vmem:[%s7030_s13 + $0x84] sm:$0xe] }
 0x113   : > { %v3722_v22 = vor.u32 %v3721_v43, %v7793_v16  ;;  %v3725_v57 = vshll.u32 %v7809_v45, 16  ;;  %v1385_v13 = vrot.slane %v6611_v51, 5  ;;  %v3749_v12 = vshll.u32 %v7828_v60, 16  ;;  %v6613_v51 = vld [vmem:[%s7030_s13 + $0x80] sm:$0x1] }
 0x114   : > { %5932 = vmatmul.mubr.msk.bf16.gmra.mrb[24].mxu1 %vm756_vm4, %v8954_v32  ;;  %6086 = vmatmul.mubr.msk.bf16.gmra.mrb[8].mxu0 %vm756_vm4, %v6556_v46  ;;  %v3732_v46 = vrot.slane %v3730_v62, 4  ;;  %v3712_v62 = vor.u32 %v3711_v50, %v3708_v48  ;;  %v3746_v24 = vor.u32 %v3745_v29, %v7817_v53  ;;  %v6612_v32 = vld [vmem:[%s7030_s13 + $0x88] sm:$0xf]  ;;  %v6614_v43 = vld [vmem:[%s7030_s13 + $0x8c] sm:$0x1] }
 0x115   : > { %5935 = vmatprep.mubr.msk.bf16.mxu1 %vm756_vm4, %v8955_v25  ;;  %6089 = vmatprep.mubr.msk.bf16.mxu0 %vm756_vm4, %v6558_v18  ;;  %v7815_v18 = vrot.slane %v3688_v35, 4  ;;  %v7833_v35 = vsel %vm7288_vm7, %v1380_v17, %v1381_v3  ;;  %v1392_v17 = vrot.slane %v6612_v32, 5  ;;  %v3704_v3 = vsel %vm7068_vm3, %v7819_v28, %v7821_v63  ;;  %v7868_v28 = vld [vmem:[%s7030_s13 + $0x40] sm:$0xf] }
 0x116   : > { %v3736_v49 = vor.u32 %v3735_v37, %v3732_v46  ;;  %v3713_v25 = vrot.slane %v3712_v62, 4  ;;  %v8958_v46 = vcombine.low %v7449_v40, %v7455_v14  ;;  %v3723_v37 = vrot.slane %v3722_v22, 4  ;;  %8959 = vst [vmem:[#allocation21_spill] sm:$0xff] %v7868_v28 }
 0x117   : > { %v3694_v42 = vsel %vm7068_vm3, %v7815_v18, %v7779_v44  ;;  %v5256_v44 = vrot.slane %v1272_v5, 9  ;;  %v3727_v18 = vrot.slane %v3725_v57, 5  ;;  %v1387_v29 = vrot.slane %v1385_v13, 4  ;;  %v5578_v5 = vld [vmem:[%s7030_s13 + $0x48] sm:$0xf] }
 0x118   : > { %v1388_v32 = vrot.slane %v6613_v51, 5  ;;  %v8960_v63 = vcombine.low %v7681_v23, %v7694_v9  ;;  %v3737_v40 = vrot.slane %v3736_v49, 4  ;;  %v5257_v62 = vrot.slane %v1273_v27, 9  ;;  %v7887_v27 = vld [vmem:[%s7030_s13 + $0x4c] sm:$0xf] }
 0x119   : > { %v3757_v22 = vshll.u32 %v5575_v39, 16  ;;  %v3747_v57 = vrot.slane %v3746_v24, 4  ;;  %v1394_v51 = vrot.slane %v1392_v17, 4  ;;  %v1395_v11 = vrot.slane %v6614_v43, 5  ;;  %v6562_v24 = vld [vmem:[%s7030_s13 + $0x84] sm:$0xff]  }
 0x11a   : > { %v3718_v23 = vsel %vm7068_vm3, %v3713_v25, %v7793_v16  ;;  %v7882_v9 = vsel %vm7288_vm7, %v5256_v44, %v1385_v13  ;;  %v3767_v49 = vshrl.u32 %v7868_v28, 16  ;;  %v3778_v43 = vshrl.u32 %v5578_v5, 16  ;;  %v7904_v44 = vld [vmem:[%s7030_s13 + $0x44] sm:$0x1] }
 0x11b   : > { %v3781_v16 = vshll.u32 %v5578_v5, 16  ;;  %v3742_v13 = vsel %vm7068_vm3, %v3737_v40, %v7817_v53  ;;  %v7901_v25 = vsel %vm7288_vm7, %v5257_v62, %v1392_v17  ;;  %8961 = vst [vmem:[#allocation22_spill] sm:$0xff] %v7904_v44  ;;  %v3759_v48 = vrot.slane %v3757_v22, 5  ;;  %v5581_v22 = vld [vmem:[%s7030_s13 + $0x54] sm:$0xf] }
 0x11c   : > { %5936 = vmatmul.mubr.msk.bf16.gmra.mrb[28].mxu1 %vm756_vm4, %v8958_v46  ;;  %6090 = vmatmul.mubr.msk.bf16.gmra.mrb[12].mxu0 %vm756_vm4, %v6560_v56  ;;  %v3754_v56 = vshrl.u32 %v5575_v39, 16  ;;  %v3751_v46 = vrot.slane %v3749_v12, 5  ;;  %v3728_v12 = vsel %vm7068_vm3, %v3723_v37, %v3727_v18  ;;  %v7894_v39 = vsel %vm7288_vm7, %v1387_v29, %v1388_v32  ;;  %v6563_v37 = vld [vmem:[%s7030_s13 + $0x90] sm:$0xff]  }
 0x11d   : > { %5941 = vmatprep.mubr.msk.bf16.mxu1 %vm756_vm4, %v8960_v63  ;;  %6093 = vmatprep.mubr.msk.bf16.mxu0 %vm756_vm4, %v6561_v38  ;;  %v3763_v38 = vshll.u32 %v7868_v28, 16  ;;  %v7911_v29 = vsel %vm7288_vm7, %v1394_v51, %v1395_v11  ;;  %v3787_v32 = vshll.u32 %v7887_v27, 16  ;;  %v3791_v53 = vshrl.u32 %v7887_v27, 16  ;;  %v1275_v11 = vld [vmem:[%s7030_s13 + $0x9c] sm:$0xe] }
 0x11e   : > { %v3756_v63 = vrot.slane %v3754_v56, 4  ;;  %v3752_v18 = vsel %vm7068_vm3, %v3747_v57, %v3751_v46  ;;  %v7915_v40 = vcombine.low %v3694_v42, %v3704_v3  ;;  %v7917_v17 = vcombine.low %v3718_v23, %v3728_v12  ;;  %v7931_v46 = vld [vmem:[%s7030_s13 + $0x58] sm:$0xf] }
 0x11f   : > { %v7919_v62 = vrot.slane %v3763_v38, 5  ;;  %v3769_v56 = vrot.slane %v3767_v49, 4  ;;  %v8962_v5 = vcombine.low %v7663_v8, %v7667_v15  ;;  %v3773_v42 = vshll.u32 %v7904_v44, 16  ;;  %8963 = vst [vmem:[#allocation23_spill] sm:$0xff] %v7931_v46  ;;  %v1274_v49 = vld [vmem:[%s7030_s13 + $0x90] sm:$0xe] }
 0x120   : > { %v3780_v3 = vrot.slane %v3778_v43, 4  ;;  %v3783_v57 = vrot.slane %v3781_v16, 5  ;;  %v8964_v51 = vcombine.low %v7700_v26, %v7704_v61  ;;  %v7940_v8 = vsel %vm805_vm0, %v7654_v58, 0  ;;  %v5584_v58 = vld [vmem:[%s7030_s13 + $0x60] sm:$0xf] }
 0x121   : > { %v7942_v15 = vcombine.low %v3742_v13, %v3752_v18  ;;  %v3760_v38 = vor.u32 %v3759_v48, %v3756_v63  ;;  %v3793_v26 = vrot.slane %v3791_v53, 4  ;;  %v3802_v61 = vshrl.u32 %v5581_v22, 16  ;;  %v6615_v12 = vld [vmem:[#allocation5 + $0x8] sm:$0x3]  ;;  %v6616_v48 = vld [vmem:[%s7030_s13 + $0x94] sm:$0xf] }
 0x122   : > { %v3770_v43 = vor.u32 %v3769_v56, %v7919_v62  ;;  %v1399_v16 = vrot.slane %v6616_v48, 5  ;;  %v7955_v13 = vld [vmem:[%s7030_s13 + $0x50] sm:$0x1]  ;;  %v3811_v63 = vshll.u32 %v7931_v46, 16  ;;  %v6564_v18 = vld [vmem:[%s7030_s13 + $0x9c] sm:$0xff]   ;;  %v7961_v53 = vrot.slane %v3773_v42, 5 }
 0x123   : > { %8965 = vst [vmem:[#allocation24_spill] sm:$0xff] %v7955_v13  ;;  %v7964_v56 = vrot.slane %v3760_v38, 4  ;;  %v6618_v23 = vld [vmem:[%s7030_s13 + $0x98] sm:$0x1]  ;;  %v3826_v50 = vshrl.u32 %v5584_v58, 16  ;;  %v3829_v44 = vshll.u32 %v5584_v58, 16 }
 0x124   : > { %5942 = vmatmul.mubr.msk.bf16.vlgmr.msra.gmra.mrb[0].mxu1 %vm756_vm4, %v8962_v5  ;;  %6094 = vmatmul.mubr.msk.bf16.gmra.mrb[16].mxu0 %vm756_vm4, %v6562_v24  ;;  %v3805_v24 = vshll.u32 %v5581_v22, 16  ;;  %v5258_v22 = vrot.slane %v1274_v49, 9  ;;  %v3784_v5 = vor.u32 %v3783_v57, %v3780_v3  ;;  %v1402_v48 = vrot.slane %v6618_v23, 5  ;;  %v7974_v49 = vld [vmem:[%s7030_s13 + $0x5c] sm:$0x1] }
 0x125   : > { %5974 = vmatpush3.bf16.msra.mxu1 %v7685_v54  ;;  %5945 = vmatprep.mubr.msk.bf16.mxu1 %vm756_vm4, %v8964_v51  ;;  %v7948_v54 = vrot.slane %v3787_v32, 5  ;;  %v6565_v32 = vld [vmem:[%s7030_s13 + $0xa8] sm:$0xff]   ;;  %v6617_v51 = vld [vmem:[%s7030_s13 + $0xa0] sm:$0xf]  ;;  %v3797_v60 = vshll.u32 %v7955_v13, 16  ;;  %v3804_v45 = vrot.slane %v3802_v61, 4  ;;  %v8968_v23 = vcombine.low %v7711_v47, %v7715_v20 }
 0x126   : > { %6097 = vmatprep.mubr.msk.bf16.mxu0 %vm756_vm4, %v6563_v37  ;;  %6440 = vmatprep.subr.msk.bf16.mxu1 %vm805_vm0, %v6615_v12  ;;  %v3815_v37 = vshrl.u32 %v7931_v46, 16  ;;  %v1406_v12 = vrot.slane %v6617_v51, 5  ;;  %v3807_v42 = vrot.slane %v3805_v24, 5  ;;  %v3771_v3 = vrot.slane %v3770_v43, 4  ;;  %8967 = vst [vmem:[#allocation26_spill] sm:$0xff] %v7974_v49 }
 0x127   : > { %v3794_v28 = vor.u32 %v3793_v26, %v7948_v54  ;;  %v1401_v57 = vrot.slane %v1399_v16, 4  ;;  %v7976_v38 = vrot.slane %v3811_v63, 5  ;;  %v3785_v26 = vrot.slane %v3784_v5, 4  ;;  %v6619_v24 = vld [vmem:[%s7030_s13 + $0xa4] sm:$0x1] }
 0x128   : > { %v3817_v51 = vrot.slane %v3815_v37, 4  ;;  %v5259_v58 = vrot.slane %v1275_v11, 9  ;;  %v1408_v61 = vrot.slane %v1406_v12, 4  ;;  %v1409_v43 = vrot.slane %v6619_v24, 5 }
 0x129   : > { %v3828_v47 = vrot.slane %v3826_v50, 4  ;;  %v3831_v20 = vrot.slane %v3829_v44, 5  ;;  %v3835_v63 = vshll.u32 %v7971_v34, 16  ;;  %v3839_v37 = vshrl.u32 %v7971_v34, 16  ;;  %v1276_v50 = vld [vmem:[%s7030_s13 + $0xa8] sm:$0xe] }
 0x12a   : > { %v3795_v11 = vrot.slane %v3794_v28, 4  ;;  %v3808_v5 = vor.u32 %v3807_v42, %v3804_v45  ;;  %v7998_v10 = vsel %vm7288_vm7, %v5258_v22, %v1399_v16  ;;  %v3818_v31 = vor.u32 %v3817_v51, %v7976_v38  ;;  %v6620_v44 = vld [vmem:[%s7030_s13 + $0xac] sm:$0xf]  ;;  %v8019_v22 = vld [vmem:[%s7030_s13 + $0x68] sm:$0x1] }
 0x12b   : > { %v1413_v28 = vrot.slane %v6620_v44, 5  ;;  %v3776_v45 = vsel %vm7068_vm3, %v3771_v3, %v7961_v53  ;;  %v8016_v16 = vsel %vm7288_vm7, %v5259_v58, %v1406_v12  ;;  %8971 = vst [vmem:[#allocation28_spill] sm:$0xff] %v8019_v22  ;;  %v8024_v42 = vsel %vm7288_vm7, %v1408_v61, %v1409_v43  ;;  %v1277_v58 = vld [vmem:[%s7030_s13 + $0xb4] sm:$0xe]  ;;  %v6621_v61 = vld [vmem:[%s7030_s13 + $0xb0] sm:$0x1] }
 0x12c   : > { %5946 = vmatmul.mubr.msk.bf16.gmra.mrb[4].mxu1 %vm756_vm4, %v8968_v23  ;;  %6098 = vmatmul.mubr.msk.bf16.gmra.mrb[20].mxu0 %vm756_vm4, %v6564_v18  ;;  %v3799_v18 = vrot.slane %v3797_v60, 5  ;;  %v3821_v23 = vshll.u32 %v7974_v49, 16  ;;  %v8009_v60 = vsel %vm7288_vm7, %v1401_v57, %v1402_v48  ;;  %8970 = vst [vmem:[#allocation27_spill] sm:$0xff] %v8016_v16  ;;  %8972 = vst [vmem:[#allocation29_spill] sm:$0xff] %v8024_v42  ;;  %v8026_v3 = vrot.slane %v3835_v63, 5 }
 0x12d   : > { %5949 = vmatprep.mubr.msk.bf16.mxu1 %vm756_vm4, %v8969_v4  ;;  %6101 = vmatprep.mubr.msk.bf16.mxu0 %vm756_vm4, %v6565_v32  ;;  %v3766_v4 = vsel %vm7068_vm3, %v7964_v56, %v7919_v62  ;;  %v6566_v32 = vld [vmem:[%s7030_s13 + $0xb4] sm:$0xff]   ;;  %v3790_v62 = vsel %vm7068_vm3, %v3785_v26, %v7948_v54  ;;  %v6567_v56 = vld [vmem:[%s7030_s13 + $0xc0] sm:$0xff]   ;;  %v3832_v53 = vor.u32 %v3831_v20, %v3828_v47  ;;  %v3841_v48 = vrot.slane %v3839_v37, 4  ;;  %v5587_v57 = vld [vmem:[%s7030_s13 + $0x6c] sm:$0xf] }
 0x12e   : > { %v3800_v54 = vsel %vm7068_vm3, %v3795_v11, %v3799_v18  ;;  %v8031_v51 = vrot.slane %v3808_v5, 4  ;;  %v8033_v26 = vrot.slane %v3821_v23, 5  ;;  %v5260_v12 = vrot.slane %v1276_v50, 9  ;;  %v6568_v50 = vld [vmem:[%s7030_s13 + $0xcc] sm:$0xff]   ;;  %v8153_v34 = vld [vmem:[%s7030_s13 + $0x98] sm:$0x1] }
 0x12f   : > { %v8036_v24 = vrot.slane %v3818_v31, 4  ;;  %v1415_v44 = vrot.slane %v1413_v28, 4  ;;  %v1416_v43 = vrot.slane %v6621_v61, 5  ;;  %v3845_v47 = vshll.u32 %v8019_v22, 16  ;;  %v8059_v31 = vld [vmem:[%s7030_s13 + $0x70] sm:$0xf] }
 0x130   : > { %v8973_v20 = vcombine.low %v7728_v21, %v7733_v33  ;;  %v8045_v63 = vcombine.low %v3766_v4, %v3776_v45  ;;  %v3850_v11 = vshrl.u32 %v5587_v57, 16  ;;  %v3853_v18 = vshll.u32 %v5587_v57, 16  ;;  %8975 = vst [vmem:[#allocation30_spill] sm:$0xff] %v8059_v31  ;;  %v8087_v57 = vld [vmem:[%s7030_s13 + $0x7c] sm:$0xf] }
 0x131   : > { %v8974_v5 = vcombine.low %v7753_v55, %v7766_v2  ;;  %v8054_v21 = vrot.slane %v3832_v53, 4  ;;  %v3842_v33 = vor.u32 %v3841_v48, %v8026_v3  ;;  %v5261_v23 = vrot.slane %v1277_v58, 9  ;;  %8976 = vst [vmem:[#allocation31_spill] sm:$0xff] %v8087_v57  ;;  %v8116_v48 = vld [vmem:[%s7030_s13 + $0x94] sm:$0xf] }
 0x132   : > { %v1420_v4 = vrot.slane %v7455_v14, 5  ;;  %v8072_v45 = vsel %vm7288_vm7, %v5260_v12, %v1413_v28  ;;  %v8083_v53 = vrot.slane %v3845_v47, 5  ;;  %v5593_v28 = vld [vmem:[%s7030_s13 + $0x84] sm:$0xf]  ;;  %v8092_v12 = vrot.slane %v3853_v18, 5  ;;  %8979 = vst [vmem:[#allocation34_spill] sm:$0xff] %v8116_v48 }
 0x133   : > { %v3859_v58 = vshll.u32 %v8059_v31, 16  ;;  %v3863_v61 = vshrl.u32 %v8059_v31, 16  ;;  %v8110_v18 = vld [vmem:[%s7030_s13 + $0x74] sm:$0x1]  ;;  %v3883_v14 = vshll.u32 %v8087_v57, 16  ;;  %v3887_v37 = vshrl.u32 %v8087_v57, 16 }
 0x134   : > { %5950 = vmatmul.mubr.msk.bf16.gmra.mrb[8].mxu1 %vm756_vm4, %v8973_v20  ;;  %6102 = vmatmul.mubr.msk.bf16.gmra.mrb[24].mxu0 %vm756_vm4, %v6566_v32  ;;  %v8062_v32 = vcombine.low %v3790_v62, %v3800_v54  ;;  %v8081_v62 = vsel %vm7288_vm7, %v1415_v44, %v1416_v43  ;;  %v8090_v54 = vrot.slane %v3850_v11, 4  ;;  %v8097_v20 = vld [vmem:[%s7030_s13 + $0x88] sm:$0xf]  ;;  %v8103_v43 = vrot.slane %v3842_v33, 4  ;;  %8978 = vst [vmem:[#allocation33_spill] sm:$0xff] %v8110_v18 }
 0x135   : > { %5953 = vmatprep.mubr.msk.bf16.mxu1 %vm756_vm4, %v8974_v5  ;;  %6105 = vmatprep.mubr.msk.bf16.mxu0 %vm756_vm4, %v6567_v56  ;;  %v5590_v56 = vld [vmem:[%s7030_s13 + $0x78] sm:$0xf]  ;;  %8977 = vst [vmem:[#allocation32_spill] sm:$0xff] %v8097_v20  ;;  %v8107_v47 = vsel %vm7288_vm7, %v5261_v23, %v1420_v4  ;;  %v1422_v11 = vrot.slane %v1420_v4, 4  ;;  %v5596_v5 = vld [vmem:[%s7030_s13 + $0x90] sm:$0xf]  ;;  %v8980_v4 = vcombine.low %v7775_v59, %v7802_v52 }
 0x136   : > { %v3874_v55 = vshrl.u32 %v5590_v56, 16  ;;  %v3877_v2 = vshll.u32 %v5590_v56, 16  ;;  %v3898_v44 = vshrl.u32 %v5593_v28, 16  ;;  %v3901_v33 = vshll.u32 %v5593_v28, 16  ;;  %v5599_v31 = vld [vmem:[%s7030_s13 + $0x9c] sm:$0xf] }
 0x137   : > { %v3907_v1 = vshll.u32 %v8097_v20, 16  ;;  %v3911_v23 = vshrl.u32 %v8097_v20, 16  ;;  %v3856_v56 = vor.u32 %v8092_v12, %v8090_v54  ;;  %v8127_v41 = vrot.slane %v3859_v58, 5  ;;  %v8140_v12 = vld [vmem:[%s7030_s13 + $0xa0] sm:$0xf] }
 0x138   : > { %v3865_v28 = vrot.slane %v3863_v61, 4  ;;  %v3869_v57 = vshll.u32 %v8110_v18, 16  ;;  %v8981_v20 = vcombine.low %v7806_v0, %v7813_v19  ;;  %v3922_v59 = vshrl.u32 %v5596_v5, 16  ;;  %8982 = vst [vmem:[#allocation35_spill] sm:$0xff] %v8140_v12  ;;  %v8143_v58 = vld [vmem:[%s7030_s13 + $0x80] sm:$0x1] }
 0x139   : > { %v3925_v52 = vshll.u32 %v5596_v5, 16  ;;  %v3935_v54 = vshrl.u32 %v8116_v48, 16  ;;  %v3876_v61 = vrot.slane %v3874_v55, 4  ;;  %v8145_v18 = vrot.slane %v3883_v14, 5  ;;  %v8148_v19 = vld [vmem:[%s7030_s13 + $0x8c] sm:$0x1] }
 0x13a   : > { %v3889_v0 = vrot.slane %v3887_v37, 4  ;;  %v8150_v22 = vrot.slane %v3907_v1, 5  ;;  %v3913_v5 = vrot.slane %v3911_v23, 4  ;;  %v3946_v49 = vshrl.u32 %v5599_v31, 16 }
 0x13b   : > { %v3955_v42 = vshll.u32 %v8140_v12, 16  ;;  %v3959_v16 = vshrl.u32 %v8140_v12, 16  ;;  %v3924_v55 = vrot.slane %v3922_v59, 4  ;;  %v3937_v37 = vrot.slane %v3935_v54, 4 }
 0x13c   : > { %5954 = vmatmul.mubr.msk.bf16.gmra.mrb[12].mxu1 %vm756_vm4, %v8980_v4  ;;  %6106 = vmatmul.mubr.msk.bf16.gmra.mrb[28].mxu0 %vm756_vm4, %v6568_v50  ;;  %v3931_v50 = vshll.u32 %v8116_v48, 16  ;;  %v3879_v4 = vrot.slane %v3877_v2, 5  ;;  %v3949_v48 = vshll.u32 %v5599_v31, 16  ;;  %v3927_v2 = vrot.slane %v3925_v52, 5 }
 0x13d   : > { %5957 = vmatprep.mubr.msk.bf16.mxu1 %vm756_vm4, %v8981_v20  ;;  %6111 = vmatprep.mubr.msk.bf16.mxu0 %vm756_vm4, %v7915_v40  ;;  %v3900_v20 = vrot.slane %v3898_v44, 4  ;;  %v3903_v40 = vrot.slane %v3901_v33, 5  ;;  %v3866_v46 = vor.u32 %v3865_v28, %v8127_v41  ;;  %v3890_v1 = vor.u32 %v3889_v0, %v8145_v18 }
 0x13e   : > { %v8157_v14 = vrot.slane %v3931_v50, 5  ;;  %v3880_v44 = vor.u32 %v3879_v4, %v3876_v61  ;;  %v3893_v33 = vshll.u32 %v8143_v58, 16  ;;  %v3914_v31 = vor.u32 %v3913_v5, %v8150_v22  ;;  %v5602_v4 = vld [vmem:[%s7030_s13 + $0xa8] sm:$0xf] }
 0x13f   : > { %v3904_v23 = vor.u32 %v3903_v40, %v3900_v20  ;;  %v3917_v13 = vshll.u32 %v8148_v19, 16  ;;  %v3941_v12 = vshll.u32 %v8153_v34, 16  ;;  %v8983_v59 = vcombine.low %v7825_v7, %v7833_v35 }
 0x140   : > { %v3948_v28 = vrot.slane %v3946_v49, 4  ;;  %v3951_v52 = vrot.slane %v3949_v48, 5  ;;  %v8171_v50 = vrot.slane %v3955_v42, 5  ;;  %v3961_v54 = vrot.slane %v3959_v16, 4  ;;  %v8186_v42 = vld [vmem:[%s7030_s13 + $0xa4] sm:$0x1] }
 0x141   : > { %v8984_v61 = vcombine.low %v7882_v9, %v7894_v39  ;;  %v8985_v7 = vrot.slane %v7460_v36, 5  ;;  %v3928_v49 = vor.u32 %v3927_v2, %v3924_v55  ;;  %v3938_v48 = vor.u32 %v3937_v37, %v8157_v14  ;;  %v8194_v2 = vld [vmem:[%s7030_s13 + $0xac] sm:$0xf] }
 0x142   : > { %v3867_v9 = vrot.slane %v3866_v46, 4  ;;  %v3881_v39 = vrot.slane %v3880_v44, 4  ;;  %v3895_v16 = vrot.slane %v3893_v33, 5  ;;  %v3891_v36 = vrot.slane %v3890_v1, 4 }
 0x143   : > { %v8182_v35 = vsel %vm7288_vm7, %v1422_v11, %v8985_v7  ;;  %v3905_v0 = vrot.slane %v3904_v23, 4  ;;  %v3915_v20 = vrot.slane %v3914_v31, 4  ;;  %v3919_v11 = vrot.slane %v3917_v13, 5 }
 0x144   : > { %5958 = vmatmul.mubr.msk.bf16.gmra.mrb[16].mxu1 %vm756_vm4, %v8983_v59  ;;  %6112 = vmatmul.mubr.msk.bf16.vlgmr.msra.gmra.mrb[0].mxu0 %vm756_vm4, %v7917_v17  ;;  %v3871_v17 = vrot.slane %v3869_v57, 5  ;;  %v3943_v40 = vrot.slane %v3941_v12, 5  ;;  %v3952_v57 = vor.u32 %v3951_v52, %v3948_v28  ;;  %v3962_v5 = vor.u32 %v3961_v54, %v8171_v50 }
 0x145   : > { %6144 = vmatpush3.bf16.msra.mxu0 %v7940_v8  ;;  %5961 = vmatprep.mubr.msk.bf16.mxu1 %vm756_vm4, %v8984_v61  ;;  %v3857_v8 = vrot.slane %v3856_v56, 4  ;;  %v3965_v55 = vshll.u32 %v8186_v42, 16  ;;  %v3929_v37 = vrot.slane %v3928_v49, 4  ;;  %v3939_v59 = vrot.slane %v3938_v48, 4 }
 0x146   : > { %6115 = vmatprep.mubr.msk.bf16.mxu0 %vm756_vm4, %v7942_v15  ;;  %v3970_v15 = vshrl.u32 %v5602_v4, 16  ;;  %v3973_v56 = vshll.u32 %v5602_v4, 16  ;;  %v3848_v46 = vsel %vm7068_vm3, %v8103_v43, %v8083_v53  ;;  %v3872_v12 = vsel %vm7068_vm3, %v3867_v9, %v3871_v17  ;;  %v5651_v9 = vld [vmem:[%s7030_s13 + $0x54] sm:$0xe] }
 0x147   : > { %v3862_v13 = vsel %vm7068_vm3, %v3857_v8, %v8127_v41  ;;  %v3886_v44 = vsel %vm7068_vm3, %v3881_v39, %v8145_v18  ;;  %v3896_v1 = vsel %vm7068_vm3, %v3891_v36, %v3895_v16  ;;  %v3910_v33 = vsel %vm7068_vm3, %v3905_v0, %v8150_v22 }
 0x148   : > { %v3979_v53 = vshll.u32 %v8194_v2, 16  ;;  %v3983_v43 = vshrl.u32 %v8194_v2, 16  ;;  %v8986_v41 = vcombine.low %v7901_v25, %v7911_v29  ;;  %v3920_v18 = vsel %vm7068_vm3, %v3915_v20, %v3919_v11 }
 0x149   : > { %v3953_v23 = vrot.slane %v3952_v57, 4  ;;  %v3963_v31 = vrot.slane %v3962_v5, 4  ;;  %v3967_v22 = vrot.slane %v3965_v55, 5  ;;  %v8987_v28 = vcombine.low %v7998_v10, %v8009_v60 }
 0x14a   : > { %v3934_v25 = vsel %vm7068_vm3, %v3929_v37, %v8157_v14  ;;  %v3944_v29 = vsel %vm7068_vm3, %v3939_v59, %v3943_v40  ;;  %v8236_v52 = vrot.slane %v3973_v56, 5  ;;  %v8988_v10 = vsel %vm7068_vm3, %v8036_v24, %v8033_v26  ;;  %v8258_v26 = vld [vmem:[%s7030_s13 + $0xb0] sm:$0x1]  ;;  %v5605_v24 = vld [vmem:[%s7030_s13 + $0xb4] sm:$0xf] }
 0x14b   : > { %v8989_v60 = vsel %vm7068_vm3, %v8031_v51, %v7976_v38  ;;  %v5276_v14 = vcombine.low %v8072_v45, %v8081_v62  ;;  %v8990_v54 = vsel %vm7068_vm3, %v8054_v21, %v8026_v3  ;;  %v5277_v7 = vcombine.low %v8107_v47, %v8182_v35  ;;  %v8268_v45 = vld [vmem:[%s7030_s13 + $0xb8] sm:$0xf]  ;;  %v5650_v62 = vld [vmem:[%s7030_s13 + $0x48] sm:$0xe]  ;;  %v5653_v56 = vld [vmem:[%s7030_s13 + $0x6c] sm:$0xe] }
 0x14c   : > { %5962 = vmatmul.mubr.msk.bf16.gmra.mrb[20].mxu1 %vm756_vm4, %v8986_v41  ;;  %6116 = vmatmul.mubr.msk.bf16.gmra.mrb[4].mxu0 %vm756_vm4, %v8045_v63  ;;  %v8234_v63 = vrot.slane %v3970_v15, 4  ;;  %v5620_v61 = vcombine.low %v8990_v54, %v3848_v46  ;;  %v8261_v17 = vcombine.low %v3862_v13, %v3872_v12  ;;  %v8263_v38 = vcombine.low %v3886_v44, %v3896_v1  ;;  %v8991_v40 = vld [vmem:[#allocation24_spill] sm:$0xff]  ;;  %v8992_v59 = vld [vmem:[#allocation23_spill] sm:$0xff]  ;;  %v8994_v13 = vld [vmem:[#allocation29_spill] sm:$0xff] }
 0x14d   : > { %5965 = vmatprep.mubr.msk.bf16.mxu1 %vm756_vm4, %v8987_v28  ;;  %6119 = vmatprep.mubr.msk.bf16.mxu0 %vm756_vm4, %v8062_v32  ;;  %v5619_v32 = vcombine.low %v8989_v60, %v8988_v10  ;;  %v8265_v51 = vrot.slane %v3979_v53, 5  ;;  %v3985_v49 = vrot.slane %v3983_v43, 4  ;;  %v8271_v48 = vcombine.low %v3910_v33, %v3920_v18  ;;  %v8993_v46 = vld [vmem:[#allocation27_spill] sm:$0xff]  ;;  %v8996_v33 = vld [vmem:[#allocation26_spill] sm:$0xff]  ;;  %v8380_v47 = vld [vmem:[%s7030_s13 + $0xbc] sm:$0x1] }
 0x14e   : > { %v8273_v3 = vcombine.low %v3934_v25, %v3944_v29  ;;  %v3958_v21 = vsel %vm7068_vm3, %v3953_v23, %v8171_v50  ;;  %v3968_v8 = vsel %vm7068_vm3, %v3963_v31, %v3967_v22  ;;  %v3976_v39 = vor.u32 %v8236_v52, %v8234_v63  ;;  %v5652_v50 = vld [vmem:[%s7030_s13 + $0x60] sm:$0xe]  ;;  %v8998_v25 = vld [vmem:[#allocation28_spill] sm:$0xff] }
 0x14f   : > { %v3989_v16 = vshll.u32 %v8258_v26, 16  ;;  %v3994_v4 = vshrl.u32 %v5605_v24, 16  ;;  %v3997_v36 = vshll.u32 %v5605_v24, 16  ;;  %v4003_v0 = vshll.u32 %v8268_v45, 16  ;;  %v8997_v23 = vld [vmem:[#allocation25_spill] sm:$0xff]  ;;  %v8999_v52 = vld [vmem:[#allocation30_spill] sm:$0xff] }
 0x150   : > { %v5666_v20 = vrot.slane %v5650_v62, 9  ;;  %v4453_v11 = vrot.slane %v7887_v27, 5  ;;  %v4456_v57 = vrot.slane %v8991_v40, 5  ;;  %v8288_v5 = vcombine.low %v3958_v21, %v3968_v8  ;;  %v5608_v22 = vld [vmem:[%s7030_s13 + $0xc0] sm:$0xf] }
 0x151   : > { %v3986_v55 = vor.u32 %v3985_v49, %v8265_v51  ;;  %v5667_v37 = vrot.slane %v5651_v9, 9  ;;  %v4460_v15 = vrot.slane %v8992_v59, 5  ;;  %v8995_v12 = vcombine.low %v8993_v46, %v8994_v13  ;;  %v9000_v21 = vld [vmem:[#allocation33_spill] sm:$0xff]  ;;  %v6569_v9 = vld [vmem:[%s7030_s13 + $0xc] sm:$0xff]  }
 0x152   : > { %v4007_v27 = vshrl.u32 %v8268_v45, 16  ;;  %v8301_v44 = vsel %vm7288_vm7, %v5666_v20, %v4453_v11  ;;  %v4455_v1 = vrot.slane %v4453_v11, 4  ;;  %v4463_v53 = vrot.slane %v8996_v33, 5  ;;  %v5655_v33 = vld [vmem:[%s7030_s13 + $0x84] sm:$0xe] }
 0x153   : > { %v8308_v43 = vsel %vm7288_vm7, %v5667_v37, %v4460_v15  ;;  %v4462_v41 = vrot.slane %v4460_v15, 4  ;;  %v5668_v18 = vrot.slane %v5652_v50, 9  ;;  %v4467_v31 = vrot.slane %v8997_v23, 5  ;;  %v5654_v50 = vld [vmem:[%s7030_s13 + $0x78] sm:$0xe]  ;;  %v9002_v23 = vld [vmem:[#allocation18_spill] sm:$0xff] }
 0x154   : > { %5966 = vmatmul.mubr.msk.bf16.gmra.mrb[24].mxu1 %vm756_vm4, %v8995_v12  ;;  %6120 = vmatmul.mubr.msk.bf16.gmra.mrb[8].mxu0 %vm756_vm4, %v5619_v32  ;;  %v8314_v28 = vsel %vm7288_vm7, %v4455_v1, %v4456_v57  ;;  %v4470_v29 = vrot.slane %v8998_v25, 5  ;;  %v5669_v63 = vrot.slane %v5653_v56, 9  ;;  %v4474_v10 = vrot.slane %v8999_v52, 5  ;;  %v9001_v1 = vld [vmem:[#allocation31_spill] sm:$0xff] }
 0x155   : > { %5969 = vmatprep.mubr.msk.bf16.mxu1 %vm756_vm4, %v5276_v14  ;;  %6123 = vmatprep.mubr.msk.bf16.mxu0 %vm756_vm4, %v5620_v61  ;;  %v5682_v60 = vcombine.low %v8301_v44, %v8314_v28  ;;  %v8322_v32 = vsel %vm7288_vm7, %v4462_v41, %v4463_v53  ;;  %v8326_v14 = vsel %vm7288_vm7, %v5668_v18, %v4467_v31  ;;  %v4469_v54 = vrot.slane %v4467_v31, 4  ;;  %v8329_v61 = vld [vmem:[%s7030_s13 + $0xc4] sm:$0xf] }
 0x156   : > { %v5683_v24 = vcombine.low %v8308_v43, %v8322_v32  ;;  %v8335_v49 = vsel %vm7288_vm7, %v5669_v63, %v4474_v10  ;;  %v4476_v62 = vrot.slane %v4474_v10, 4  ;;  %v4477_v8 = vrot.slane %v9000_v21, 5  ;;  %v9003_v31 = vld [vmem:[#allocation17_spill] sm:$0xff] }
 0x157   : > { %v8339_v20 = vrot.slane %v3989_v16, 5  ;;  %v8341_v11 = vrot.slane %v3994_v4, 4  ;;  %v4018_v40 = vshrl.u32 %v5608_v22, 16  ;;  %v8345_v57 = vsel %vm7288_vm7, %v4469_v54, %v4470_v29  ;;  %v5385_v4 = vld [vmem:[%s7030_s13 + $0x78] sm:$0xf] }
 0x158   : > { %v8348_v37 = vrot.slane %v3976_v39, 4  ;;  %v8350_v59 = vrot.slane %v3997_v36, 5  ;;  %v5684_v15 = vcombine.low %v8326_v14, %v8345_v57  ;;  %v8356_v16 = vsel %vm7288_vm7, %v4476_v62, %v4477_v8  ;;  %v6570_v63 = vld [vmem:[%s7030_s13 + $0x18] sm:$0xff]   ;;  %v6571_v8 = vld [vmem:[%s7030_s13 + $0x24] sm:$0xff]  }
 0x159   : > { %v8359_v56 = vrot.slane %v3986_v55, 4  ;;  %v8361_v46 = vrot.slane %v4003_v0, 5  ;;  %v4021_v13 = vshll.u32 %v5608_v22, 16  ;;  %v5685_v39 = vcombine.low %v8335_v49, %v8356_v16  ;;  %v9004_v54 = vld [vmem:[#allocation32_spill] sm:$0xff]  ;;  %v5397_v57 = vld [vmem:[%s7030_s13 + $0xa8] sm:$0xf] }
 0x15a   : > { %v8371_v36 = vrot.slane %v4007_v27, 4  ;;  %v4027_v12 = vshll.u32 %v8329_v61, 16  ;;  %v5670_v55 = vrot.slane %v5654_v50, 9  ;;  %v4481_v0 = vrot.slane %v9001_v1, 5  ;;  %v5611_v50 = vld [vmem:[%s7030_s13 + $0xcc] sm:$0xf] }
 0x15b   : > { %v4020_v35 = vrot.slane %v4018_v40, 4  ;;  %v2346_v27 = vshll.u32 %v5385_v4, 16  ;;  %v4031_v53 = vshrl.u32 %v8329_v61, 16  ;;  %v4023_v22 = vrot.slane %v4021_v13, 5 }
 0x15c   : > { %5970 = vmatmul.mubr.msk.bf16.gmra.mrb[28].mxu1 %vm756_vm4, %v5277_v7  ;;  %6124 = vmatmul.mubr.msk.bf16.gmra.mrb[12].mxu0 %vm756_vm4, %v8261_v17  ;;  %v4484_v7 = vrot.slane %v8143_v58, 5  ;;  %v2343_v17 = vshrl.u32 %v5385_v4, 16  ;;  %v8386_v41 = vsel %vm7288_vm7, %v5670_v55, %v4481_v0  ;;  %v4483_v18 = vrot.slane %v4481_v0, 4  ;;  %v8409_v4 = vld [vmem:[%s7030_s13 + $0xd0] sm:$0xf] }
 0x15d   : > { %5975 = vmatprep.mubr.msk.bf16.mxu1 %vm756_vm4, %v6569_v9  ;;  %6127 = vmatprep.mubr.msk.bf16.mxu0 %vm756_vm4, %v8263_v38  ;;  %v2365_v38 = vsel %vm7068_vm3, %v9003_v31, %v9002_v23  ;;  %v2348_v58 = vrot.slane %v2346_v27, 5  ;;  %v5671_v29 = vrot.slane %v5655_v33, 9  ;;  %v4013_v52 = vshll.u32 %v8380_v47, 16 }
 0x15e   : > { %v2345_v25 = vrot.slane %v2343_v17, 4  ;;  %v8396_v10 = vsel %vm7288_vm7, %v4483_v18, %v4484_v7  ;;  %v4488_v62 = vrot.slane %v9004_v54, 5  ;;  %v4491_v21 = vrot.slane %v8148_v19, 5  ;;  %v5656_v7 = vld [vmem:[%s7030_s13 + $0x90] sm:$0xe] }
 0x15f   : > { %v3982_v9 = vsel %vm7068_vm3, %v8348_v37, %v8265_v51  ;;  %v4000_v40 = vor.u32 %v8350_v59, %v8341_v11  ;;  %v5686_v13 = vcombine.low %v8386_v41, %v8396_v10  ;;  %v8413_v1 = vrot.slane %v4027_v12, 5  ;;  %v8427_v37 = vld [vmem:[%s7030_s13 + $0xc8] sm:$0x1] }
 0x160   : > { %v2349_v55 = vor.u32 %v2348_v58, %v2345_v25  ;;  %v4033_v0 = vrot.slane %v4031_v53, 4  ;;  %v8417_v19 = vsel %vm7288_vm7, %v5671_v29, %v4488_v62  ;;  %v4490_v33 = vrot.slane %v4488_v62, 4  ;;  %v6572_v29 = vld [vmem:[%s7030_s13 + $0x30] sm:$0xff]   ;;  %v9007_v62 = vld [vmem:[#allocation34_spill] sm:$0xff] }
 0x161   : > { %v3992_v51 = vsel %vm7068_vm3, %v8359_v56, %v8339_v20  ;;  %v4010_v11 = vor.u32 %v8371_v36, %v8361_v46  ;;  %v4024_v59 = vor.u32 %v4023_v22, %v4020_v35  ;;  %v4042_v17 = vshrl.u32 %v5611_v50, 16  ;;  %v9005_v56 = vld [vmem:[#allocation15_spill] sm:$0xff]  ;;  %v9006_v35 = vld [vmem:[#allocation16_spill] sm:$0xff] }
 0x162   : > { %v2350_v12 = vrot.slane %v2349_v55, 4  ;;  %v4045_v27 = vshll.u32 %v5611_v50, 16  ;;  %v4051_v53 = vshll.u32 %v8409_v4, 16  ;;  %v8435_v20 = vsel %vm7288_vm7, %v4490_v33, %v4491_v21 }
 0x163   : > { %v4055_v36 = vshrl.u32 %v8409_v4, 16  ;;  %v5672_v23 = vrot.slane %v5656_v7, 9  ;;  %v4015_v31 = vrot.slane %v4013_v52, 5  ;;  %v4034_v22 = vor.u32 %v4033_v0, %v8413_v1  ;;  %v8457_v52 = vld [vmem:[%s7030_s13 + $0xd4] sm:$0x1] }
 0x164   : > { %5976 = vmatmul.mubr.msk.bf16.vlgmr.msra.gmra.mrb[0].mxu1 %vm756_vm4, %v6570_v63  ;;  %6128 = vmatmul.mubr.msk.bf16.gmra.mrb[16].mxu0 %vm756_vm4, %v8271_v48  ;;  %v2355_v18 = vsel %vm7068_vm3, %v2350_v12, %v9006_v35  ;;  %v5687_v48 = vcombine.low %v8417_v19, %v8435_v20  ;;  %v4037_v25 = vshll.u32 %v8427_v37, 16  ;;  %v5626_v63 = vcombine.low %v3982_v9, %v3992_v51  ;;  %v6573_v12 = vld [vmem:[%s7030_s13 + $0x3c] sm:$0xff]   ;;  %v6637_v19 = vld [vmem:[%s7030_s13 + $0xc4] sm:$0xf] }
 0x165   : > { %6178 = vmatpush3.bf16.msra.mxu1 %v9005_v56  ;;  %5979 = vmatprep.mubr.msk.bf16.mxu1 %vm756_vm4, %v6571_v8  ;;  %v8449_v58 = vcombine.low %v2355_v18, %v2365_v38  ;;  %v4001_v54 = vrot.slane %v4000_v40, 4  ;;  %v4495_v21 = vrot.slane %v9007_v62, 5  ;;  %v4498_v8 = vrot.slane %v8153_v34, 5  ;;  %v5658_v62 = vld [vmem:[%s7030_s13 + $0xa8] sm:$0xe] }
 0x166   : > { %6131 = vmatprep.mubr.msk.bf16.mxu0 %vm756_vm4, %v8273_v3  ;;  %v4011_v50 = vrot.slane %v4010_v11, 4  ;;  %v4025_v55 = vrot.slane %v4024_v59, 4  ;;  %v4044_v33 = vrot.slane %v4042_v17, 4  ;;  %v4047_v7 = vrot.slane %v4045_v27, 5  ;;  %v5657_v3 = vld [vmem:[%s7030_s13 + $0x9c] sm:$0xe] }
 0x167   : > { %v8459_v0 = vrot.slane %v4051_v53, 5  ;;  %v4057_v56 = vrot.slane %v4055_v36, 4  ;;  %v8463_v38 = vsel %vm7288_vm7, %v5672_v23, %v4495_v21  ;;  %v4497_v9 = vrot.slane %v4495_v21, 4  ;;  %v9008_v53 = vld [vmem:[#allocation35_spill] sm:$0xff]  ;;  %v5646_v23 = vld [vmem:[%s7030_s13 + $0x18] sm:$0xe] }
 0x168   : > { %v4035_v40 = vrot.slane %v4034_v22, 4  ;;  %v4039_v51 = vrot.slane %v4037_v25, 5  ;;  %v4006_v34 = vsel %vm7068_vm3, %v4001_v54, %v8361_v46  ;;  %v5673_v59 = vrot.slane %v5657_v3, 9  ;;  %v6622_v25 = vld [vmem:[%s7030_s13 + $0x1c] sm:$0xf] }
 0x169   : > { %v8470_v11 = vsel %vm7288_vm7, %v4497_v9, %v4498_v8  ;;  %v4016_v17 = vsel %vm7068_vm3, %v4011_v50, %v4015_v31  ;;  %v4061_v27 = vshll.u32 %v8457_v52, 16  ;;  %v4502_v36 = vrot.slane %v9008_v53, 5  ;;  %v6623_v9 = vld [vmem:[%s7030_s13 + $0x20] sm:$0x1] }
 0x16a   : > { %v5688_v46 = vcombine.low %v8463_v38, %v8470_v11  ;;  %v4048_v35 = vor.u32 %v4047_v7, %v4044_v33  ;;  %v4058_v18 = vor.u32 %v4057_v56, %v8459_v0  ;;  %v4505_v31 = vrot.slane %v8186_v42, 5 }
 0x16b   : > { %v4040_v22 = vsel %vm7068_vm3, %v4035_v40, %v4039_v51  ;;  %v4504_v54 = vrot.slane %v4502_v36, 4  ;;  %v5627_v21 = vcombine.low %v4006_v34, %v4016_v17  ;;  %v4063_v8 = vrot.slane %v4061_v27, 5  ;;  %v5647_v17 = vld [vmem:[%s7030_s13 + $0x24] sm:$0xe] }
 0x16c   : > { %5980 = vmatmul.mubr.msk.bf16.gmra.mrb[4].mxu1 %vm756_vm4, %v6572_v29  ;;  %6132 = vmatmul.mubr.msk.bf16.gmra.mrb[20].mxu0 %vm756_vm4, %v8288_v5  ;;  %v4030_v5 = vsel %vm7068_vm3, %v4025_v55, %v8413_v1  ;;  %v4425_v29 = vrot.slane %v6622_v25, 5  ;;  %v6574_v1 = vld [vmem:[%s7030_s13 + $0x48] sm:$0xff]   ;;  %v5662_v50 = vrot.slane %v5646_v23, 9  ;;  %v6575_v55 = vld [vmem:[%s7030_s13 + $0x54] sm:$0xff]   ;;  %v4049_v7 = vrot.slane %v4048_v35, 4 }
 0x16d   : > { %5983 = vmatprep.mubr.msk.bf16.mxu1 %vm756_vm4, %v6573_v12  ;;  %6135 = vmatprep.mubr.msk.bf16.mxu0 %vm756_vm4, %v5626_v63  ;;  %v8494_v63 = vsel %vm7288_vm7, %v5673_v59, %v4502_v36  ;;  %v8500_v42 = vsel %vm7288_vm7, %v4504_v54, %v4505_v31  ;;  %v5628_v33 = vcombine.low %v4030_v5, %v4040_v22  ;;  %v4059_v3 = vrot.slane %v4058_v18, 4  ;;  %v6624_v36 = vld [vmem:[%s7030_s13 + $0x28] sm:$0xf]  ;;  %v5659_v35 = vld [vmem:[%s7030_s13 + $0xb4] sm:$0xe] }
 0x16e   : > { %v5689_v12 = vcombine.low %v8494_v63, %v8500_v42  ;;  %v4427_v56 = vrot.slane %v4425_v29, 4  ;;  %v4428_v40 = vrot.slane %v6623_v9, 5  ;;  %v5674_v51 = vrot.slane %v5658_v62, 9  ;;  %v5648_v31 = vld [vmem:[%s7030_s13 + $0x30] sm:$0xe] }
 0x16f   : > { %v4509_v34 = vrot.slane %v8194_v2, 5  ;;  %v4512_v59 = vrot.slane %v8258_v26, 5  ;;  %v4054_v2 = vsel %vm7068_vm3, %v4049_v7, %v8459_v0  ;;  %v4064_v26 = vsel %vm7068_vm3, %v4059_v3, %v4063_v8  ;;  %v6625_v22 = vld [vmem:[%s7030_s13 + $0x34] sm:$0xf] }
 0x170   : > { %v4432_v5 = vrot.slane %v6624_v36, 5  ;;  %v4426_v18 = vsel %vm7288_vm7, %v5662_v50, %v4425_v29  ;;  %v4429_v23 = vsel %vm7288_vm7, %v4427_v56, %v4428_v40  ;;  %v4439_v25 = vrot.slane %v6625_v22, 5  ;;  %v9009_v8 = vld [vmem:[#allocation19_spill] sm:$0xff] }
 0x171   : > { %v8513_v27 = vsel %vm7288_vm7, %v5674_v51, %v4509_v34  ;;  %v4511_v53 = vrot.slane %v4509_v34, 4  ;;  %v5663_v0 = vrot.slane %v5647_v17, 9  ;;  %v5675_v29 = vrot.slane %v5659_v35, 9  ;;  %v9010_v51 = vld [vmem:[#allocation20_spill] sm:$0xff] }
 0x172   : > { %v4516_v50 = vrot.slane %v8268_v45, 5  ;;  %v5678_v7 = vcombine.low %v4426_v18, %v4429_v23  ;;  %v4434_v3 = vrot.slane %v4432_v5, 4  ;;  %v5664_v56 = vrot.slane %v5648_v31, 9  ;;  %v9011_v45 = vld [vmem:[#allocation21_spill] sm:$0xff] }
 0x173   : > { %v8532_v54 = vsel %vm7288_vm7, %v4511_v53, %v4512_v59  ;;  %v4519_v9 = vrot.slane %v8380_v47, 5  ;;  %v4441_v40 = vrot.slane %v4439_v25, 4  ;;  %v4442_v34 = vrot.slane %v9010_v51, 5  ;;  %v5660_v53 = vld [vmem:[%s7030_s13 + $0xc0] sm:$0xe] }
 0x174   : > { %5984 = vmatmul.mubr.msk.bf16.gmra.mrb[8].mxu1 %vm756_vm4, %v6574_v1  ;;  %6136 = vmatmul.mubr.msk.bf16.gmra.mrb[24].mxu0 %vm756_vm4, %v5627_v21  ;;  %v5690_v62 = vcombine.low %v8513_v27, %v8532_v54  ;;  %v6576_v1 = vld [vmem:[%s7030_s13 + $0x60] sm:$0xff]   ;;  %v5629_v21 = vcombine.low %v4054_v2, %v4064_v26  ;;  %v8544_v59 = vsel %vm7288_vm7, %v5675_v29, %v4516_v50  ;;  %v4518_v17 = vrot.slane %v4516_v50, 4  ;;  %v5649_v35 = vld [vmem:[%s7030_s13 + $0x3c] sm:$0xe]  ;;  %v5661_v50 = vld [vmem:[%s7030_s13 + $0xcc] sm:$0xe] }
 0x175   : > { %5987 = vmatprep.mubr.msk.bf16.mxu1 %vm756_vm4, %v6575_v55  ;;  %6139 = vmatprep.mubr.msk.bf16.mxu0 %vm756_vm4, %v5628_v33  ;;  %v4435_v55 = vrot.slane %v9009_v8, 5  ;;  %v6577_v33 = vld [vmem:[%s7030_s13 + $0x6c] sm:$0xff]   ;;  %v4446_v2 = vrot.slane %v9011_v45, 5  ;;  %v4433_v26 = vsel %vm7288_vm7, %v5663_v0, %v4432_v5  ;;  %v4440_v23 = vsel %vm7288_vm7, %v5664_v56, %v4439_v25  ;;  %v6578_v5 = vld [vmem:[%s7030_s13 + $0x78] sm:$0xff]  }
 0x176   : > { %v8552_v47 = vsel %vm7288_vm7, %v4518_v17, %v4519_v9  ;;  %v4443_v31 = vsel %vm7288_vm7, %v4441_v40, %v4442_v34  ;;  %v5676_v22 = vrot.slane %v5660_v53, 9  ;;  %v4526_v8 = vrot.slane %v8427_v37, 5  ;;  %v6626_v34 = vld [vmem:[%s7030_s13 + $0x70] sm:$0xf] }
 0x177   : > { %v4436_v36 = vsel %vm7288_vm7, %v4434_v3, %v4435_v55  ;;  %v5691_v18 = vcombine.low %v8544_v59, %v8552_v47  ;;  %v5665_v55 = vrot.slane %v5649_v35, 9  ;;  %v4448_v29 = vrot.slane %v4446_v2, 4  ;;  %v9012_v3 = vld [vmem:[#allocation22_spill] sm:$0xff] }
 0x178   : > { %v5679_v0 = vcombine.low %v4433_v26, %v4436_v36  ;;  %v4449_v9 = vrot.slane %v9012_v3, 5  ;;  %v5677_v37 = vrot.slane %v5661_v50, 9  ;;  %v2328_v17 = vshll.u32 %v6626_v34, 16 }
 0x179   : > { %v2332_v53 = vshrl.u32 %v6626_v34, 16  ;;  %v4530_v26 = vrot.slane %v8409_v4, 5  ;;  %v4447_v36 = vsel %vm7288_vm7, %v5665_v55, %v4446_v2  ;;  %v6581_v55 = vld [vmem:[%s7030_s13 + $0x9c] sm:$0xff]   ;;  %v5391_v34 = vld [vmem:[%s7030_s13 + $0x90] sm:$0xf]  ;;  %v2496_v20 = vshll.u32 %v6637_v19, 16 }
 0x17a   : > { %v4450_v35 = vsel %vm7288_vm7, %v4448_v29, %v4449_v9  ;;  %v5388_v29 = vld [vmem:[%s7030_s13 + $0x84] sm:$0xf]  ;;  %v2391_v28 = vshrl.u32 %v5391_v34, 16 }
 0x17b   : > { %v4532_v4 = vrot.slane %v4530_v26, 4  ;;  %v2367_v6 = vshrl.u32 %v5388_v29, 16  ;;  %v2370_v9 = vshll.u32 %v5388_v29, 16  ;;  %v2498_v38 = vrot.slane %v2496_v20, 5 }
 0x17c   : > { %5988 = vmatmul.mubr.msk.bf16.gmra.mrb[12].mxu1 %vm756_vm4, %v6576_v1  ;;  %6140 = vmatmul.mubr.msk.bf16.gmra.mrb[28].mxu0 %vm756_vm4, %v5629_v21  ;;  %v5382_v1 = vld [vmem:[%s7030_s13 + $0x6c] sm:$0xf]  ;;  %v4523_v21 = vrot.slane %v8329_v61, 5 }
 0x17d   : > { %5991 = vmatprep.mubr.msk.bf16.mxu1 %vm756_vm4, %v6577_v33  ;;  %6145 = vmatprep.mubr.msk.bf16.mxu0 %vm756_vm4, %v5678_v7  ;;  %v6579_v33 = vld [vmem:[%s7030_s13 + $0x84] sm:$0xff]   ;;  %v5680_v7 = vcombine.low %v4440_v23, %v4443_v31  ;;  %v2319_v40 = vshrl.u32 %v5382_v1, 16  ;;  %v2322_v51 = vshll.u32 %v5382_v1, 16  ;;  %v4533_v23 = vrot.slane %v8457_v52, 5 }
 0x17e   : > { %v8576_v25 = vsel %vm7288_vm7, %v5676_v22, %v4523_v21  ;;  %v4525_v56 = vrot.slane %v4523_v21, 4  ;;  %v8597_v1 = vsel %vm7288_vm7, %v5677_v37, %v4530_v26  ;;  %v6580_v21 = vld [vmem:[%s7030_s13 + $0x90] sm:$0xff]  }
 0x17f   : > { %v2321_v31 = vrot.slane %v2319_v40, 4  ;;  %v2324_v22 = vrot.slane %v2322_v51, 5  ;;  %v8602_v2 = vsel %vm7288_vm7, %v4532_v4, %v4533_v23  ;;  %v5394_v23 = vld [vmem:[%s7030_s13 + $0x9c] sm:$0xf] }
 0x180   : > { %v8580_v61 = vsel %vm7288_vm7, %v4525_v56, %v4526_v8  ;;  %v5681_v8 = vcombine.low %v4447_v36, %v4450_v35  ;;  %v5693_v52 = vcombine.low %v8597_v1, %v8602_v2  ;;  %v6628_v56 = vld [vmem:[%s7030_s13 + $0x88] sm:$0xf]  ;;  %v2369_v36 = vrot.slane %v2367_v6, 4 }
 0x181   : > { %v5692_v45 = vcombine.low %v8576_v25, %v8580_v61  ;;  %v2325_v50 = vor.u32 %v2324_v22, %v2321_v31  ;;  %v2376_v40 = vshll.u32 %v6628_v56, 16  ;;  %v2380_v51 = vshrl.u32 %v6628_v56, 16  ;;  %v6583_v31 = vld [vmem:[%s7030_s13 + $0xb4] sm:$0xff]  }
 0x182   : > { %v2372_v35 = vrot.slane %v2370_v9, 5  ;;  %v2418_v29 = vshll.u32 %v5394_v23, 16 }
 0x183   : > { %v2326_v37 = vrot.slane %v2325_v50, 4  ;;  %v8621_v22 = vrot.slane %v2376_v40, 5  ;;  %v2382_v44 = vrot.slane %v2380_v51, 4 }
 0x184   : > { %5992 = vmatmul.mubr.msk.bf16.gmra.mrb[16].mxu1 %vm756_vm4, %v6578_v5  ;;  %6146 = vmatmul.mubr.msk.bf16.vlgmr.msra.gmra.mrb[0].mxu0 %vm756_vm4, %v5679_v0  ;;  %v2330_v5 = vrot.slane %v2328_v17, 5  ;;  %v2334_v0 = vrot.slane %v2332_v53, 4  ;;  %v6582_v17 = vld [vmem:[%s7030_s13 + $0xa8] sm:$0xff]   ;;  %v2373_v43 = vor.u32 %v2372_v35, %v2369_v36 }
 0x185   : > { %5995 = vmatprep.mubr.msk.bf16.mxu1 %vm756_vm4, %v6579_v33  ;;  %6149 = vmatprep.mubr.msk.bf16.mxu0 %vm756_vm4, %v5680_v7  ;;  %v6627_v7 = vld [vmem:[%s7030_s13 + $0x74] sm:$0x1]  ;;  %v2383_v32 = vor.u32 %v2382_v44, %v8621_v22 }
 0x186   : > { %v2335_v33 = vor.u32 %v2334_v0, %v2330_v5  ;;  %v2338_v3 = vshll.u32 %v6627_v7, 16  ;;  %v2331_v4 = vsel %vm7068_vm3, %v2326_v37, %v2330_v5  ;;  %v2420_v37 = vrot.slane %v2418_v29, 5  ;;  %v6634_v29 = vld [vmem:[%s7030_s13 + $0xac] sm:$0xf] }
 0x187   : > { %v2384_v36 = vrot.slane %v2383_v32, 4 }
 0x188   : > { %v2336_v53 = vrot.slane %v2335_v33, 4  ;;  %v2340_v26 = vrot.slane %v2338_v3, 5  ;;  %v6630_v33 = vld [vmem:[%s7030_s13 + $0x8c] sm:$0x1]  ;;  %v6631_v3 = vld [vmem:[%s7030_s13 + $0xa0] sm:$0xf] }
 0x189   : > { %v2386_v7 = vshll.u32 %v6630_v33, 16  ;;  %v2424_v5 = vshll.u32 %v6631_v3, 16  ;;  %v2428_v6 = vshrl.u32 %v6631_v3, 16  ;;  %v2452_v33 = vshrl.u32 %v6634_v29, 16 }
 0x18a   : > { %v2341_v50 = vsel %vm7068_vm3, %v2336_v53, %v2340_v26 }
 0x18b   : > { %v2388_v53 = vrot.slane %v2386_v7, 5  ;;  %v8644_v26 = vrot.slane %v2424_v5, 5  ;;  %v2430_v14 = vrot.slane %v2428_v6, 4  ;;  %v6635_v6 = vld [vmem:[%s7030_s13 + $0xb8] sm:$0xf] }
 0x18c   : > { %5996 = vmatmul.mubr.msk.bf16.gmra.mrb[20].mxu1 %vm756_vm4, %v6580_v21  ;;  %6150 = vmatmul.mubr.msk.bf16.gmra.mrb[4].mxu0 %vm756_vm4, %v5681_v8  ;;  %v6629_v21 = vld [vmem:[%s7030_s13 + $0x94] sm:$0xf]  ;;  %v2476_v32 = vshrl.u32 %v6635_v6, 16 }
 0x18d   : > { %5999 = vmatprep.mubr.msk.bf16.mxu1 %vm756_vm4, %v6581_v55  ;;  %6153 = vmatprep.mubr.msk.bf16.mxu0 %vm756_vm4, %v5682_v60  ;;  %v2394_v60 = vshll.u32 %v5391_v34, 16  ;;  %v2400_v8 = vshll.u32 %v6629_v21, 16  ;;  %v2404_v0 = vshrl.u32 %v6629_v21, 16  ;;  %v2415_v55 = vshrl.u32 %v5394_v23, 16  ;;  %v6584_v34 = vld [vmem:[%s7030_s13 + $0xc0] sm:$0xff]  }
 0x18e   : > { %v6632_v23 = vld [vmem:[%s7030_s13 + $0x98] sm:$0x1]  ;;  %v2389_v49 = vsel %vm7068_vm3, %v2384_v36, %v2388_v53 }
 0x18f   : > { %v2396_v9 = vrot.slane %v2394_v60, 5  ;;  %v8641_v56 = vrot.slane %v2400_v8, 5  ;;  %v2406_v40 = vrot.slane %v2404_v0, 4  ;;  %v2417_v51 = vrot.slane %v2415_v55, 4  ;;  %v6633_v60 = vld [vmem:[%s7030_s13 + $0xa4] sm:$0x1] }
 0x190   : > { %v2434_v21 = vshll.u32 %v6633_v60, 16  ;;  %v2439_v8 = vshrl.u32 %v5397_v57, 16  ;;  %v5400_v0 = vld [vmem:[%s7030_s13 + $0xb4] sm:$0xf]  ;;  %v2442_v55 = vshll.u32 %v5397_v57, 16  ;;  %v2500_v60 = vshrl.u32 %v6637_v19, 16 }
 0x191   : > { %v2407_v44 = vor.u32 %v2406_v40, %v8641_v56  ;;  %v2463_v3 = vshrl.u32 %v5400_v0, 16  ;;  %v2466_v5 = vshll.u32 %v5400_v0, 16  ;;  %v5403_v57 = vld [vmem:[%s7030_s13 + $0xc0] sm:$0xf] }
 0x192   : > { %v2436_v41 = vrot.slane %v2434_v21, 5  ;;  %v2441_v10 = vrot.slane %v2439_v8, 4  ;;  %v2444_v40 = vrot.slane %v2442_v55, 5  ;;  %v6638_v8 = vld [vmem:[%s7030_s13 + $0xbc] sm:$0x1]  ;;  %v2502_v11 = vrot.slane %v2500_v60, 4 }
 0x193   : > { %v2482_v0 = vshll.u32 %v6638_v8, 16 }
 0x194   : > { %6000 = vmatmul.mubr.msk.bf16.gmra.mrb[24].mxu1 %vm756_vm4, %v6582_v17  ;;  %6154 = vmatmul.mubr.msk.bf16.gmra.mrb[8].mxu0 %vm756_vm4, %v5683_v24  ;;  %v2393_v24 = vrot.slane %v2391_v28, 4  ;;  %v5414_v17 = vcombine.low %v2331_v4, %v2341_v50  ;;  %v2421_v28 = vor.u32 %v2420_v37, %v2417_v51  ;;  %v2431_v4 = vor.u32 %v2430_v14, %v8644_v26 }
 0x195   : > { %6003 = vmatprep.mubr.msk.bf16.mxu1 %vm756_vm4, %v6583_v31  ;;  %6157 = vmatprep.mubr.msk.bf16.mxu0 %vm756_vm4, %v5684_v15  ;;  %v2374_v15 = vrot.slane %v2373_v43, 4  ;;  %v2410_v31 = vshll.u32 %v6632_v23, 16  ;;  %v2448_v50 = vshll.u32 %v6634_v29, 16  ;;  %v2472_v43 = vshll.u32 %v6635_v6, 16 }
 0x196   : > { %v2397_v35 = vor.u32 %v2396_v9, %v2393_v24  ;;  %v2408_v24 = vrot.slane %v2407_v44, 4  ;;  %v2422_v9 = vrot.slane %v2421_v28, 4  ;;  %v2478_v14 = vrot.slane %v2476_v32, 4  ;;  %v6636_v44 = vld [vmem:[%s7030_s13 + $0xb0] sm:$0x1] }
 0x197   : > { %v2379_v7 = vsel %vm7068_vm3, %v2374_v15, %v8621_v22  ;;  %v2450_v51 = vrot.slane %v2448_v50, 5  ;;  %v2454_v22 = vrot.slane %v2452_v33, 4  ;;  %v2474_v53 = vrot.slane %v2472_v43, 5  ;;  %v6639_v32 = vld [vmem:[%s7030_s13 + $0xc8] sm:$0x1] }
 0x198   : > { %v2398_v16 = vrot.slane %v2397_v35, 4  ;;  %v5416_v37 = vcombine.low %v2379_v7, %v2389_v49  ;;  %v2427_v35 = vsel %vm7068_vm3, %v2422_v9, %v8644_v26  ;;  %v2458_v28 = vshll.u32 %v6636_v44, 16 }
 0x199   : > { %v2490_v26 = vshll.u32 %v5403_v57, 16  ;;  %v2479_v21 = vor.u32 %v2478_v14, %v2474_v53  ;;  %v2503_v43 = vor.u32 %v2502_v11, %v2498_v38 }
 0x19a   : > { %v2403_v15 = vsel %vm7068_vm3, %v2398_v16, %v8641_v56  ;;  %v2445_v56 = vor.u32 %v2444_v40, %v2441_v10  ;;  %v2460_v33 = vrot.slane %v2458_v28, 5 }
 0x19b   : > { %v2492_v49 = vrot.slane %v2490_v26, 5  ;;  %v2480_v16 = vrot.slane %v2479_v21, 4  ;;  %v2504_v10 = vrot.slane %v2503_v43, 4 }
 0x19c   : > { %6004 = vmatmul.mubr.msk.bf16.gmra.mrb[28].mxu1 %vm756_vm4, %v6584_v34  ;;  %6158 = vmatmul.mubr.msk.bf16.gmra.mrb[12].mxu0 %vm756_vm4, %v5685_v39  ;;  %v2412_v39 = vrot.slane %v2410_v31, 5  ;;  %v2465_v34 = vrot.slane %v2463_v3, 4  ;;  %v2455_v31 = vor.u32 %v2454_v22, %v2450_v51  ;;  %v2446_v29 = vrot.slane %v2445_v56, 4 }
 0x19d   : > { %6025 = vmatprep.mubr.msk.bf16.mxu1 %vm756_vm4, %v5414_v17  ;;  %6161 = vmatprep.mubr.msk.bf16.mxu0 %vm756_vm4, %v5686_v13  ;;  %v2432_v13 = vrot.slane %v2431_v4, 4  ;;  %v2468_v17 = vrot.slane %v2466_v5, 5 }
 0x19e   : > { %v2413_v36 = vsel %vm7068_vm3, %v2408_v24, %v2412_v39  ;;  %v2456_v50 = vrot.slane %v2455_v31, 4  ;;  %v2484_v39 = vrot.slane %v2482_v0, 5  ;;  %v2451_v3 = vsel %vm7068_vm3, %v2446_v29, %v2450_v51 }
 0x19f   : > { %v2437_v23 = vsel %vm7068_vm3, %v2432_v13, %v2436_v41  ;;  %v5417_v4 = vcombine.low %v2403_v15, %v2413_v36  ;;  %v2506_v24 = vshll.u32 %v6639_v32, 16 }
 0x1a0   : > { %v5418_v55 = vcombine.low %v2427_v35, %v2437_v23  ;;  %v2461_v5 = vsel %vm7068_vm3, %v2456_v50, %v2460_v33  ;;  %v2485_v42 = vsel %vm7068_vm3, %v2480_v16, %v2484_v39 }
 0x1a1   : > { %v2508_v27 = vrot.slane %v2506_v24, 5 }
 0x1a4   : > { %6026 = vmatmul.mubr.msk.bf16.vlgmr.msra.gmra.mrb[16].mxu1 %vm756_vm4, %v8449_v58  ;;  %6162 = vmatmul.mubr.msk.bf16.gmra.mrb[16].mxu0 %vm756_vm4, %v5687_v48  ;;  %v2487_v58 = vshrl.u32 %v5403_v57, 16  ;;  %v2469_v48 = vor.u32 %v2468_v17, %v2465_v34 }
 0x1a5   : > { %6029 = vmatprep.mubr.msk.bf16.mxu1 %vm756_vm4, %v5416_v37  ;;  %6165 = vmatprep.mubr.msk.bf16.mxu0 %vm756_vm4, %v5688_v46 }
 0x1a6   : > { %v2489_v7 = vrot.slane %v2487_v58, 4  ;;  %v2470_v46 = vrot.slane %v2469_v48, 4 }
 0x1a8   : > { %v2493_v6 = vor.u32 %v2492_v49, %v2489_v7  ;;  %v2475_v63 = vsel %vm7068_vm3, %v2470_v46, %v2474_v53 }
 0x1a9   : > { %v5420_v9 = vcombine.low %v2475_v63, %v2485_v42 }
 0x1aa   : > { %v2494_v41 = vrot.slane %v2493_v6, 4 }
 0x1ac   : > { %6030 = vmatmul.mubr.msk.bf16.gmra.mrb[20].mxu1 %vm756_vm4, %v5417_v4  ;;  %6166 = vmatmul.mubr.msk.bf16.gmra.mrb[20].mxu0 %vm756_vm4, %v5689_v12  ;;  %v5419_v12 = vcombine.low %v2451_v3, %v2461_v5  ;;  %v2499_v54 = vsel %vm7068_vm3, %v2494_v41, %v2498_v38 }
 0x1ad   : > { %6033 = vmatprep.mubr.msk.bf16.mxu1 %vm756_vm4, %v5418_v55  ;;  %6169 = vmatprep.mubr.msk.bf16.mxu0 %vm756_vm4, %v5690_v62  ;;  %v2509_v62 = vsel %vm7068_vm3, %v2504_v10, %v2508_v27 }
 0x1ae   : > { %v5421_v13 = vcombine.low %v2499_v54, %v2509_v62 }
 0x1b4   : > { %6034 = vmatmul.mubr.msk.bf16.gmra.mrb[24].mxu1 %vm756_vm4, %v5419_v12  ;;  %6170 = vmatmul.mubr.msk.bf16.gmra.mrb[24].mxu0 %vm756_vm4, %v5691_v18 }
 0x1b5   : > { %6037 = vmatprep.mubr.msk.bf16.mxu1 %vm756_vm4, %v5420_v9  ;;  %6173 = vmatprep.mubr.msk.bf16.mxu0 %vm756_vm4, %v5692_v45 }
 0x1bc   : > { %6038 = vmatmul.mubr.msk.bf16.gmra.mrb[28].mxu1 %vm756_vm4, %v5421_v13  ;;  %6174 = vmatmul.mubr.msk.bf16.gmra.mrb[28].mxu0 %vm756_vm4, %v5693_v52 }
 0x237   : > { %v5977_v59 = vpop.f32.mrb[0].mxu1 }
 0x238   : > { %v1919_v47 = vpop.f32.mrb[1].mxu1 }
 0x239   : > { %v5978_v18 = vpop.f32.mrb[2].mxu1 }
 0x23a   : > { %v1922_v25 = vpop.f32.mrb[3].mxu1 }
 0x23f   : > { %v5981_v61 = vpop.f32.mrb[4].mxu1 }
 0x240   : > { %v1935_v45 = vpop.f32.mrb[5].mxu1 }
 0x241   : > { %v5982_v40 = vpop.f32.mrb[6].mxu1 }
 0x242   : > { %v1938_v51 = vpop.f32.mrb[7].mxu1 }
 0x247   : > { %v5985_v22 = vpop.f32.mrb[8].mxu1 }
 0x248   : > { %v1951_v30 = vpop.f32.mrb[9].mxu1 }
 0x249   : > { %v5986_v37 = vpop.f32.mrb[10].mxu1 }
 0x24a   : > { %v8732_v34 = vpop.f32.mrb[11].mxu1 }
 0x24f   : > { %v8734_v17 = vpop.f32.mrb[12].mxu1 }
 0x250   : > { %v8736_v53 = vpop.f32.mrb[13].mxu1 }
 0x251   : > { %v8738_v1 = vpop.f32.mrb[14].mxu1 }
 0x252   : > { %v8740_v2 = vpop.f32.mrb[15].mxu1 }
 0x257   : > { %v6147_v52 = vpop.f32.mrb[0].mxu0 }
 0x258   : > { %v6179_v14 = vadd.f32 %v6147_v52, %v5977_v59  ;;  %v4670_v57 = vpop.f32.mrb[1].mxu0 }
 0x259   : > { %v6180_v15 = vadd.f32 %v4670_v57, %v1919_v47  ;;  %v6148_v36 = vpop.f32.mrb[2].mxu0 }
 0x25a   : > { %4831 = vst [vmem:[%s8743_s25 + $0x10] sm:$0xff] %v6179_v14  ;;  %v6181_v35 = vadd.f32 %v6148_v36, %v5978_v18  ;;  %v4673_v23 = vpop.f32.mrb[3].mxu0  ;;  %v4901_v58 = vmul.f32 %v6179_v14, %v6179_v14 }
 0x25b   : > { %4829 = vst [vmem:[%s8743_s25] sm:$0xff] %v6180_v15  ;;  %v6182_v56 = vadd.f32 %v4673_v23, %v1922_v25  ;;  %v4899_v31 = vmul.f32 %v6180_v15, %v6180_v15 }
 0x25c   : > { %4832 = vst [vmem:[%s8743_s25 + $0x18] sm:$0xff] %v6181_v35  ;;  %v4902_v21 = vmul.f32 %v6181_v35, %v6181_v35 }
 0x25d   : > { %4830 = vst [vmem:[%s8743_s25 + $0x8] sm:$0xff] %v6182_v56  ;;  %v4861_v44 = vadd.f32 %v6182_v56, %v6180_v15  ;;  %v4900_v28 = vmul.f32 %v6182_v56, %v6182_v56 }
 0x25f   : > { %v4862_v26 = vadd.f32 %v6179_v14, %v4861_v44  ;;  %v4931_v19 = vadd.f32 %v4900_v28, %v4899_v31  ;;  %v6151_v20 = vpop.f32.mrb[4].mxu0 }
 0x260   : > { %v6183_v60 = vadd.f32 %v6151_v20, %v5981_v61  ;;  %v4686_v48 = vpop.f32.mrb[5].mxu0 }
 0x261   : > { %v4932_v8 = vadd.f32 %v4931_v19, %v4901_v58  ;;  %v6184_v0 = vadd.f32 %v4686_v48, %v1935_v45  ;;  %v4863_v4 = vadd.f32 %v6181_v35, %v4862_v26  ;;  %v6152_v55 = vpop.f32.mrb[6].mxu0 }
 0x262   : > { %4835 = vst [vmem:[%s8743_s25 + $0x30] sm:$0xff] %v6183_v60  ;;  %v6185_v29 = vadd.f32 %v6152_v55, %v5982_v40  ;;  %v4689_v50 = vpop.f32.mrb[7].mxu0  ;;  %v4905_v39 = vmul.f32 %v6183_v60, %v6183_v60 }
 0x263   : > { %4833 = vst [vmem:[%s8743_s25 + $0x20] sm:$0xff] %v6184_v0  ;;  %v4864_v33 = vadd.f32 %v6184_v0, %v4863_v4  ;;  %v4903_v7 = vmul.f32 %v6184_v0, %v6184_v0  ;;  %v4933_v49 = vadd.f32 %v4932_v8, %v4902_v21  ;;  %v6186_v38 = vadd.f32 %v4689_v50, %v1938_v51 }
 0x264   : > { %4836 = vst [vmem:[%s8743_s25 + $0x38] sm:$0xff] %v6185_v29  ;;  %v4906_v24 = vmul.f32 %v6185_v29, %v6185_v29 }
 0x265   : > { %v4934_v11 = vadd.f32 %v4933_v49, %v4903_v7  ;;  %4834 = vst [vmem:[%s8743_s25 + $0x28] sm:$0xff] %v6186_v38  ;;  %v4865_v46 = vadd.f32 %v6186_v38, %v4864_v33  ;;  %v4904_v16 = vmul.f32 %v6186_v38, %v6186_v38 }
 0x267   : > { %v4866_v3 = vadd.f32 %v6183_v60, %v4865_v46  ;;  %v4935_v5 = vadd.f32 %v4934_v11, %v4904_v16  ;;  %v6155_v6 = vpop.f32.mrb[8].mxu0 }
 0x268   : > { %v6187_v43 = vadd.f32 %v6155_v6, %v5985_v22  ;;  %v4702_v32 = vpop.f32.mrb[9].mxu0 }
 0x269   : > { %v4936_v63 = vadd.f32 %v4935_v5, %v4905_v39  ;;  %v6188_v42 = vadd.f32 %v4702_v32, %v1951_v30  ;;  %v4867_v12 = vadd.f32 %v6185_v29, %v4866_v3  ;;  %v6156_v9 = vpop.f32.mrb[10].mxu0 }
 0x26a   : > { %4839 = vst [vmem:[%s8743_s25 + $0x50] sm:$0xff] %v6187_v43  ;;  %v6189_v41 = vadd.f32 %v6156_v9, %v5986_v37  ;;  %v4705_v10 = vpop.f32.mrb[11].mxu0  ;;  %v4909_v25 = vmul.f32 %v6187_v43, %v6187_v43 }
 0x26b   : > { %4837 = vst [vmem:[%s8743_s25 + $0x40] sm:$0xff] %v6188_v42  ;;  %v4868_v27 = vadd.f32 %v6188_v42, %v4867_v12  ;;  %v4907_v54 = vmul.f32 %v6188_v42, %v6188_v42  ;;  %v4937_v62 = vadd.f32 %v4936_v63, %v4906_v24  ;;  %v6190_v13 = vadd.f32 %v4705_v10, %v8732_v34 }
 0x26c   : > { %4840 = vst [vmem:[%s8743_s25 + $0x58] sm:$0xff] %v6189_v41  ;;  %v4910_v30 = vmul.f32 %v6189_v41, %v6189_v41 }
 0x26d   : > { %v4938_v59 = vadd.f32 %v4937_v62, %v4907_v54  ;;  %4838 = vst [vmem:[%s8743_s25 + $0x48] sm:$0xff] %v6190_v13  ;;  %v4869_v47 = vadd.f32 %v6190_v13, %v4868_v27  ;;  %v4908_v18 = vmul.f32 %v6190_v13, %v6190_v13 }
 0x26f   : > { %v4870_v61 = vadd.f32 %v6187_v43, %v4869_v47  ;;  %v4939_v45 = vadd.f32 %v4938_v59, %v4908_v18  ;;  %v6159_v40 = vpop.f32.mrb[12].mxu0 }
 0x270   : > { %v6191_v51 = vadd.f32 %v6159_v40, %v8734_v17  ;;  %v4718_v22 = vpop.f32.mrb[13].mxu0 }
 0x271   : > { %v4940_v37 = vadd.f32 %v4939_v45, %v4909_v25  ;;  %v6192_v34 = vadd.f32 %v4718_v22, %v8736_v53  ;;  %v4871_v52 = vadd.f32 %v6189_v41, %v4870_v61  ;;  %v6160_v14 = vpop.f32.mrb[14].mxu0 }
 0x272   : > { %4843 = vst [vmem:[%s8743_s25 + $0x70] sm:$0xff] %v6191_v51  ;;  %v6193_v57 = vadd.f32 %v6160_v14, %v8738_v1  ;;  %v4721_v15 = vpop.f32.mrb[15].mxu0  ;;  %v4913_v28 = vmul.f32 %v6191_v51, %v6191_v51 }
 0x273   : > { %4841 = vst [vmem:[%s8743_s25 + $0x60] sm:$0xff] %v6192_v34  ;;  %v4872_v36 = vadd.f32 %v6192_v34, %v4871_v52  ;;  %v4911_v35 = vmul.f32 %v6192_v34, %v6192_v34  ;;  %v4941_v23 = vadd.f32 %v4940_v37, %v4910_v30  ;;  %v6194_v56 = vadd.f32 %v4721_v15, %v8740_v2 }
 0x274   : > { %4844 = vst [vmem:[%s8743_s25 + $0x78] sm:$0xff] %v6193_v57  ;;  %v4914_v48 = vmul.f32 %v6193_v57, %v6193_v57 }
 0x275   : > { %v4942_v17 = vadd.f32 %v4941_v23, %v4911_v35  ;;  %4842 = vst [vmem:[%s8743_s25 + $0x68] sm:$0xff] %v6194_v56  ;;  %v4873_v31 = vadd.f32 %v6194_v56, %v4872_v36  ;;  %v4912_v44 = vmul.f32 %v6194_v56, %v6194_v56 }
 0x277   : > { %v4874_v53 = vadd.f32 %v6191_v51, %v4873_v31  ;;  %v4943_v58 = vadd.f32 %v4942_v17, %v4912_v44  ;;  %v6027_v26 = vpop.f32.mrb[16].mxu1  ;;  %v6163_v19 = vpop.f32.mrb[16].mxu0 }
 0x278   : > { %v6195_v1 = vadd.f32 %v6163_v19, %v6027_v26  ;;  %v2709_v20 = vpop.f32.mrb[17].mxu1  ;;  %v4734_v60 = vpop.f32.mrb[17].mxu0 }
 0x279   : > { %v4944_v21 = vadd.f32 %v4943_v58, %v4913_v28  ;;  %v6196_v2 = vadd.f32 %v4734_v60, %v2709_v20  ;;  %v4875_v8 = vadd.f32 %v6193_v57, %v4874_v53  ;;  %v6028_v0 = vpop.f32.mrb[18].mxu1  ;;  %v6164_v4 = vpop.f32.mrb[18].mxu0 }
 0x27a   : > { %4847 = vst [vmem:[%s8743_s25 + $0x90] sm:$0xff] %v6195_v1  ;;  %v6197_v55 = vadd.f32 %v6164_v4, %v6028_v0  ;;  %v2712_v29 = vpop.f32.mrb[19].mxu1  ;;  %v4737_v50 = vpop.f32.mrb[19].mxu0  ;;  %v4917_v39 = vmul.f32 %v6195_v1, %v6195_v1 }
 0x27b   : > { %4845 = vst [vmem:[%s8743_s25 + $0x80] sm:$0xff] %v6196_v2  ;;  %v4876_v33 = vadd.f32 %v6196_v2, %v4875_v8  ;;  %v4915_v7 = vmul.f32 %v6196_v2, %v6196_v2  ;;  %v4945_v49 = vadd.f32 %v4944_v21, %v4914_v48  ;;  %v6198_v38 = vadd.f32 %v4737_v50, %v2712_v29 }
 0x27c   : > { %4848 = vst [vmem:[%s8743_s25 + $0x98] sm:$0xff] %v6197_v55  ;;  %v4918_v42 = vmul.f32 %v6197_v55, %v6197_v55 }
 0x27d   : > { %v4946_v11 = vadd.f32 %v4945_v49, %v4915_v7  ;;  %4846 = vst [vmem:[%s8743_s25 + $0x88] sm:$0xff] %v6198_v38  ;;  %v4877_v46 = vadd.f32 %v6198_v38, %v4876_v33  ;;  %v4916_v16 = vmul.f32 %v6198_v38, %v6198_v38 }
 0x27f   : > { %v4878_v3 = vadd.f32 %v6195_v1, %v4877_v46  ;;  %v4947_v5 = vadd.f32 %v4946_v11, %v4916_v16  ;;  %v6031_v6 = vpop.f32.mrb[20].mxu1  ;;  %v6167_v43 = vpop.f32.mrb[20].mxu0 }
 0x280   : > { %v6199_v32 = vadd.f32 %v6167_v43, %v6031_v6  ;;  %v2725_v24 = vpop.f32.mrb[21].mxu1  ;;  %v4750_v63 = vpop.f32.mrb[21].mxu0 }
 0x281   : > { %v4948_v12 = vadd.f32 %v4947_v5, %v4917_v39  ;;  %v6200_v9 = vadd.f32 %v4750_v63, %v2725_v24  ;;  %v4879_v41 = vadd.f32 %v6197_v55, %v4878_v3  ;;  %v6032_v10 = vpop.f32.mrb[22].mxu1  ;;  %v6168_v27 = vpop.f32.mrb[22].mxu0 }
 0x282   : > { %4851 = vst [vmem:[%s8743_s25 + $0xb0] sm:$0xff] %v6199_v32  ;;  %v6201_v54 = vadd.f32 %v6168_v27, %v6032_v10  ;;  %v2728_v62 = vpop.f32.mrb[23].mxu1  ;;  %v4753_v13 = vpop.f32.mrb[23].mxu0  ;;  %v4921_v51 = vmul.f32 %v6199_v32, %v6199_v32 }
 0x283   : > { %4849 = vst [vmem:[%s8743_s25 + $0xa0] sm:$0xff] %v6200_v9  ;;  %v4880_v59 = vadd.f32 %v6200_v9, %v4879_v41  ;;  %v4919_v47 = vmul.f32 %v6200_v9, %v6200_v9  ;;  %v4949_v18 = vadd.f32 %v4948_v12, %v4918_v42  ;;  %v6202_v25 = vadd.f32 %v4753_v13, %v2728_v62 }
 0x284   : > { %4852 = vst [vmem:[%s8743_s25 + $0xb8] sm:$0xff] %v6201_v54  ;;  %v4922_v15 = vmul.f32 %v6201_v54, %v6201_v54 }
 0x285   : > { %v4950_v61 = vadd.f32 %v4949_v18, %v4919_v47  ;;  %4850 = vst [vmem:[%s8743_s25 + $0xa8] sm:$0xff] %v6202_v25  ;;  %v4881_v45 = vadd.f32 %v6202_v25, %v4880_v59  ;;  %v4920_v40 = vmul.f32 %v6202_v25, %v6202_v25 }
 0x287   : > { %v4882_v22 = vadd.f32 %v6199_v32, %v4881_v45  ;;  %v4951_v30 = vadd.f32 %v4950_v61, %v4920_v40  ;;  %v6035_v37 = vpop.f32.mrb[24].mxu1  ;;  %v6171_v34 = vpop.f32.mrb[24].mxu0 }
 0x288   : > { %v6203_v52 = vadd.f32 %v6171_v34, %v6035_v37  ;;  %v2741_v14 = vpop.f32.mrb[25].mxu1  ;;  %v4766_v57 = vpop.f32.mrb[25].mxu0 }
 0x289   : > { %v4952_v36 = vadd.f32 %v4951_v30, %v4921_v51  ;;  %v6204_v35 = vadd.f32 %v4766_v57, %v2741_v14  ;;  %v4883_v23 = vadd.f32 %v6201_v54, %v4882_v22  ;;  %v6036_v56 = vpop.f32.mrb[26].mxu1  ;;  %v6172_v17 = vpop.f32.mrb[26].mxu0 }
 0x28a   : > { %4855 = vst [vmem:[%s8743_s25 + $0xd0] sm:$0xff] %v6203_v52  ;;  %v6205_v31 = vadd.f32 %v6172_v17, %v6036_v56  ;;  %v2744_v44 = vpop.f32.mrb[27].mxu1  ;;  %v4769_v28 = vpop.f32.mrb[27].mxu0  ;;  %v4925_v48 = vmul.f32 %v6203_v52, %v6203_v52 }
 0x28b   : > { %4853 = vst [vmem:[%s8743_s25 + $0xc0] sm:$0xff] %v6204_v35  ;;  %v4884_v53 = vadd.f32 %v6204_v35, %v4883_v23  ;;  %v4923_v58 = vmul.f32 %v6204_v35, %v6204_v35  ;;  %v4953_v26 = vadd.f32 %v4952_v36, %v4922_v15  ;;  %v6206_v19 = vadd.f32 %v4769_v28, %v2744_v44 }
 0x28c   : > { %4856 = vst [vmem:[%s8743_s25 + $0xd8] sm:$0xff] %v6205_v31  ;;  %v4926_v50 = vmul.f32 %v6205_v31, %v6205_v31 }
 0x28d   : > { %v4954_v1 = vadd.f32 %v4953_v26, %v4923_v58  ;;  %4854 = vst [vmem:[%s8743_s25 + $0xc8] sm:$0xff] %v6206_v19  ;;  %v4885_v20 = vadd.f32 %v6206_v19, %v4884_v53  ;;  %v4924_v60 = vmul.f32 %v6206_v19, %v6206_v19 }
 0x28f   : > { %v4886_v21 = vadd.f32 %v6203_v52, %v4885_v20  ;;  %v4955_v2 = vadd.f32 %v4954_v1, %v4924_v60  ;;  %v6039_v8 = vpop.f32.mrb[28].mxu1  ;;  %v6175_v0 = vpop.f32.mrb[28].mxu0 }
 0x290   : > { %v6207_v4 = vadd.f32 %v6175_v0, %v6039_v8  ;;  %v2757_v55 = vpop.f32.mrb[29].mxu1  ;;  %v4782_v29 = vpop.f32.mrb[29].mxu0 }
 0x291   : > { %v4956_v33 = vadd.f32 %v4955_v2, %v4925_v48  ;;  %v6208_v7 = vadd.f32 %v4782_v29, %v2757_v55  ;;  %v4887_v49 = vadd.f32 %v6205_v31, %v4886_v21  ;;  %v6040_v38 = vpop.f32.mrb[30].mxu1  ;;  %v6176_v11 = vpop.f32.mrb[30].mxu0 }
 0x292   : > { %4859 = vst [vmem:[%s8743_s25 + $0xf0] sm:$0xff] %v6207_v4  ;;  %v6209_v46 = vadd.f32 %v6176_v11, %v6040_v38  ;;  %v2760_v16 = vpop.f32.mrb[31].mxu1  ;;  %v4785_v39 = vpop.f32.mrb[31].mxu0 }
 0x293   : > { %4857 = vst [vmem:[%s8743_s25 + $0xe0] sm:$0xff] %v6208_v7  ;;  %v4888_v3 = vadd.f32 %v6208_v7, %v4887_v49  ;;  %v4927_v5 = vmul.f32 %v6208_v7, %v6208_v7  ;;  %v4957_v6 = vadd.f32 %v4956_v33, %v4926_v50  ;;  %v6210_v43 = vadd.f32 %v4785_v39, %v2760_v16 }
 0x294   : > { %4860 = vst [vmem:[%s8743_s25 + $0xf8] sm:$0xff] %v6209_v46 }
 0x295   : > { %v4958_v32 = vadd.f32 %v4957_v6, %v4927_v5  ;;  %4858 = vst [vmem:[%s8743_s25 + $0xe8] sm:$0xff] %v6210_v43  ;;  %v4889_v24 = vadd.f32 %v6210_v43, %v4888_v3  ;;  %v4928_v63 = vmul.f32 %v6210_v43, %v6210_v43 }
 0x296   : > { %6711 = shalt.err (!%p6708_p9)
}
 0x297   : > { %s6712_s13 = scalar_lea.hbm %s8784_s6, 4096  ;;  %s6716_s10 = scalar_lea.hbm %s8910_s2, 8192 }
 0x298   : > { %p6713_p1 = scmp.ne.s32.totalorder %s8784_s6, %s6712_s13  ;;  %p6717_p7 = scmp.lt.u32.totalorder %s8784_s6, %s8910_s2 }
 0x299   : > { %p6718_p11 = scmp.lt.u32.totalorder %s6716_s10, %s6712_s13  ;;  %p6720_p6 = scmp.lt.u32.totalorder %s6712_s13, %s8784_s6 }
 0x29a   : > { %p6714_p2 = pnand %p6713_p1, %p6972_p10 }
 0x29b   : > { %p6719_p4 = por %p6718_p11, %p6717_p7 }
 0x29c   : > { %p6715_p3 = pneg %p6714_p2 }
 0x29d   : > { %p6721_p8 = por %p6720_p6, %p6719_p4 }
 0x29f   : > { %p6722_p12 = pnand %p6721_p8, %p6715_p3 }
 0x2a1   : > { %6725 = shalt.err (!%p6722_p12)
}
 0x2a2   : > { %s6853_s30 = smov 128   ;;  %s6854_s27 = smov 8   ;;  %v4929_v42 = vmul.f32 %v6207_v4, %v6207_v4  ;;  %v4890_v12 = vadd.f32 %v6207_v4, %v4889_v24  ;;  %v4959_v9 = vadd.f32 %v4958_v32, %v4928_v63  ;;  %v4930_v41 = vmul.f32 %v6209_v46, %v6209_v46 }
 0x2a3   : > { %6454 = dma.vmem_to_hbm [thread:$0]  (%p6972_p10), %s8786_s11, 4096, %s8784_s6, %s4970_s7, %s6853_s30, %s6853_s30, %s6854_s27  }
 0x2a4   : > { %v4891_v10 = vadd.f32 %v6209_v46, %v4890_v12  ;;  %v4960_v27 = vadd.f32 %v4959_v9, %v4929_v42  ;;  %s4974_s12 = sand.u32 1, %s6913_s21   ;;  %s5713_s11 = sshll.u32 %s6836_s18, 4 }
 0x2a5   : > { %s262_s6 = scalar_lea.vmem [#allocation8], %s7026_s9  ;;  %s268_s28 = scalar_lea.vmem [#allocation10], %s7026_s9 }
 0x2a6   : > { %v4892_v54 = vrot.slane %v4891_v10, 4  ;;  %v4961_v62 = vadd.f32 %v4960_v27, %v4930_v41  ;;  %s5010_s7 = sshll.u32 %s262_s6, 4  ;;  %s5024_s13 = sshll.u32 %s268_s28, 4  ;;  %s8826_s7 = int_to_ptr.vmem [resolvable:$true] %s5010_s7  ;;  %s8833_s13 = int_to_ptr.vmem [resolvable:$true] %s5024_s13 }
 0x2a7   : > { %s8824_s10 = scalar_lea.hbm %s8911_s3, %s5713_s11  ;;  %s8831_s14 = scalar_lea.hbm %s8912_s4, %s5713_s11 }
 0x2a8   : > { %v4893_v13 = vadd.f32 %v4892_v54, %v4891_v10  ;;  %v4962_v59 = vrot.slane %v4961_v62, 4  ;;  %s8835_s26 = scalar_lea.sflag [#allocation9], %s4974_s12  ;;  %s6726_s30 = scalar_lea.vmem %s8826_s7, 16 }
 0x2a9   : > { %p6727_p13 = scmp.ne.s32.totalorder %s8826_s7, %s6726_s30  ;;  %s6855_s27 = smov [#allocation8]  }
 0x2aa   : > { %v4894_v47 = vrot.slane %v4893_v13, 2  ;;  %v4963_v18 = vadd.f32 %v4962_v59, %v4961_v62  ;;  %s6730_s23 = sshll.u32 %s6855_s27, 4  ;;  %s6731_s23 = int_to_ptr.vmem [resolvable:$false] %s6730_s23 }
 0x2ab   : > { %p6728_p0 = pnand %p6727_p13, %p6972_p10  ;;  %s6732_s25 = scalar_lea.vmem %s6731_s23, 32 }
 0x2ac   : > { %v4964_v25 = vrot.slane %v4963_v18, 2  ;;  %v4895_v61 = vadd.f32 %v4894_v47, %v4893_v13  ;;  %p6733_p9 = scmp.lt.s32.totalorder %s8826_s7, %s6731_s23  ;;  %p6734_p1 = scmp.lt.s32.totalorder %s6732_s25, %s6726_s30 }
 0x2ad   : > { %p6729_p5 = pneg %p6728_p0 }
 0x2ae   : > { %v4896_v45 = vrot.slane %v4895_v61, 1  ;;  %v4965_v40 = vadd.f32 %v4964_v25, %v4963_v18  ;;  %p6735_p2 = por %p6734_p1, %p6733_p9 }
 0x2b0   : > { %v4897_v51 = vadd.f32 %v4896_v45, %v4895_v61  ;;  %v4966_v22 = vrot.slane %v4965_v40, 1  ;;  %p6736_p3 = pnand %p6735_p2, %p6729_p5 }
 0x2b2   : > { %4898 = vst [vmem:[%s262_s6] sm:$0x1] %v4897_v51  ;;  %v4967_v30 = vadd.f32 %v4966_v22, %v4965_v40 }
 0x2b3   : > { %6739 = shalt.err (!%p6736_p3)
}
 0x2b4   : > { %s6740_s12 = scalar_lea.hbm %s8824_s10, 16  ;;  %s6744_s18 = scalar_lea.hbm %s8911_s3, 32 }
 0x2b5   : > { %p6741_p7 = scmp.ne.s32.totalorder %s8824_s10, %s6740_s12  ;;  %p6745_p6 = scmp.lt.u32.totalorder %s8824_s10, %s8911_s3 }
 0x2b6   : > { %p6746_p8 = scmp.lt.u32.totalorder %s6744_s18, %s6740_s12  ;;  %p6748_p13 = scmp.lt.u32.totalorder %s6740_s12, %s8824_s10 }
 0x2b7   : > { %p6742_p11 = pnand %p6741_p7, %p6972_p10 }
 0x2b8   : > { %p6747_p12 = por %p6746_p8, %p6745_p6 }
 0x2b9   : > { %p6743_p4 = pneg %p6742_p11 }
 0x2ba   : > { %p6749_p0 = por %p6748_p13, %p6747_p12 }
 0x2bc   : > { %p6750_p5 = pnand %p6749_p0, %p6743_p4 }
 0x2be   : > { %6753 = shalt.err (!%p6750_p5)
}
 0x2bf   : > { %6455 = dma.vmem_to_hbm [thread:$0]  (%p6972_p10), %s8826_s7, 16, %s8824_s10, %s8835_s26   ;;  %4968 = vst [vmem:[%s268_s28] sm:$0x1] %v4967_v30 }
 0x2c0   : > { %s6754_s30 = scalar_lea.vmem %s8833_s13, 16  ;;  %s6856_s23 = smov [#allocation10]  }
 0x2c1   : > { %p6755_p9 = scmp.ne.s32.totalorder %s8833_s13, %s6754_s30  ;;  %s6758_s25 = sshll.u32 %s6856_s23, 4  ;;  %s6759_s25 = int_to_ptr.vmem [resolvable:$false] %s6758_s25 }
 0x2c2   : > { %s6760_s12 = scalar_lea.vmem %s6759_s25, 32  ;;  %p6761_p3 = scmp.lt.s32.totalorder %s8833_s13, %s6759_s25 }
 0x2c3   : > { %p6756_p1 = pnand %p6755_p9, %p6972_p10  ;;  %p6762_p7 = scmp.lt.s32.totalorder %s6760_s12, %s6754_s30 }
 0x2c5   : > { %p6757_p2 = pneg %p6756_p1  ;;  %p6763_p11 = por %p6762_p7, %p6761_p3 }
 0x2c7   : > { %p6764_p4 = pnand %p6763_p11, %p6757_p2 }
 0x2c9   : > { %6767 = shalt.err (!%p6764_p4)
}
 0x2ca   : > { %s6768_s9 = scalar_lea.hbm %s8831_s14, 16  ;;  %s6772_s10 = scalar_lea.hbm %s8912_s4, 32 }
 0x2cb   : > { %p6769_p6 = scmp.ne.s32.totalorder %s8831_s14, %s6768_s9  ;;  %p6773_p13 = scmp.lt.u32.totalorder %s8831_s14, %s8912_s4 }
 0x2cc   : > { %p6774_p0 = scmp.lt.u32.totalorder %s6772_s10, %s6768_s9  ;;  %p6776_p9 = scmp.lt.u32.totalorder %s6768_s9, %s8831_s14 }
 0x2cd   : > { %p6770_p8 = pnand %p6769_p6, %p6972_p10 }
 0x2ce   : > { %p6775_p5 = por %p6774_p0, %p6773_p13 }
 0x2cf   : > { %p6771_p12 = pneg %p6770_p8 }
 0x2d0   : > { %p6777_p1 = por %p6776_p9, %p6775_p5 }
 0x2d2   : > { %p6778_p2 = pnand %p6777_p1, %p6771_p12 }
 0x2d4   : > { %6781 = shalt.err (!%p6778_p2)
}
 0x2d5   : > { %6456 = dma.vmem_to_hbm [thread:$0]  (%p6972_p10), %s8833_s13, 16, %s8831_s14, %s8835_s26  }
 0x2d6 PF: > { %s5036_s18 = sand.u32 1, %s6824_s15   ;;  %p9013_p3 = scmp.ne.s32.totalorder %s8936_s24, 0 }
 0x2d7   : > { %p9014_p7 = scmp.ge.s32.totalorder %s6844_s20, 2  ;;  %s5037_s21 = scalar_lea.sflag [#allocation4], %s5036_s18 }
 0x2d9   : > { %p6469_p11 = pnand %p9014_p7, %p9013_p3 }
 0x2db   : > { %6815 = dma.done.wait (!%p6469_p11), %s5037_s21, 4096  }
 0x2dc   : > { %6817 = vsyncadd (!%p6469_p11), %s5037_s21, 4294963200  ;;  %s5045_s27 = sand.u32 1, %s5174_s22  }
 0x2dd   : > { %s5046_s30 = scalar_lea.sflag [#allocation9], %s5045_s27 }
 0x2de   : > { %6819 = dma.done.wait (!%p6469_p11), %s5046_s30, 32  }
 0x2df   : > { %6821 = vsyncadd (!%p6469_p11), %s5046_s30, 4294967264  ;;  %s25_s20 = sadd.s32 1, %s6844_s20   ;;  %s9015_s15 = smov %s6828_s16 }
 0x2e0   : > { %p22_p10 = scmp.ge.s32.totalorder %s25_s20, 4   ;;  %s9016_s16 = smov %s6832_s17 }
 0x2e1   : > { %s9017_s17 = smov %s6981_s8  ;;  %s9018_s18 = smov %s6840_s19 }
 0x2e2   : > { %s9019_s19 = smov %s9021_s29  ;;  %24 = sbr.rel (!%p22_p10) target bundleno = 9 (0x9), region = 119 }
 0x2e9   :  { %5058 = vsyncpa [#allocation3], 1 }
 0x2ea   :  { %5060 = vsyncpa [#allocation3 + $0x1], 1 }
 0x2eb   :  { %5061 = vsyncpa [#allocation6], 1 }
 0x2ec   :  { %5062 = vsyncpa [#allocation4], 1 }
 0x2ed   :  { %5064 = vsyncpa [#allocation4 + $0x1], 1 }
 0x2ee   :  { %5065 = vsyncpa [#allocation9], 1 }
 0x2ef   :  { %5067 = vsyncpa [#allocation9 + $0x1], 1 }

</bundles_post_ra>
